<compile_context>
chip_gen: v5e
topology: v5e:2x2
jax: 0.10.0
libtpu: 0.0.40
codegen_flags: <defaults>
</compile_context>

<pallas_src>
import functools
import math

import jax
import jax.numpy as jnp
from jax.experimental import pallas as pl
from jax.experimental.pallas import tpu as pltpu

# ----------------------------- small config ---------------------------------
BATCH = 2
SEQ = 8            # user sequence length (before CLS/SEP are added)
HIDDEN = 32
NUM_LAYERS = 2
NUM_HEADS = 4
HEAD_DIM = HIDDEN // NUM_HEADS
HEAD_SLOT = 128    # zero-padded 128-lane slot per head for Q/K/V/Wo
INTERMEDIATE = 64
ADAPTER_SIZE = 8
VOCAB = 130        # must contain ids 101 (CLS) and 102 (SEP)
MAX_POS = 32
LN_EPS = 1e-12     # HF BERT default layer_norm_eps


# ----------------------------- in-kernel math --------------------------------
def _erf(x):
    # Abramowitz & Stegun 7.1.26 rational approximation (max abs err ~1.5e-7).
    a1, a2, a3, a4, a5 = 0.254829592, -0.284496736, 1.421413741, -1.453152027, 1.061405429
    p = 0.3275911
    sgn = jnp.where(x >= 0.0, 1.0, -1.0)
    ax = jnp.abs(x)
    t = pl.reciprocal(1.0 + p * ax, approx=False)   # EUP/vrcp instead of VALU divide
    poly = ((((a5 * t + a4) * t + a3) * t + a2) * t + a1) * t
    return sgn * (1.0 - poly * jnp.exp(-ax * ax))


def _gelu(x):
    # GELU: 0.5 * x * (1 + erf(x / sqrt(2)))  (nn.GELU() default semantics)
    return 0.5 * x * (1.0 + _erf(x * 0.7071067811865476))


def _layernorm(x, g, b):
    # E[x^2] - mu^2 form: the two reductions are independent (shorter XLU chain).
    mu = jnp.mean(x, axis=-1, keepdims=True)
    ms = jnp.mean(x * x, axis=-1, keepdims=True)
    var = jnp.maximum(ms - mu * mu, 0.0)
    return (x - mu) * jax.lax.rsqrt(var + LN_EPS) * g + b


# ------------------------------- fused kernel ---------------------------------
def fused_forward_kernel(ids_ref, kb_ref, wemb_ref, pemb_ref, emisc_ref,
                         qkvw_ref, qkvb_ref, wo_ref, vech_ref, veca_ref,
                         ib_ref, addw_ref, aduw_ref, wi_ref, wout_ref,
                         o_ref, *, seq_total, seq_out, num_layers, num_heads,
                         head_slot, vocab):
    T = seq_total

    # ---- fused BertEmbeddings: one-hot gather (MXU) + pos + token-type-0 ----
    ids = ids_ref[0]                                            # (T, 1) int32
    voc_iota = jax.lax.broadcasted_iota(jnp.int32, (T, vocab), 1)
    onehot = (ids == voc_iota).astype(jnp.float32)              # (T, V)
    x = jnp.dot(onehot, wemb_ref[...], preferred_element_type=jnp.float32)
    pos = pemb_ref[...]
    x = x + pos[0:T, :]                                         # positions 0..T-1
    em = emisc_ref[...]                                         # (3, H)
    x = x + em[0:1, :]                                          # token_type_ids == 0
    h = _layernorm(x, em[1:2, :], em[2:3, :])                   # embeddings LayerNorm

    kb = kb_ref[0]                                              # (1, T) additive key bias

    for l in range(num_layers):                                 # unrolled at trace time
        vh = vech_ref[l]          # (8, H) stacked per-layer H-wide vectors
        va = veca_ref[l]          # (2, A) adapter down-proj biases

        # ---- fused, head-slot-padded Q/K/V projection (scale folded into Q) -
        qkv = jnp.dot(h, qkvw_ref[l],
                      preferred_element_type=jnp.float32) + qkvb_ref[l]

        # ---- per-head attention; output projection folded into the loop -----
        ao = None
        for hd in range(num_heads):
            base = 3 * hd * head_slot
            q = qkv[:, base:base + head_slot]                    # 128-lane slots:
            k = qkv[:, base + head_slot:base + 2 * head_slot]    # padded lanes are 0
            v = qkv[:, base + 2 * head_slot:base + 3 * head_slot]
            s = jax.lax.dot_general(q, k, (((1,), (1,)), ((), ())),
                                    preferred_element_type=jnp.float32)
            s = s + kb
            m = jnp.max(s, axis=-1, keepdims=True)
            p = jnp.exp(s - m)
            p = p * pl.reciprocal(jnp.sum(p, axis=-1, keepdims=True), approx=False)
            ctx = jnp.dot(p, v, preferred_element_type=jnp.float32)   # (T, SLOT)
            part = jnp.dot(ctx, wo_ref[l * num_heads + hd],
                           preferred_element_type=jnp.float32)        # (T, H)
            ao = part if ao is None else ao + part
        ao = ao + vh[0:1, :]                                     # attn output bias

        # ---- attention.output = AdapterBertOutput(BertSelfOutput, adapter) --
        d1 = _gelu(jnp.dot(ao, addw_ref[2 * l + 0],
                           preferred_element_type=jnp.float32) + va[0:1, :])
        u1 = jnp.dot(d1, aduw_ref[2 * l + 0],
                     preferred_element_type=jnp.float32) + vh[1:2, :]
        attn_out = _layernorm(u1 + ao + h, vh[2:3, :], vh[3:4, :])

        # ---- BertIntermediate: dense + GELU ---------------------------------
        inter = _gelu(jnp.dot(attn_out, wi_ref[l],
                              preferred_element_type=jnp.float32) + ib_ref[l])

        # ---- layer.output = AdapterBertOutput(BertOutput, adapter) ----------
        oo = jnp.dot(inter, wout_ref[l],
                     preferred_element_type=jnp.float32) + vh[4:5, :]
        d0 = _gelu(jnp.dot(oo, addw_ref[2 * l + 1],
                           preferred_element_type=jnp.float32) + va[1:2, :])
        u0 = jnp.dot(d0, aduw_ref[2 * l + 1],
                     preferred_element_type=jnp.float32) + vh[5:6, :]
        h = _layernorm(u0 + oo + attn_out, vh[6:7, :], vh[7:8, :])

    # strip CLS / SEP in-kernel: write only the SEQ inner rows
    o_ref[0, :, :] = h[1:1 + seq_out, :]


# ------------------------------ model glue ------------------------------------
def adapter_bert_forward(params, input_ids, mask=None):
    B, T0 = input_ids.shape
    cls_ids = jnp.full((B, 1), 101, dtype=input_ids.dtype)
    if mask is None:
        sep_ids = jnp.full((B, 1), 102, dtype=input_ids.dtype)
    else:
        sep_ids = jnp.zeros((B, 1), dtype=input_ids.dtype)
    ids = jnp.concatenate([cls_ids, input_ids, sep_ids], axis=-1)
    T = T0 + 2

    if mask is not None:
        idx = mask.sum(-1).astype(jnp.int32) + 1
        mask_f = jnp.concatenate(
            [jnp.ones((B, 1), mask.dtype), mask, jnp.zeros((B, 1), mask.dtype)],
            axis=-1).astype(jnp.float32)
        onehot = jnp.arange(T)[None, :] == idx[:, None]
        ids = jnp.where(onehot, 102, ids)
        mask_f = jnp.where(onehot, 1.0, mask_f)
        key_bias = ((1.0 - mask_f) * -10000.0).reshape(B, 1, T)   # BERT additive mask
    else:
        key_bias = jnp.zeros((B, 1, T), jnp.float32)

    ids3 = ids.astype(jnp.int32)[..., None]                       # (B, T, 1)

    kernel = functools.partial(
        fused_forward_kernel, seq_total=T, seq_out=T0, num_layers=NUM_LAYERS,
        num_heads=NUM_HEADS, head_slot=HEAD_SLOT, vocab=VOCAB)

    def rep(a):           # whole array resident in VMEM, same block every step
        shape, nd = a.shape, a.ndim
        return pl.BlockSpec(shape, lambda b, _nd=nd: (0,) * _nd)

    def per_batch(a):     # one batch per grid step
        shape, nd = a.shape, a.ndim
        return pl.BlockSpec((1,) + tuple(shape[1:]),
                            lambda b, _nd=nd: (b,) + (0,) * (_nd - 1))

    weights = (params['word_emb'], params['pos_emb'], params['emb_misc'],
               params['qkv_w'], params['qkv_b'], params['wo'],
               params['vec_h'], params['vec_a'], params['inter_b'],
               params['ad_dw'], params['ad_uw'], params['wi'], params['wout'])

    out = pl.pallas_call(
        kernel,
        out_shape=jax.ShapeDtypeStruct((B, T0, HIDDEN), jnp.float32),
        grid=(B,),
        in_specs=[per_batch(ids3), per_batch(key_bias)] + [rep(w) for w in weights],
        out_specs=pl.BlockSpec((1, T0, HIDDEN), lambda b: (b, 0, 0)),
        compiler_params=pltpu.CompilerParams(
            dimension_semantics=("parallel",)),           # 2x on v7x's two TCs
    )(ids3, key_bias, *weights)
    return out


# ------------------------------- params ---------------------------------------
def init_params(key):
    keys = iter(jax.random.split(key, 64))

    def nrm(shape, std=0.02):
        return jax.random.normal(next(keys), shape, jnp.float32) * std

    H, I, A, L = HIDDEN, INTERMEDIATE, ADAPTER_SIZE, NUM_LAYERS
    NH, HD, SLOT = NUM_HEADS, HEAD_DIM, HEAD_SLOT
    scale = 1.0 / math.sqrt(HD)

    word_emb = nrm((VOCAB, H))
    pos_emb = nrm((MAX_POS, H))
    tok_emb = nrm((2, H))
    # rows: [token-type-0 embedding, embeddings-LN gamma, embeddings-LN beta]
    emb_misc = jnp.stack(
        [tok_emb[0], jnp.ones((H,), jnp.float32), jnp.zeros((H,), jnp.float32)], 0)

    # Per-head 128-lane slot layout (zero-padded lanes), 1/sqrt(head_dim)
    # folded into the Q slots.  Per head hd:
    #   lanes [3*hd*SLOT        : +HD) -> Q,  [+SLOT : +SLOT+HD) -> K,
    #   lanes [+2*SLOT : +2*SLOT+HD)   -> V
    qkv_w = jnp.zeros((L, H, 3 * NH * SLOT), jnp.float32)
    qkv_b = jnp.zeros((L, 1, 3 * NH * SLOT), jnp.float32)   # biases zero (scale fold is a no-op)
    wo = jnp.zeros((L * NH, SLOT, H), jnp.float32)
    for l in range(L):
        wq = nrm((H, H)) * scale
        wk = nrm((H, H))
        wv = nrm((H, H))
        w_out = nrm((H, H))
        for hd in range(NH):
            c0 = hd * HD
            base = 3 * hd * SLOT
            qkv_w = qkv_w.at[l, :, base:base + HD].set(wq[:, c0:c0 + HD])
            qkv_w = qkv_w.at[l, :, base + SLOT:base + SLOT + HD].set(wk[:, c0:c0 + HD])
            qkv_w = qkv_w.at[l, :, base + 2 * SLOT:base + 2 * SLOT + HD].set(wv[:, c0:c0 + HD])
            wo = wo.at[l * NH + hd, 0:HD, :].set(w_out[c0:c0 + HD, :])

    # Stacked per-layer H-wide vectors, rows =
    # [attn.out bias, attn-adapter up bias, attn LN gamma, attn LN beta,
    #  ffn.out bias,  ffn-adapter  up bias, out  LN gamma, out  LN beta]
    vec_h = jnp.zeros((L, 8, H), jnp.float32)
    vec_h = vec_h.at[:, 2, :].set(1.0)
    vec_h = vec_h.at[:, 6, :].set(1.0)
    vec_a = jnp.zeros((L, 2, A), jnp.float32)     # [attn, ffn] adapter down biases

    params = {
        'word_emb': word_emb, 'pos_emb': pos_emb, 'emb_misc': emb_misc,
        'qkv_w': qkv_w, 'qkv_b': qkv_b, 'wo': wo,
        'vec_h': vec_h, 'vec_a': vec_a,
        'inter_b': jnp.zeros((L, 1, I), jnp.float32),
        'wi': nrm((L, H, I)),
        'wout': nrm((L, I, H)),
        # adapters: index 2*l+0 = attention adapter, 2*l+1 = FFN adapter.
        # Adapter.reset_parameters: normal(std=0.001), zero biases.
        'ad_dw': nrm((2 * L, H, A), 0.001),
        'ad_uw': nrm((2 * L, A, H), 0.001),
    }
    return params


# --------------------------------- main ----------------------------------------
if __name__ == "__main__":
    key = jax.random.PRNGKey(0)
    pkey, dkey = jax.random.split(key)
    params = init_params(pkey)
    input_ids = jax.random.randint(dkey, (BATCH, SEQ), 0, 100, dtype=jnp.int32)

    fwd = jax.jit(lambda p, ids: adapter_bert_forward(p, ids, mask=None))
    out = jax.block_until_ready(fwd(params, input_ids))
    assert out.shape == (BATCH, SEQ, HIDDEN), out.shape
    assert bool(jnp.all(jnp.isfinite(out)))
    # TODO(synk): pretrained-checkpoint loading (BertModel.from_pretrained) is
    # out of scope; weights are synthetic deterministic initializations.
    print("KERNEL_OK")
</pallas_src>

<mosaic_0001>
module attributes {stable_mosaic.version = 11 : i64} {
  func.func @fused_forward_kernel(%arg0: i32, %arg1: memref<1x10x1xi32, #tpu.memory_space<vmem>>, %arg2: memref<1x1x10xf32, #tpu.memory_space<vmem>>, %arg3: memref<130x32xf32, #tpu.memory_space<vmem>>, %arg4: memref<32x32xf32, #tpu.memory_space<vmem>>, %arg5: memref<3x32xf32, #tpu.memory_space<vmem>>, %arg6: memref<2x32x1536xf32, #tpu.memory_space<vmem>>, %arg7: memref<2x1x1536xf32, #tpu.memory_space<vmem>>, %arg8: memref<8x128x32xf32, #tpu.memory_space<vmem>>, %arg9: memref<2x8x32xf32, #tpu.memory_space<vmem>>, %arg10: memref<2x2x8xf32, #tpu.memory_space<vmem>>, %arg11: memref<2x1x64xf32, #tpu.memory_space<vmem>>, %arg12: memref<4x32x8xf32, #tpu.memory_space<vmem>>, %arg13: memref<4x8x32xf32, #tpu.memory_space<vmem>>, %arg14: memref<2x32x64xf32, #tpu.memory_space<vmem>>, %arg15: memref<2x64x32xf32, #tpu.memory_space<vmem>>, %arg16: memref<1x8x32xf32, #tpu.memory_space<vmem>>) attributes {dimension_semantics = [#tpu.dimension_semantics<parallel>], iteration_bounds = array<i64: 2>, scalar_prefetch = 0 : i64, scratch_operands = 0 : i64, tpu.core_type = #tpu.core_type<tc>, window_params = [{transform_indices = @transform_0, window_bounds = array<i64: 1, 10, 1>}, {transform_indices = @transform_1, window_bounds = array<i64: 1, 1, 10>}, {pipeline_mode = #tpu.pipeline_mode<synchronous>, transform_indices = @transform_2, window_bounds = array<i64: 130, 32>}, {pipeline_mode = #tpu.pipeline_mode<synchronous>, transform_indices = @transform_3, window_bounds = array<i64: 32, 32>}, {pipeline_mode = #tpu.pipeline_mode<synchronous>, transform_indices = @transform_4, window_bounds = array<i64: 3, 32>}, {pipeline_mode = #tpu.pipeline_mode<synchronous>, transform_indices = @transform_5, window_bounds = array<i64: 2, 32, 1536>}, {pipeline_mode = #tpu.pipeline_mode<synchronous>, transform_indices = @transform_6, window_bounds = array<i64: 2, 1, 1536>}, {pipeline_mode = #tpu.pipeline_mode<synchronous>, transform_indices = @transform_7, window_bounds = array<i64: 8, 128, 32>}, {pipeline_mode = #tpu.pipeline_mode<synchronous>, transform_indices = @transform_8, window_bounds = array<i64: 2, 8, 32>}, {pipeline_mode = #tpu.pipeline_mode<synchronous>, transform_indices = @transform_9, window_bounds = array<i64: 2, 2, 8>}, {pipeline_mode = #tpu.pipeline_mode<synchronous>, transform_indices = @transform_10, window_bounds = array<i64: 2, 1, 64>}, {pipeline_mode = #tpu.pipeline_mode<synchronous>, transform_indices = @transform_11, window_bounds = array<i64: 4, 32, 8>}, {pipeline_mode = #tpu.pipeline_mode<synchronous>, transform_indices = @transform_12, window_bounds = array<i64: 4, 8, 32>}, {pipeline_mode = #tpu.pipeline_mode<synchronous>, transform_indices = @transform_13, window_bounds = array<i64: 2, 32, 64>}, {pipeline_mode = #tpu.pipeline_mode<synchronous>, transform_indices = @transform_14, window_bounds = array<i64: 2, 64, 32>}, {transform_indices = @transform_15, window_bounds = array<i64: 1, 8, 32>}]} {
    %c0 = arith.constant 0 : index
    %c0_0 = arith.constant 0 : index
    %c0_1 = arith.constant 0 : index
    %0 = vector.load %arg1[%c0, %c0_0, %c0_1] : memref<1x10x1xi32, #tpu.memory_space<vmem>>, vector<1x10x1xi32>
    %1 = vector.shape_cast %0 : vector<1x10x1xi32> to vector<10x1xi32>
    %2 = tpu.iota {dimensions = array<i32: 1>} : vector<10x130xi32>
    %3 = vector.broadcast %1 : vector<10x1xi32> to vector<10x130xi32>
    %4 = arith.cmpi eq, %3, %2 : vector<10x130xi32>
    %5 = arith.extui %4 : vector<10x130xi1> to vector<10x130xi32>
    %6 = arith.sitofp %5 : vector<10x130xi32> to vector<10x130xf32>
    %c0_2 = arith.constant 0 : index
    %c0_3 = arith.constant 0 : index
    %7 = vector.load %arg3[%c0_2, %c0_3] : memref<130x32xf32, #tpu.memory_space<vmem>>, vector<130x32xf32>
    %cst = arith.constant dense<0.000000e+00> : vector<10x32xf32>
    %8 = tpu.matmul %6, %7, %cst {dimension_numbers = #tpu.dot_dimension_numbers<[1], [0], [0], [1], [0, 0, 1, 1], [], []>} : vector<10x130xf32>, vector<130x32xf32>, vector<10x32xf32> -> vector<10x32xf32>
    %c0_4 = arith.constant 0 : index
    %c0_5 = arith.constant 0 : index
    %9 = vector.load %arg4[%c0_4, %c0_5] : memref<32x32xf32, #tpu.memory_space<vmem>>, vector<32x32xf32>
    %10 = vector.extract_strided_slice %9 {offsets = [0, 0], sizes = [10, 32], strides = [1, 1]} : vector<32x32xf32> to vector<10x32xf32>
    %11 = arith.addf %8, %10 : vector<10x32xf32>
    %c0_6 = arith.constant 0 : index
    %c0_7 = arith.constant 0 : index
    %12 = vector.load %arg5[%c0_6, %c0_7] : memref<3x32xf32, #tpu.memory_space<vmem>>, vector<3x32xf32>
    %13 = vector.extract_strided_slice %12 {offsets = [0, 0], sizes = [1, 32], strides = [1, 1]} : vector<3x32xf32> to vector<1x32xf32>
    %14 = vector.broadcast %13 : vector<1x32xf32> to vector<10x32xf32>
    %15 = arith.addf %11, %14 : vector<10x32xf32>
    %16 = vector.extract_strided_slice %12 {offsets = [1, 0], sizes = [1, 32], strides = [1, 1]} : vector<3x32xf32> to vector<1x32xf32>
    %17 = vector.extract_strided_slice %12 {offsets = [2, 0], sizes = [1, 32], strides = [1, 1]} : vector<3x32xf32> to vector<1x32xf32>
    %cst_8 = arith.constant dense<0.000000e+00> : vector<10xf32>
    %18 = vector.multi_reduction <add>, %15, %cst_8 [1] : vector<10x32xf32> to vector<10xf32>
    %19 = vector.shape_cast %18 : vector<10xf32> to vector<10x1xf32>
    %cst_9 = arith.constant 3.200000e+01 : f32
    %20 = vector.broadcast %cst_9 : f32 to vector<10x1xf32>
    %21 = arith.divf %19, %20 : vector<10x1xf32>
    %22 = arith.mulf %15, %15 : vector<10x32xf32>
    %cst_10 = arith.constant dense<0.000000e+00> : vector<10xf32>
    %23 = vector.multi_reduction <add>, %22, %cst_10 [1] : vector<10x32xf32> to vector<10xf32>
    %24 = vector.shape_cast %23 : vector<10xf32> to vector<10x1xf32>
    %cst_11 = arith.constant 3.200000e+01 : f32
    %25 = vector.broadcast %cst_11 : f32 to vector<10x1xf32>
    %26 = arith.divf %24, %25 : vector<10x1xf32>
    %27 = arith.mulf %21, %21 : vector<10x1xf32>
    %28 = arith.subf %26, %27 : vector<10x1xf32>
    %cst_12 = arith.constant 0.000000e+00 : f32
    %29 = vector.broadcast %cst_12 : f32 to vector<10x1xf32>
    %30 = arith.maximumf %28, %29 : vector<10x1xf32>
    %31 = vector.broadcast %21 : vector<10x1xf32> to vector<10x32xf32>
    %32 = arith.subf %15, %31 : vector<10x32xf32>
    %cst_13 = arith.constant 9.99999996E-13 : f32
    %33 = vector.broadcast %cst_13 : f32 to vector<10x1xf32>
    %34 = arith.addf %30, %33 : vector<10x1xf32>
    %35 = math.rsqrt %34 : vector<10x1xf32>
    %36 = vector.broadcast %35 : vector<10x1xf32> to vector<10x32xf32>
    %37 = arith.mulf %32, %36 : vector<10x32xf32>
    %38 = vector.broadcast %16 : vector<1x32xf32> to vector<10x32xf32>
    %39 = arith.mulf %37, %38 : vector<10x32xf32>
    %40 = vector.broadcast %17 : vector<1x32xf32> to vector<10x32xf32>
    %41 = arith.addf %39, %40 : vector<10x32xf32>
    %c0_14 = arith.constant 0 : index
    %c0_15 = arith.constant 0 : index
    %c0_16 = arith.constant 0 : index
    %42 = vector.load %arg2[%c0_14, %c0_15, %c0_16] : memref<1x1x10xf32, #tpu.memory_space<vmem>>, vector<1x1x10xf32>
    %43 = vector.shape_cast %42 : vector<1x1x10xf32> to vector<1x10xf32>
    %c0_17 = arith.constant 0 : index
    %c0_18 = arith.constant 0 : index
    %c0_19 = arith.constant 0 : index
    %44 = vector.load %arg9[%c0_17, %c0_18, %c0_19] : memref<2x8x32xf32, #tpu.memory_space<vmem>>, vector<1x8x32xf32>
    %45 = vector.shape_cast %44 : vector<1x8x32xf32> to vector<8x32xf32>
    %c0_20 = arith.constant 0 : index
    %c0_21 = arith.constant 0 : index
    %c0_22 = arith.constant 0 : index
    %46 = vector.load %arg10[%c0_20, %c0_21, %c0_22] : memref<2x2x8xf32, #tpu.memory_space<vmem>>, vector<1x2x8xf32>
    %47 = vector.shape_cast %46 : vector<1x2x8xf32> to vector<2x8xf32>
    %c0_23 = arith.constant 0 : index
    %c0_24 = arith.constant 0 : index
    %c0_25 = arith.constant 0 : index
    %48 = vector.load %arg6[%c0_23, %c0_24, %c0_25] : memref<2x32x1536xf32, #tpu.memory_space<vmem>>, vector<1x32x1536xf32>
    %49 = vector.shape_cast %48 : vector<1x32x1536xf32> to vector<32x1536xf32>
    %cst_26 = arith.constant dense<0.000000e+00> : vector<10x1536xf32>
    %50 = tpu.matmul %41, %49, %cst_26 {dimension_numbers = #tpu.dot_dimension_numbers<[1], [0], [0], [1], [0, 0, 1, 1], [], []>} : vector<10x32xf32>, vector<32x1536xf32>, vector<10x1536xf32> -> vector<10x1536xf32>
    %c0_27 = arith.constant 0 : index
    %c0_28 = arith.constant 0 : index
    %c0_29 = arith.constant 0 : index
    %51 = vector.load %arg7[%c0_27, %c0_28, %c0_29] : memref<2x1x1536xf32, #tpu.memory_space<vmem>>, vector<1x1x1536xf32>
    %52 = vector.shape_cast %51 : vector<1x1x1536xf32> to vector<1x1536xf32>
    %53 = vector.broadcast %52 : vector<1x1536xf32> to vector<10x1536xf32>
    %54 = arith.addf %50, %53 : vector<10x1536xf32>
    %55 = vector.extract_strided_slice %54 {offsets = [0, 0], sizes = [10, 128], strides = [1, 1]} : vector<10x1536xf32> to vector<10x128xf32>
    %56 = vector.extract_strided_slice %54 {offsets = [0, 128], sizes = [10, 128], strides = [1, 1]} : vector<10x1536xf32> to vector<10x128xf32>
    %57 = vector.extract_strided_slice %54 {offsets = [0, 256], sizes = [10, 128], strides = [1, 1]} : vector<10x1536xf32> to vector<10x128xf32>
    %cst_30 = arith.constant dense<0.000000e+00> : vector<10x10xf32>
    %58 = tpu.matmul %55, %56, %cst_30 {dimension_numbers = #tpu.dot_dimension_numbers<[1], [1], [0], [0], [0, 0, 1, 0], [], []>} : vector<10x128xf32>, vector<10x128xf32>, vector<10x10xf32> -> vector<10x10xf32>
    %59 = vector.broadcast %43 : vector<1x10xf32> to vector<10x10xf32>
    %60 = arith.addf %58, %59 : vector<10x10xf32>
    %cst_31 = arith.constant dense<0xFF800000> : vector<10xf32>
    %61 = vector.multi_reduction <maximumf>, %60, %cst_31 [1] : vector<10x10xf32> to vector<10xf32>
    %62 = vector.shape_cast %61 : vector<10xf32> to vector<10x1xf32>
    %63 = vector.broadcast %62 : vector<10x1xf32> to vector<10x10xf32>
    %64 = arith.subf %60, %63 : vector<10x10xf32>
    %65 = math.exp %64 : vector<10x10xf32>
    %cst_32 = arith.constant dense<0.000000e+00> : vector<10xf32>
    %66 = vector.multi_reduction <add>, %65, %cst_32 [1] : vector<10x10xf32> to vector<10xf32>
    %67 = vector.shape_cast %66 : vector<10xf32> to vector<10x1xf32>
    %68 = tpu.reciprocal %67 : vector<10x1xf32> -> vector<10x1xf32>
    %69 = vector.broadcast %68 : vector<10x1xf32> to vector<10x10xf32>
    %70 = arith.mulf %65, %69 : vector<10x10xf32>
    %cst_33 = arith.constant dense<0.000000e+00> : vector<10x128xf32>
    %71 = tpu.matmul %70, %57, %cst_33 {dimension_numbers = #tpu.dot_dimension_numbers<[1], [0], [0], [1], [0, 0, 1, 1], [], []>} : vector<10x10xf32>, vector<10x128xf32>, vector<10x128xf32> -> vector<10x128xf32>
    %c0_34 = arith.constant 0 : index
    %c0_35 = arith.constant 0 : index
    %c0_36 = arith.constant 0 : index
    %72 = vector.load %arg8[%c0_34, %c0_35, %c0_36] : memref<8x128x32xf32, #tpu.memory_space<vmem>>, vector<1x128x32xf32>
    %73 = vector.shape_cast %72 : vector<1x128x32xf32> to vector<128x32xf32>
    %cst_37 = arith.constant dense<0.000000e+00> : vector<10x32xf32>
    %74 = tpu.matmul %71, %73, %cst_37 {dimension_numbers = #tpu.dot_dimension_numbers<[1], [0], [0], [1], [0, 0, 1, 1], [], []>} : vector<10x128xf32>, vector<128x32xf32>, vector<10x32xf32> -> vector<10x32xf32>
    %75 = vector.extract_strided_slice %54 {offsets = [0, 384], sizes = [10, 128], strides = [1, 1]} : vector<10x1536xf32> to vector<10x128xf32>
    %76 = vector.extract_strided_slice %54 {offsets = [0, 512], sizes = [10, 128], strides = [1, 1]} : vector<10x1536xf32> to vector<10x128xf32>
    %77 = vector.extract_strided_slice %54 {offsets = [0, 640], sizes = [10, 128], strides = [1, 1]} : vector<10x1536xf32> to vector<10x128xf32>
    %cst_38 = arith.constant dense<0.000000e+00> : vector<10x10xf32>
    %78 = tpu.matmul %75, %76, %cst_38 {dimension_numbers = #tpu.dot_dimension_numbers<[1], [1], [0], [0], [0, 0, 1, 0], [], []>} : vector<10x128xf32>, vector<10x128xf32>, vector<10x10xf32> -> vector<10x10xf32>
    %79 = vector.broadcast %43 : vector<1x10xf32> to vector<10x10xf32>
    %80 = arith.addf %78, %79 : vector<10x10xf32>
    %cst_39 = arith.constant dense<0xFF800000> : vector<10xf32>
    %81 = vector.multi_reduction <maximumf>, %80, %cst_39 [1] : vector<10x10xf32> to vector<10xf32>
    %82 = vector.shape_cast %81 : vector<10xf32> to vector<10x1xf32>
    %83 = vector.broadcast %82 : vector<10x1xf32> to vector<10x10xf32>
    %84 = arith.subf %80, %83 : vector<10x10xf32>
    %85 = math.exp %84 : vector<10x10xf32>
    %cst_40 = arith.constant dense<0.000000e+00> : vector<10xf32>
    %86 = vector.multi_reduction <add>, %85, %cst_40 [1] : vector<10x10xf32> to vector<10xf32>
    %87 = vector.shape_cast %86 : vector<10xf32> to vector<10x1xf32>
    %88 = tpu.reciprocal %87 : vector<10x1xf32> -> vector<10x1xf32>
    %89 = vector.broadcast %88 : vector<10x1xf32> to vector<10x10xf32>
    %90 = arith.mulf %85, %89 : vector<10x10xf32>
    %cst_41 = arith.constant dense<0.000000e+00> : vector<10x128xf32>
    %91 = tpu.matmul %90, %77, %cst_41 {dimension_numbers = #tpu.dot_dimension_numbers<[1], [0], [0], [1], [0, 0, 1, 1], [], []>} : vector<10x10xf32>, vector<10x128xf32>, vector<10x128xf32> -> vector<10x128xf32>
    %c1 = arith.constant 1 : index
    %c0_42 = arith.constant 0 : index
    %c0_43 = arith.constant 0 : index
    %92 = vector.load %arg8[%c1, %c0_42, %c0_43] : memref<8x128x32xf32, #tpu.memory_space<vmem>>, vector<1x128x32xf32>
    %93 = vector.shape_cast %92 : vector<1x128x32xf32> to vector<128x32xf32>
    %cst_44 = arith.constant dense<0.000000e+00> : vector<10x32xf32>
    %94 = tpu.matmul %91, %93, %cst_44 {dimension_numbers = #tpu.dot_dimension_numbers<[1], [0], [0], [1], [0, 0, 1, 1], [], []>} : vector<10x128xf32>, vector<128x32xf32>, vector<10x32xf32> -> vector<10x32xf32>
    %95 = arith.addf %74, %94 : vector<10x32xf32>
    %96 = vector.extract_strided_slice %54 {offsets = [0, 768], sizes = [10, 128], strides = [1, 1]} : vector<10x1536xf32> to vector<10x128xf32>
    %97 = vector.extract_strided_slice %54 {offsets = [0, 896], sizes = [10, 128], strides = [1, 1]} : vector<10x1536xf32> to vector<10x128xf32>
    %98 = vector.extract_strided_slice %54 {offsets = [0, 1024], sizes = [10, 128], strides = [1, 1]} : vector<10x1536xf32> to vector<10x128xf32>
    %cst_45 = arith.constant dense<0.000000e+00> : vector<10x10xf32>
    %99 = tpu.matmul %96, %97, %cst_45 {dimension_numbers = #tpu.dot_dimension_numbers<[1], [1], [0], [0], [0, 0, 1, 0], [], []>} : vector<10x128xf32>, vector<10x128xf32>, vector<10x10xf32> -> vector<10x10xf32>
    %100 = vector.broadcast %43 : vector<1x10xf32> to vector<10x10xf32>
    %101 = arith.addf %99, %100 : vector<10x10xf32>
    %cst_46 = arith.constant dense<0xFF800000> : vector<10xf32>
    %102 = vector.multi_reduction <maximumf>, %101, %cst_46 [1] : vector<10x10xf32> to vector<10xf32>
    %103 = vector.shape_cast %102 : vector<10xf32> to vector<10x1xf32>
    %104 = vector.broadcast %103 : vector<10x1xf32> to vector<10x10xf32>
    %105 = arith.subf %101, %104 : vector<10x10xf32>
    %106 = math.exp %105 : vector<10x10xf32>
    %cst_47 = arith.constant dense<0.000000e+00> : vector<10xf32>
    %107 = vector.multi_reduction <add>, %106, %cst_47 [1] : vector<10x10xf32> to vector<10xf32>
    %108 = vector.shape_cast %107 : vector<10xf32> to vector<10x1xf32>
    %109 = tpu.reciprocal %108 : vector<10x1xf32> -> vector<10x1xf32>
    %110 = vector.broadcast %109 : vector<10x1xf32> to vector<10x10xf32>
    %111 = arith.mulf %106, %110 : vector<10x10xf32>
    %cst_48 = arith.constant dense<0.000000e+00> : vector<10x128xf32>
    %112 = tpu.matmul %111, %98, %cst_48 {dimension_numbers = #tpu.dot_dimension_numbers<[1], [0], [0], [1], [0, 0, 1, 1], [], []>} : vector<10x10xf32>, vector<10x128xf32>, vector<10x128xf32> -> vector<10x128xf32>
    %c2 = arith.constant 2 : index
    %c0_49 = arith.constant 0 : index
    %c0_50 = arith.constant 0 : index
    %113 = vector.load %arg8[%c2, %c0_49, %c0_50] : memref<8x128x32xf32, #tpu.memory_space<vmem>>, vector<1x128x32xf32>
    %114 = vector.shape_cast %113 : vector<1x128x32xf32> to vector<128x32xf32>
    %cst_51 = arith.constant dense<0.000000e+00> : vector<10x32xf32>
    %115 = tpu.matmul %112, %114, %cst_51 {dimension_numbers = #tpu.dot_dimension_numbers<[1], [0], [0], [1], [0, 0, 1, 1], [], []>} : vector<10x128xf32>, vector<128x32xf32>, vector<10x32xf32> -> vector<10x32xf32>
    %116 = arith.addf %95, %115 : vector<10x32xf32>
    %117 = vector.extract_strided_slice %54 {offsets = [0, 1152], sizes = [10, 128], strides = [1, 1]} : vector<10x1536xf32> to vector<10x128xf32>
    %118 = vector.extract_strided_slice %54 {offsets = [0, 1280], sizes = [10, 128], strides = [1, 1]} : vector<10x1536xf32> to vector<10x128xf32>
    %119 = vector.extract_strided_slice %54 {offsets = [0, 1408], sizes = [10, 128], strides = [1, 1]} : vector<10x1536xf32> to vector<10x128xf32>
    %cst_52 = arith.constant dense<0.000000e+00> : vector<10x10xf32>
    %120 = tpu.matmul %117, %118, %cst_52 {dimension_numbers = #tpu.dot_dimension_numbers<[1], [1], [0], [0], [0, 0, 1, 0], [], []>} : vector<10x128xf32>, vector<10x128xf32>, vector<10x10xf32> -> vector<10x10xf32>
    %121 = vector.broadcast %43 : vector<1x10xf32> to vector<10x10xf32>
    %122 = arith.addf %120, %121 : vector<10x10xf32>
    %cst_53 = arith.constant dense<0xFF800000> : vector<10xf32>
    %123 = vector.multi_reduction <maximumf>, %122, %cst_53 [1] : vector<10x10xf32> to vector<10xf32>
    %124 = vector.shape_cast %123 : vector<10xf32> to vector<10x1xf32>
    %125 = vector.broadcast %124 : vector<10x1xf32> to vector<10x10xf32>
    %126 = arith.subf %122, %125 : vector<10x10xf32>
    %127 = math.exp %126 : vector<10x10xf32>
    %cst_54 = arith.constant dense<0.000000e+00> : vector<10xf32>
    %128 = vector.multi_reduction <add>, %127, %cst_54 [1] : vector<10x10xf32> to vector<10xf32>
    %129 = vector.shape_cast %128 : vector<10xf32> to vector<10x1xf32>
    %130 = tpu.reciprocal %129 : vector<10x1xf32> -> vector<10x1xf32>
    %131 = vector.broadcast %130 : vector<10x1xf32> to vector<10x10xf32>
    %132 = arith.mulf %127, %131 : vector<10x10xf32>
    %cst_55 = arith.constant dense<0.000000e+00> : vector<10x128xf32>
    %133 = tpu.matmul %132, %119, %cst_55 {dimension_numbers = #tpu.dot_dimension_numbers<[1], [0], [0], [1], [0, 0, 1, 1], [], []>} : vector<10x10xf32>, vector<10x128xf32>, vector<10x128xf32> -> vector<10x128xf32>
    %c3 = arith.constant 3 : index
    %c0_56 = arith.constant 0 : index
    %c0_57 = arith.constant 0 : index
    %134 = vector.load %arg8[%c3, %c0_56, %c0_57] : memref<8x128x32xf32, #tpu.memory_space<vmem>>, vector<1x128x32xf32>
    %135 = vector.shape_cast %134 : vector<1x128x32xf32> to vector<128x32xf32>
    %cst_58 = arith.constant dense<0.000000e+00> : vector<10x32xf32>
    %136 = tpu.matmul %133, %135, %cst_58 {dimension_numbers = #tpu.dot_dimension_numbers<[1], [0], [0], [1], [0, 0, 1, 1], [], []>} : vector<10x128xf32>, vector<128x32xf32>, vector<10x32xf32> -> vector<10x32xf32>
    %137 = arith.addf %116, %136 : vector<10x32xf32>
    %138 = vector.extract_strided_slice %45 {offsets = [0, 0], sizes = [1, 32], strides = [1, 1]} : vector<8x32xf32> to vector<1x32xf32>
    %139 = vector.broadcast %138 : vector<1x32xf32> to vector<10x32xf32>
    %140 = arith.addf %137, %139 : vector<10x32xf32>
    %c0_59 = arith.constant 0 : index
    %c0_60 = arith.constant 0 : index
    %c0_61 = arith.constant 0 : index
    %141 = vector.load %arg12[%c0_59, %c0_60, %c0_61] : memref<4x32x8xf32, #tpu.memory_space<vmem>>, vector<1x32x8xf32>
    %142 = vector.shape_cast %141 : vector<1x32x8xf32> to vector<32x8xf32>
    %cst_62 = arith.constant dense<0.000000e+00> : vector<10x8xf32>
    %143 = tpu.matmul %140, %142, %cst_62 {dimension_numbers = #tpu.dot_dimension_numbers<[1], [0], [0], [1], [0, 0, 1, 1], [], []>} : vector<10x32xf32>, vector<32x8xf32>, vector<10x8xf32> -> vector<10x8xf32>
    %144 = vector.extract_strided_slice %47 {offsets = [0, 0], sizes = [1, 8], strides = [1, 1]} : vector<2x8xf32> to vector<1x8xf32>
    %145 = vector.broadcast %144 : vector<1x8xf32> to vector<10x8xf32>
    %146 = arith.addf %143, %145 : vector<10x8xf32>
    %cst_63 = arith.constant 5.000000e-01 : f32
    %147 = vector.broadcast %cst_63 : f32 to vector<10x8xf32>
    %148 = arith.mulf %147, %146 : vector<10x8xf32>
    %cst_64 = arith.constant 0.707106769 : f32
    %149 = vector.broadcast %cst_64 : f32 to vector<10x8xf32>
    %150 = arith.mulf %146, %149 : vector<10x8xf32>
    %cst_65 = arith.constant 0.000000e+00 : f32
    %151 = vector.broadcast %cst_65 : f32 to vector<10x8xf32>
    %152 = arith.cmpf oge, %150, %151 : vector<10x8xf32>
    %cst_66 = arith.constant 1.000000e+00 : f32
    %cst_67 = arith.constant -1.000000e+00 : f32
    %153 = vector.broadcast %cst_66 : f32 to vector<10x8xf32>
    %154 = vector.broadcast %cst_67 : f32 to vector<10x8xf32>
    %155 = arith.select %152, %153, %154 : vector<10x8xi1>, vector<10x8xf32>
    %156 = math.absf %150 : vector<10x8xf32>
    %cst_68 = arith.constant 0.327591091 : f32
    %157 = vector.broadcast %cst_68 : f32 to vector<10x8xf32>
    %158 = arith.mulf %157, %156 : vector<10x8xf32>
    %cst_69 = arith.constant 1.000000e+00 : f32
    %159 = vector.broadcast %cst_69 : f32 to vector<10x8xf32>
    %160 = arith.addf %159, %158 : vector<10x8xf32>
    %161 = tpu.reciprocal %160 : vector<10x8xf32> -> vector<10x8xf32>
    %cst_70 = arith.constant 1.06140542 : f32
    %162 = vector.broadcast %cst_70 : f32 to vector<10x8xf32>
    %163 = arith.mulf %162, %161 : vector<10x8xf32>
    %cst_71 = arith.constant -1.45315206 : f32
    %164 = vector.broadcast %cst_71 : f32 to vector<10x8xf32>
    %165 = arith.addf %163, %164 : vector<10x8xf32>
    %166 = arith.mulf %165, %161 : vector<10x8xf32>
    %cst_72 = arith.constant 1.42141378 : f32
    %167 = vector.broadcast %cst_72 : f32 to vector<10x8xf32>
    %168 = arith.addf %166, %167 : vector<10x8xf32>
    %169 = arith.mulf %168, %161 : vector<10x8xf32>
    %cst_73 = arith.constant -0.284496725 : f32
    %170 = vector.broadcast %cst_73 : f32 to vector<10x8xf32>
    %171 = arith.addf %169, %170 : vector<10x8xf32>
    %172 = arith.mulf %171, %161 : vector<10x8xf32>
    %cst_74 = arith.constant 0.254829586 : f32
    %173 = vector.broadcast %cst_74 : f32 to vector<10x8xf32>
    %174 = arith.addf %172, %173 : vector<10x8xf32>
    %175 = arith.mulf %174, %161 : vector<10x8xf32>
    %cst_75 = arith.constant 0.000000e+00 : f32
    %176 = vector.broadcast %cst_75 : f32 to vector<10x8xf32>
    %177 = arith.subf %176, %156 : vector<10x8xf32>
    %178 = arith.mulf %177, %156 : vector<10x8xf32>
    %179 = math.exp %178 : vector<10x8xf32>
    %180 = arith.mulf %175, %179 : vector<10x8xf32>
    %cst_76 = arith.constant 1.000000e+00 : f32
    %181 = vector.broadcast %cst_76 : f32 to vector<10x8xf32>
    %182 = arith.subf %181, %180 : vector<10x8xf32>
    %183 = arith.mulf %155, %182 : vector<10x8xf32>
    %cst_77 = arith.constant 1.000000e+00 : f32
    %184 = vector.broadcast %cst_77 : f32 to vector<10x8xf32>
    %185 = arith.addf %184, %183 : vector<10x8xf32>
    %186 = arith.mulf %148, %185 : vector<10x8xf32>
    %c0_78 = arith.constant 0 : index
    %c0_79 = arith.constant 0 : index
    %c0_80 = arith.constant 0 : index
    %187 = vector.load %arg13[%c0_78, %c0_79, %c0_80] : memref<4x8x32xf32, #tpu.memory_space<vmem>>, vector<1x8x32xf32>
    %188 = vector.shape_cast %187 : vector<1x8x32xf32> to vector<8x32xf32>
    %cst_81 = arith.constant dense<0.000000e+00> : vector<10x32xf32>
    %189 = tpu.matmul %186, %188, %cst_81 {dimension_numbers = #tpu.dot_dimension_numbers<[1], [0], [0], [1], [0, 0, 1, 1], [], []>} : vector<10x8xf32>, vector<8x32xf32>, vector<10x32xf32> -> vector<10x32xf32>
    %190 = vector.extract_strided_slice %45 {offsets = [1, 0], sizes = [1, 32], strides = [1, 1]} : vector<8x32xf32> to vector<1x32xf32>
    %191 = vector.broadcast %190 : vector<1x32xf32> to vector<10x32xf32>
    %192 = arith.addf %189, %191 : vector<10x32xf32>
    %193 = arith.addf %192, %140 : vector<10x32xf32>
    %194 = arith.addf %193, %41 : vector<10x32xf32>
    %195 = vector.extract_strided_slice %45 {offsets = [2, 0], sizes = [1, 32], strides = [1, 1]} : vector<8x32xf32> to vector<1x32xf32>
    %196 = vector.extract_strided_slice %45 {offsets = [3, 0], sizes = [1, 32], strides = [1, 1]} : vector<8x32xf32> to vector<1x32xf32>
    %cst_82 = arith.constant dense<0.000000e+00> : vector<10xf32>
    %197 = vector.multi_reduction <add>, %194, %cst_82 [1] : vector<10x32xf32> to vector<10xf32>
    %198 = vector.shape_cast %197 : vector<10xf32> to vector<10x1xf32>
    %cst_83 = arith.constant 3.200000e+01 : f32
    %199 = vector.broadcast %cst_83 : f32 to vector<10x1xf32>
    %200 = arith.divf %198, %199 : vector<10x1xf32>
    %201 = arith.mulf %194, %194 : vector<10x32xf32>
    %cst_84 = arith.constant dense<0.000000e+00> : vector<10xf32>
    %202 = vector.multi_reduction <add>, %201, %cst_84 [1] : vector<10x32xf32> to vector<10xf32>
    %203 = vector.shape_cast %202 : vector<10xf32> to vector<10x1xf32>
    %cst_85 = arith.constant 3.200000e+01 : f32
    %204 = vector.broadcast %cst_85 : f32 to vector<10x1xf32>
    %205 = arith.divf %203, %204 : vector<10x1xf32>
    %206 = arith.mulf %200, %200 : vector<10x1xf32>
    %207 = arith.subf %205, %206 : vector<10x1xf32>
    %cst_86 = arith.constant 0.000000e+00 : f32
    %208 = vector.broadcast %cst_86 : f32 to vector<10x1xf32>
    %209 = arith.maximumf %207, %208 : vector<10x1xf32>
    %210 = vector.broadcast %200 : vector<10x1xf32> to vector<10x32xf32>
    %211 = arith.subf %194, %210 : vector<10x32xf32>
    %cst_87 = arith.constant 9.99999996E-13 : f32
    %212 = vector.broadcast %cst_87 : f32 to vector<10x1xf32>
    %213 = arith.addf %209, %212 : vector<10x1xf32>
    %214 = math.rsqrt %213 : vector<10x1xf32>
    %215 = vector.broadcast %214 : vector<10x1xf32> to vector<10x32xf32>
    %216 = arith.mulf %211, %215 : vector<10x32xf32>
    %217 = vector.broadcast %195 : vector<1x32xf32> to vector<10x32xf32>
    %218 = arith.mulf %216, %217 : vector<10x32xf32>
    %219 = vector.broadcast %196 : vector<1x32xf32> to vector<10x32xf32>
    %220 = arith.addf %218, %219 : vector<10x32xf32>
    %c0_88 = arith.constant 0 : index
    %c0_89 = arith.constant 0 : index
    %c0_90 = arith.constant 0 : index
    %221 = vector.load %arg14[%c0_88, %c0_89, %c0_90] : memref<2x32x64xf32, #tpu.memory_space<vmem>>, vector<1x32x64xf32>
    %222 = vector.shape_cast %221 : vector<1x32x64xf32> to vector<32x64xf32>
    %cst_91 = arith.constant dense<0.000000e+00> : vector<10x64xf32>
    %223 = tpu.matmul %220, %222, %cst_91 {dimension_numbers = #tpu.dot_dimension_numbers<[1], [0], [0], [1], [0, 0, 1, 1], [], []>} : vector<10x32xf32>, vector<32x64xf32>, vector<10x64xf32> -> vector<10x64xf32>
    %c0_92 = arith.constant 0 : index
    %c0_93 = arith.constant 0 : index
    %c0_94 = arith.constant 0 : index
    %224 = vector.load %arg11[%c0_92, %c0_93, %c0_94] : memref<2x1x64xf32, #tpu.memory_space<vmem>>, vector<1x1x64xf32>
    %225 = vector.shape_cast %224 : vector<1x1x64xf32> to vector<1x64xf32>
    %226 = vector.broadcast %225 : vector<1x64xf32> to vector<10x64xf32>
    %227 = arith.addf %223, %226 : vector<10x64xf32>
    %cst_95 = arith.constant 5.000000e-01 : f32
    %228 = vector.broadcast %cst_95 : f32 to vector<10x64xf32>
    %229 = arith.mulf %228, %227 : vector<10x64xf32>
    %cst_96 = arith.constant 0.707106769 : f32
    %230 = vector.broadcast %cst_96 : f32 to vector<10x64xf32>
    %231 = arith.mulf %227, %230 : vector<10x64xf32>
    %cst_97 = arith.constant 0.000000e+00 : f32
    %232 = vector.broadcast %cst_97 : f32 to vector<10x64xf32>
    %233 = arith.cmpf oge, %231, %232 : vector<10x64xf32>
    %cst_98 = arith.constant 1.000000e+00 : f32
    %cst_99 = arith.constant -1.000000e+00 : f32
    %234 = vector.broadcast %cst_98 : f32 to vector<10x64xf32>
    %235 = vector.broadcast %cst_99 : f32 to vector<10x64xf32>
    %236 = arith.select %233, %234, %235 : vector<10x64xi1>, vector<10x64xf32>
    %237 = math.absf %231 : vector<10x64xf32>
    %cst_100 = arith.constant 0.327591091 : f32
    %238 = vector.broadcast %cst_100 : f32 to vector<10x64xf32>
    %239 = arith.mulf %238, %237 : vector<10x64xf32>
    %cst_101 = arith.constant 1.000000e+00 : f32
    %240 = vector.broadcast %cst_101 : f32 to vector<10x64xf32>
    %241 = arith.addf %240, %239 : vector<10x64xf32>
    %242 = tpu.reciprocal %241 : vector<10x64xf32> -> vector<10x64xf32>
    %cst_102 = arith.constant 1.06140542 : f32
    %243 = vector.broadcast %cst_102 : f32 to vector<10x64xf32>
    %244 = arith.mulf %243, %242 : vector<10x64xf32>
    %cst_103 = arith.constant -1.45315206 : f32
    %245 = vector.broadcast %cst_103 : f32 to vector<10x64xf32>
    %246 = arith.addf %244, %245 : vector<10x64xf32>
    %247 = arith.mulf %246, %242 : vector<10x64xf32>
    %cst_104 = arith.constant 1.42141378 : f32
    %248 = vector.broadcast %cst_104 : f32 to vector<10x64xf32>
    %249 = arith.addf %247, %248 : vector<10x64xf32>
    %250 = arith.mulf %249, %242 : vector<10x64xf32>
    %cst_105 = arith.constant -0.284496725 : f32
    %251 = vector.broadcast %cst_105 : f32 to vector<10x64xf32>
    %252 = arith.addf %250, %251 : vector<10x64xf32>
    %253 = arith.mulf %252, %242 : vector<10x64xf32>
    %cst_106 = arith.constant 0.254829586 : f32
    %254 = vector.broadcast %cst_106 : f32 to vector<10x64xf32>
    %255 = arith.addf %253, %254 : vector<10x64xf32>
    %256 = arith.mulf %255, %242 : vector<10x64xf32>
    %cst_107 = arith.constant 0.000000e+00 : f32
    %257 = vector.broadcast %cst_107 : f32 to vector<10x64xf32>
    %258 = arith.subf %257, %237 : vector<10x64xf32>
    %259 = arith.mulf %258, %237 : vector<10x64xf32>
    %260 = math.exp %259 : vector<10x64xf32>
    %261 = arith.mulf %256, %260 : vector<10x64xf32>
    %cst_108 = arith.constant 1.000000e+00 : f32
    %262 = vector.broadcast %cst_108 : f32 to vector<10x64xf32>
    %263 = arith.subf %262, %261 : vector<10x64xf32>
    %264 = arith.mulf %236, %263 : vector<10x64xf32>
    %cst_109 = arith.constant 1.000000e+00 : f32
    %265 = vector.broadcast %cst_109 : f32 to vector<10x64xf32>
    %266 = arith.addf %265, %264 : vector<10x64xf32>
    %267 = arith.mulf %229, %266 : vector<10x64xf32>
    %c0_110 = arith.constant 0 : index
    %c0_111 = arith.constant 0 : index
    %c0_112 = arith.constant 0 : index
    %268 = vector.load %arg15[%c0_110, %c0_111, %c0_112] : memref<2x64x32xf32, #tpu.memory_space<vmem>>, vector<1x64x32xf32>
    %269 = vector.shape_cast %268 : vector<1x64x32xf32> to vector<64x32xf32>
    %cst_113 = arith.constant dense<0.000000e+00> : vector<10x32xf32>
    %270 = tpu.matmul %267, %269, %cst_113 {dimension_numbers = #tpu.dot_dimension_numbers<[1], [0], [0], [1], [0, 0, 1, 1], [], []>} : vector<10x64xf32>, vector<64x32xf32>, vector<10x32xf32> -> vector<10x32xf32>
    %271 = vector.extract_strided_slice %45 {offsets = [4, 0], sizes = [1, 32], strides = [1, 1]} : vector<8x32xf32> to vector<1x32xf32>
    %272 = vector.broadcast %271 : vector<1x32xf32> to vector<10x32xf32>
    %273 = arith.addf %270, %272 : vector<10x32xf32>
    %c1_114 = arith.constant 1 : index
    %c0_115 = arith.constant 0 : index
    %c0_116 = arith.constant 0 : index
    %274 = vector.load %arg12[%c1_114, %c0_115, %c0_116] : memref<4x32x8xf32, #tpu.memory_space<vmem>>, vector<1x32x8xf32>
    %275 = vector.shape_cast %274 : vector<1x32x8xf32> to vector<32x8xf32>
    %cst_117 = arith.constant dense<0.000000e+00> : vector<10x8xf32>
    %276 = tpu.matmul %273, %275, %cst_117 {dimension_numbers = #tpu.dot_dimension_numbers<[1], [0], [0], [1], [0, 0, 1, 1], [], []>} : vector<10x32xf32>, vector<32x8xf32>, vector<10x8xf32> -> vector<10x8xf32>
    %277 = vector.extract_strided_slice %47 {offsets = [1, 0], sizes = [1, 8], strides = [1, 1]} : vector<2x8xf32> to vector<1x8xf32>
    %278 = vector.broadcast %277 : vector<1x8xf32> to vector<10x8xf32>
    %279 = arith.addf %276, %278 : vector<10x8xf32>
    %cst_118 = arith.constant 5.000000e-01 : f32
    %280 = vector.broadcast %cst_118 : f32 to vector<10x8xf32>
    %281 = arith.mulf %280, %279 : vector<10x8xf32>
    %cst_119 = arith.constant 0.707106769 : f32
    %282 = vector.broadcast %cst_119 : f32 to vector<10x8xf32>
    %283 = arith.mulf %279, %282 : vector<10x8xf32>
    %cst_120 = arith.constant 0.000000e+00 : f32
    %284 = vector.broadcast %cst_120 : f32 to vector<10x8xf32>
    %285 = arith.cmpf oge, %283, %284 : vector<10x8xf32>
    %cst_121 = arith.constant 1.000000e+00 : f32
    %cst_122 = arith.constant -1.000000e+00 : f32
    %286 = vector.broadcast %cst_121 : f32 to vector<10x8xf32>
    %287 = vector.broadcast %cst_122 : f32 to vector<10x8xf32>
    %288 = arith.select %285, %286, %287 : vector<10x8xi1>, vector<10x8xf32>
    %289 = math.absf %283 : vector<10x8xf32>
    %cst_123 = arith.constant 0.327591091 : f32
    %290 = vector.broadcast %cst_123 : f32 to vector<10x8xf32>
    %291 = arith.mulf %290, %289 : vector<10x8xf32>
    %cst_124 = arith.constant 1.000000e+00 : f32
    %292 = vector.broadcast %cst_124 : f32 to vector<10x8xf32>
    %293 = arith.addf %292, %291 : vector<10x8xf32>
    %294 = tpu.reciprocal %293 : vector<10x8xf32> -> vector<10x8xf32>
    %cst_125 = arith.constant 1.06140542 : f32
    %295 = vector.broadcast %cst_125 : f32 to vector<10x8xf32>
    %296 = arith.mulf %295, %294 : vector<10x8xf32>
    %cst_126 = arith.constant -1.45315206 : f32
    %297 = vector.broadcast %cst_126 : f32 to vector<10x8xf32>
    %298 = arith.addf %296, %297 : vector<10x8xf32>
    %299 = arith.mulf %298, %294 : vector<10x8xf32>
    %cst_127 = arith.constant 1.42141378 : f32
    %300 = vector.broadcast %cst_127 : f32 to vector<10x8xf32>
    %301 = arith.addf %299, %300 : vector<10x8xf32>
    %302 = arith.mulf %301, %294 : vector<10x8xf32>
    %cst_128 = arith.constant -0.284496725 : f32
    %303 = vector.broadcast %cst_128 : f32 to vector<10x8xf32>
    %304 = arith.addf %302, %303 : vector<10x8xf32>
    %305 = arith.mulf %304, %294 : vector<10x8xf32>
    %cst_129 = arith.constant 0.254829586 : f32
    %306 = vector.broadcast %cst_129 : f32 to vector<10x8xf32>
    %307 = arith.addf %305, %306 : vector<10x8xf32>
    %308 = arith.mulf %307, %294 : vector<10x8xf32>
    %cst_130 = arith.constant 0.000000e+00 : f32
    %309 = vector.broadcast %cst_130 : f32 to vector<10x8xf32>
    %310 = arith.subf %309, %289 : vector<10x8xf32>
    %311 = arith.mulf %310, %289 : vector<10x8xf32>
    %312 = math.exp %311 : vector<10x8xf32>
    %313 = arith.mulf %308, %312 : vector<10x8xf32>
    %cst_131 = arith.constant 1.000000e+00 : f32
    %314 = vector.broadcast %cst_131 : f32 to vector<10x8xf32>
    %315 = arith.subf %314, %313 : vector<10x8xf32>
    %316 = arith.mulf %288, %315 : vector<10x8xf32>
    %cst_132 = arith.constant 1.000000e+00 : f32
    %317 = vector.broadcast %cst_132 : f32 to vector<10x8xf32>
    %318 = arith.addf %317, %316 : vector<10x8xf32>
    %319 = arith.mulf %281, %318 : vector<10x8xf32>
    %c1_133 = arith.constant 1 : index
    %c0_134 = arith.constant 0 : index
    %c0_135 = arith.constant 0 : index
    %320 = vector.load %arg13[%c1_133, %c0_134, %c0_135] : memref<4x8x32xf32, #tpu.memory_space<vmem>>, vector<1x8x32xf32>
    %321 = vector.shape_cast %320 : vector<1x8x32xf32> to vector<8x32xf32>
    %cst_136 = arith.constant dense<0.000000e+00> : vector<10x32xf32>
    %322 = tpu.matmul %319, %321, %cst_136 {dimension_numbers = #tpu.dot_dimension_numbers<[1], [0], [0], [1], [0, 0, 1, 1], [], []>} : vector<10x8xf32>, vector<8x32xf32>, vector<10x32xf32> -> vector<10x32xf32>
    %323 = vector.extract_strided_slice %45 {offsets = [5, 0], sizes = [1, 32], strides = [1, 1]} : vector<8x32xf32> to vector<1x32xf32>
    %324 = vector.broadcast %323 : vector<1x32xf32> to vector<10x32xf32>
    %325 = arith.addf %322, %324 : vector<10x32xf32>
    %326 = arith.addf %325, %273 : vector<10x32xf32>
    %327 = arith.addf %326, %220 : vector<10x32xf32>
    %328 = vector.extract_strided_slice %45 {offsets = [6, 0], sizes = [1, 32], strides = [1, 1]} : vector<8x32xf32> to vector<1x32xf32>
    %329 = vector.extract_strided_slice %45 {offsets = [7, 0], sizes = [1, 32], strides = [1, 1]} : vector<8x32xf32> to vector<1x32xf32>
    %cst_137 = arith.constant dense<0.000000e+00> : vector<10xf32>
    %330 = vector.multi_reduction <add>, %327, %cst_137 [1] : vector<10x32xf32> to vector<10xf32>
    %331 = vector.shape_cast %330 : vector<10xf32> to vector<10x1xf32>
    %cst_138 = arith.constant 3.200000e+01 : f32
    %332 = vector.broadcast %cst_138 : f32 to vector<10x1xf32>
    %333 = arith.divf %331, %332 : vector<10x1xf32>
    %334 = arith.mulf %327, %327 : vector<10x32xf32>
    %cst_139 = arith.constant dense<0.000000e+00> : vector<10xf32>
    %335 = vector.multi_reduction <add>, %334, %cst_139 [1] : vector<10x32xf32> to vector<10xf32>
    %336 = vector.shape_cast %335 : vector<10xf32> to vector<10x1xf32>
    %cst_140 = arith.constant 3.200000e+01 : f32
    %337 = vector.broadcast %cst_140 : f32 to vector<10x1xf32>
    %338 = arith.divf %336, %337 : vector<10x1xf32>
    %339 = arith.mulf %333, %333 : vector<10x1xf32>
    %340 = arith.subf %338, %339 : vector<10x1xf32>
    %cst_141 = arith.constant 0.000000e+00 : f32
    %341 = vector.broadcast %cst_141 : f32 to vector<10x1xf32>
    %342 = arith.maximumf %340, %341 : vector<10x1xf32>
    %343 = vector.broadcast %333 : vector<10x1xf32> to vector<10x32xf32>
    %344 = arith.subf %327, %343 : vector<10x32xf32>
    %cst_142 = arith.constant 9.99999996E-13 : f32
    %345 = vector.broadcast %cst_142 : f32 to vector<10x1xf32>
    %346 = arith.addf %342, %345 : vector<10x1xf32>
    %347 = math.rsqrt %346 : vector<10x1xf32>
    %348 = vector.broadcast %347 : vector<10x1xf32> to vector<10x32xf32>
    %349 = arith.mulf %344, %348 : vector<10x32xf32>
    %350 = vector.broadcast %328 : vector<1x32xf32> to vector<10x32xf32>
    %351 = arith.mulf %349, %350 : vector<10x32xf32>
    %352 = vector.broadcast %329 : vector<1x32xf32> to vector<10x32xf32>
    %353 = arith.addf %351, %352 : vector<10x32xf32>
    %c1_143 = arith.constant 1 : index
    %c0_144 = arith.constant 0 : index
    %c0_145 = arith.constant 0 : index
    %354 = vector.load %arg9[%c1_143, %c0_144, %c0_145] : memref<2x8x32xf32, #tpu.memory_space<vmem>>, vector<1x8x32xf32>
    %355 = vector.shape_cast %354 : vector<1x8x32xf32> to vector<8x32xf32>
    %c1_146 = arith.constant 1 : index
    %c0_147 = arith.constant 0 : index
    %c0_148 = arith.constant 0 : index
    %356 = vector.load %arg10[%c1_146, %c0_147, %c0_148] : memref<2x2x8xf32, #tpu.memory_space<vmem>>, vector<1x2x8xf32>
    %357 = vector.shape_cast %356 : vector<1x2x8xf32> to vector<2x8xf32>
    %c1_149 = arith.constant 1 : index
    %c0_150 = arith.constant 0 : index
    %c0_151 = arith.constant 0 : index
    %358 = vector.load %arg6[%c1_149, %c0_150, %c0_151] : memref<2x32x1536xf32, #tpu.memory_space<vmem>>, vector<1x32x1536xf32>
    %359 = vector.shape_cast %358 : vector<1x32x1536xf32> to vector<32x1536xf32>
    %cst_152 = arith.constant dense<0.000000e+00> : vector<10x1536xf32>
    %360 = tpu.matmul %353, %359, %cst_152 {dimension_numbers = #tpu.dot_dimension_numbers<[1], [0], [0], [1], [0, 0, 1, 1], [], []>} : vector<10x32xf32>, vector<32x1536xf32>, vector<10x1536xf32> -> vector<10x1536xf32>
    %c1_153 = arith.constant 1 : index
    %c0_154 = arith.constant 0 : index
    %c0_155 = arith.constant 0 : index
    %361 = vector.load %arg7[%c1_153, %c0_154, %c0_155] : memref<2x1x1536xf32, #tpu.memory_space<vmem>>, vector<1x1x1536xf32>
    %362 = vector.shape_cast %361 : vector<1x1x1536xf32> to vector<1x1536xf32>
    %363 = vector.broadcast %362 : vector<1x1536xf32> to vector<10x1536xf32>
    %364 = arith.addf %360, %363 : vector<10x1536xf32>
    %365 = vector.extract_strided_slice %364 {offsets = [0, 0], sizes = [10, 128], strides = [1, 1]} : vector<10x1536xf32> to vector<10x128xf32>
    %366 = vector.extract_strided_slice %364 {offsets = [0, 128], sizes = [10, 128], strides = [1, 1]} : vector<10x1536xf32> to vector<10x128xf32>
    %367 = vector.extract_strided_slice %364 {offsets = [0, 256], sizes = [10, 128], strides = [1, 1]} : vector<10x1536xf32> to vector<10x128xf32>
    %cst_156 = arith.constant dense<0.000000e+00> : vector<10x10xf32>
    %368 = tpu.matmul %365, %366, %cst_156 {dimension_numbers = #tpu.dot_dimension_numbers<[1], [1], [0], [0], [0, 0, 1, 0], [], []>} : vector<10x128xf32>, vector<10x128xf32>, vector<10x10xf32> -> vector<10x10xf32>
    %369 = vector.broadcast %43 : vector<1x10xf32> to vector<10x10xf32>
    %370 = arith.addf %368, %369 : vector<10x10xf32>
    %cst_157 = arith.constant dense<0xFF800000> : vector<10xf32>
    %371 = vector.multi_reduction <maximumf>, %370, %cst_157 [1] : vector<10x10xf32> to vector<10xf32>
    %372 = vector.shape_cast %371 : vector<10xf32> to vector<10x1xf32>
    %373 = vector.broadcast %372 : vector<10x1xf32> to vector<10x10xf32>
    %374 = arith.subf %370, %373 : vector<10x10xf32>
    %375 = math.exp %374 : vector<10x10xf32>
    %cst_158 = arith.constant dense<0.000000e+00> : vector<10xf32>
    %376 = vector.multi_reduction <add>, %375, %cst_158 [1] : vector<10x10xf32> to vector<10xf32>
    %377 = vector.shape_cast %376 : vector<10xf32> to vector<10x1xf32>
    %378 = tpu.reciprocal %377 : vector<10x1xf32> -> vector<10x1xf32>
    %379 = vector.broadcast %378 : vector<10x1xf32> to vector<10x10xf32>
    %380 = arith.mulf %375, %379 : vector<10x10xf32>
    %cst_159 = arith.constant dense<0.000000e+00> : vector<10x128xf32>
    %381 = tpu.matmul %380, %367, %cst_159 {dimension_numbers = #tpu.dot_dimension_numbers<[1], [0], [0], [1], [0, 0, 1, 1], [], []>} : vector<10x10xf32>, vector<10x128xf32>, vector<10x128xf32> -> vector<10x128xf32>
    %c4 = arith.constant 4 : index
    %c0_160 = arith.constant 0 : index
    %c0_161 = arith.constant 0 : index
    %382 = vector.load %arg8[%c4, %c0_160, %c0_161] : memref<8x128x32xf32, #tpu.memory_space<vmem>>, vector<1x128x32xf32>
    %383 = vector.shape_cast %382 : vector<1x128x32xf32> to vector<128x32xf32>
    %cst_162 = arith.constant dense<0.000000e+00> : vector<10x32xf32>
    %384 = tpu.matmul %381, %383, %cst_162 {dimension_numbers = #tpu.dot_dimension_numbers<[1], [0], [0], [1], [0, 0, 1, 1], [], []>} : vector<10x128xf32>, vector<128x32xf32>, vector<10x32xf32> -> vector<10x32xf32>
    %385 = vector.extract_strided_slice %364 {offsets = [0, 384], sizes = [10, 128], strides = [1, 1]} : vector<10x1536xf32> to vector<10x128xf32>
    %386 = vector.extract_strided_slice %364 {offsets = [0, 512], sizes = [10, 128], strides = [1, 1]} : vector<10x1536xf32> to vector<10x128xf32>
    %387 = vector.extract_strided_slice %364 {offsets = [0, 640], sizes = [10, 128], strides = [1, 1]} : vector<10x1536xf32> to vector<10x128xf32>
    %cst_163 = arith.constant dense<0.000000e+00> : vector<10x10xf32>
    %388 = tpu.matmul %385, %386, %cst_163 {dimension_numbers = #tpu.dot_dimension_numbers<[1], [1], [0], [0], [0, 0, 1, 0], [], []>} : vector<10x128xf32>, vector<10x128xf32>, vector<10x10xf32> -> vector<10x10xf32>
    %389 = vector.broadcast %43 : vector<1x10xf32> to vector<10x10xf32>
    %390 = arith.addf %388, %389 : vector<10x10xf32>
    %cst_164 = arith.constant dense<0xFF800000> : vector<10xf32>
    %391 = vector.multi_reduction <maximumf>, %390, %cst_164 [1] : vector<10x10xf32> to vector<10xf32>
    %392 = vector.shape_cast %391 : vector<10xf32> to vector<10x1xf32>
    %393 = vector.broadcast %392 : vector<10x1xf32> to vector<10x10xf32>
    %394 = arith.subf %390, %393 : vector<10x10xf32>
    %395 = math.exp %394 : vector<10x10xf32>
    %cst_165 = arith.constant dense<0.000000e+00> : vector<10xf32>
    %396 = vector.multi_reduction <add>, %395, %cst_165 [1] : vector<10x10xf32> to vector<10xf32>
    %397 = vector.shape_cast %396 : vector<10xf32> to vector<10x1xf32>
    %398 = tpu.reciprocal %397 : vector<10x1xf32> -> vector<10x1xf32>
    %399 = vector.broadcast %398 : vector<10x1xf32> to vector<10x10xf32>
    %400 = arith.mulf %395, %399 : vector<10x10xf32>
    %cst_166 = arith.constant dense<0.000000e+00> : vector<10x128xf32>
    %401 = tpu.matmul %400, %387, %cst_166 {dimension_numbers = #tpu.dot_dimension_numbers<[1], [0], [0], [1], [0, 0, 1, 1], [], []>} : vector<10x10xf32>, vector<10x128xf32>, vector<10x128xf32> -> vector<10x128xf32>
    %c5 = arith.constant 5 : index
    %c0_167 = arith.constant 0 : index
    %c0_168 = arith.constant 0 : index
    %402 = vector.load %arg8[%c5, %c0_167, %c0_168] : memref<8x128x32xf32, #tpu.memory_space<vmem>>, vector<1x128x32xf32>
    %403 = vector.shape_cast %402 : vector<1x128x32xf32> to vector<128x32xf32>
    %cst_169 = arith.constant dense<0.000000e+00> : vector<10x32xf32>
    %404 = tpu.matmul %401, %403, %cst_169 {dimension_numbers = #tpu.dot_dimension_numbers<[1], [0], [0], [1], [0, 0, 1, 1], [], []>} : vector<10x128xf32>, vector<128x32xf32>, vector<10x32xf32> -> vector<10x32xf32>
    %405 = arith.addf %384, %404 : vector<10x32xf32>
    %406 = vector.extract_strided_slice %364 {offsets = [0, 768], sizes = [10, 128], strides = [1, 1]} : vector<10x1536xf32> to vector<10x128xf32>
    %407 = vector.extract_strided_slice %364 {offsets = [0, 896], sizes = [10, 128], strides = [1, 1]} : vector<10x1536xf32> to vector<10x128xf32>
    %408 = vector.extract_strided_slice %364 {offsets = [0, 1024], sizes = [10, 128], strides = [1, 1]} : vector<10x1536xf32> to vector<10x128xf32>
    %cst_170 = arith.constant dense<0.000000e+00> : vector<10x10xf32>
    %409 = tpu.matmul %406, %407, %cst_170 {dimension_numbers = #tpu.dot_dimension_numbers<[1], [1], [0], [0], [0, 0, 1, 0], [], []>} : vector<10x128xf32>, vector<10x128xf32>, vector<10x10xf32> -> vector<10x10xf32>
    %410 = vector.broadcast %43 : vector<1x10xf32> to vector<10x10xf32>
    %411 = arith.addf %409, %410 : vector<10x10xf32>
    %cst_171 = arith.constant dense<0xFF800000> : vector<10xf32>
    %412 = vector.multi_reduction <maximumf>, %411, %cst_171 [1] : vector<10x10xf32> to vector<10xf32>
    %413 = vector.shape_cast %412 : vector<10xf32> to vector<10x1xf32>
    %414 = vector.broadcast %413 : vector<10x1xf32> to vector<10x10xf32>
    %415 = arith.subf %411, %414 : vector<10x10xf32>
    %416 = math.exp %415 : vector<10x10xf32>
    %cst_172 = arith.constant dense<0.000000e+00> : vector<10xf32>
    %417 = vector.multi_reduction <add>, %416, %cst_172 [1] : vector<10x10xf32> to vector<10xf32>
    %418 = vector.shape_cast %417 : vector<10xf32> to vector<10x1xf32>
    %419 = tpu.reciprocal %418 : vector<10x1xf32> -> vector<10x1xf32>
    %420 = vector.broadcast %419 : vector<10x1xf32> to vector<10x10xf32>
    %421 = arith.mulf %416, %420 : vector<10x10xf32>
    %cst_173 = arith.constant dense<0.000000e+00> : vector<10x128xf32>
    %422 = tpu.matmul %421, %408, %cst_173 {dimension_numbers = #tpu.dot_dimension_numbers<[1], [0], [0], [1], [0, 0, 1, 1], [], []>} : vector<10x10xf32>, vector<10x128xf32>, vector<10x128xf32> -> vector<10x128xf32>
    %c6 = arith.constant 6 : index
    %c0_174 = arith.constant 0 : index
    %c0_175 = arith.constant 0 : index
    %423 = vector.load %arg8[%c6, %c0_174, %c0_175] : memref<8x128x32xf32, #tpu.memory_space<vmem>>, vector<1x128x32xf32>
    %424 = vector.shape_cast %423 : vector<1x128x32xf32> to vector<128x32xf32>
    %cst_176 = arith.constant dense<0.000000e+00> : vector<10x32xf32>
    %425 = tpu.matmul %422, %424, %cst_176 {dimension_numbers = #tpu.dot_dimension_numbers<[1], [0], [0], [1], [0, 0, 1, 1], [], []>} : vector<10x128xf32>, vector<128x32xf32>, vector<10x32xf32> -> vector<10x32xf32>
    %426 = arith.addf %405, %425 : vector<10x32xf32>
    %427 = vector.extract_strided_slice %364 {offsets = [0, 1152], sizes = [10, 128], strides = [1, 1]} : vector<10x1536xf32> to vector<10x128xf32>
    %428 = vector.extract_strided_slice %364 {offsets = [0, 1280], sizes = [10, 128], strides = [1, 1]} : vector<10x1536xf32> to vector<10x128xf32>
    %429 = vector.extract_strided_slice %364 {offsets = [0, 1408], sizes = [10, 128], strides = [1, 1]} : vector<10x1536xf32> to vector<10x128xf32>
    %cst_177 = arith.constant dense<0.000000e+00> : vector<10x10xf32>
    %430 = tpu.matmul %427, %428, %cst_177 {dimension_numbers = #tpu.dot_dimension_numbers<[1], [1], [0], [0], [0, 0, 1, 0], [], []>} : vector<10x128xf32>, vector<10x128xf32>, vector<10x10xf32> -> vector<10x10xf32>
    %431 = vector.broadcast %43 : vector<1x10xf32> to vector<10x10xf32>
    %432 = arith.addf %430, %431 : vector<10x10xf32>
    %cst_178 = arith.constant dense<0xFF800000> : vector<10xf32>
    %433 = vector.multi_reduction <maximumf>, %432, %cst_178 [1] : vector<10x10xf32> to vector<10xf32>
    %434 = vector.shape_cast %433 : vector<10xf32> to vector<10x1xf32>
    %435 = vector.broadcast %434 : vector<10x1xf32> to vector<10x10xf32>
    %436 = arith.subf %432, %435 : vector<10x10xf32>
    %437 = math.exp %436 : vector<10x10xf32>
    %cst_179 = arith.constant dense<0.000000e+00> : vector<10xf32>
    %438 = vector.multi_reduction <add>, %437, %cst_179 [1] : vector<10x10xf32> to vector<10xf32>
    %439 = vector.shape_cast %438 : vector<10xf32> to vector<10x1xf32>
    %440 = tpu.reciprocal %439 : vector<10x1xf32> -> vector<10x1xf32>
    %441 = vector.broadcast %440 : vector<10x1xf32> to vector<10x10xf32>
    %442 = arith.mulf %437, %441 : vector<10x10xf32>
    %cst_180 = arith.constant dense<0.000000e+00> : vector<10x128xf32>
    %443 = tpu.matmul %442, %429, %cst_180 {dimension_numbers = #tpu.dot_dimension_numbers<[1], [0], [0], [1], [0, 0, 1, 1], [], []>} : vector<10x10xf32>, vector<10x128xf32>, vector<10x128xf32> -> vector<10x128xf32>
    %c7 = arith.constant 7 : index
    %c0_181 = arith.constant 0 : index
    %c0_182 = arith.constant 0 : index
    %444 = vector.load %arg8[%c7, %c0_181, %c0_182] : memref<8x128x32xf32, #tpu.memory_space<vmem>>, vector<1x128x32xf32>
    %445 = vector.shape_cast %444 : vector<1x128x32xf32> to vector<128x32xf32>
    %cst_183 = arith.constant dense<0.000000e+00> : vector<10x32xf32>
    %446 = tpu.matmul %443, %445, %cst_183 {dimension_numbers = #tpu.dot_dimension_numbers<[1], [0], [0], [1], [0, 0, 1, 1], [], []>} : vector<10x128xf32>, vector<128x32xf32>, vector<10x32xf32> -> vector<10x32xf32>
    %447 = arith.addf %426, %446 : vector<10x32xf32>
    %448 = vector.extract_strided_slice %355 {offsets = [0, 0], sizes = [1, 32], strides = [1, 1]} : vector<8x32xf32> to vector<1x32xf32>
    %449 = vector.broadcast %448 : vector<1x32xf32> to vector<10x32xf32>
    %450 = arith.addf %447, %449 : vector<10x32xf32>
    %c2_184 = arith.constant 2 : index
    %c0_185 = arith.constant 0 : index
    %c0_186 = arith.constant 0 : index
    %451 = vector.load %arg12[%c2_184, %c0_185, %c0_186] : memref<4x32x8xf32, #tpu.memory_space<vmem>>, vector<1x32x8xf32>
    %452 = vector.shape_cast %451 : vector<1x32x8xf32> to vector<32x8xf32>
    %cst_187 = arith.constant dense<0.000000e+00> : vector<10x8xf32>
    %453 = tpu.matmul %450, %452, %cst_187 {dimension_numbers = #tpu.dot_dimension_numbers<[1], [0], [0], [1], [0, 0, 1, 1], [], []>} : vector<10x32xf32>, vector<32x8xf32>, vector<10x8xf32> -> vector<10x8xf32>
    %454 = vector.extract_strided_slice %357 {offsets = [0, 0], sizes = [1, 8], strides = [1, 1]} : vector<2x8xf32> to vector<1x8xf32>
    %455 = vector.broadcast %454 : vector<1x8xf32> to vector<10x8xf32>
    %456 = arith.addf %453, %455 : vector<10x8xf32>
    %cst_188 = arith.constant 5.000000e-01 : f32
    %457 = vector.broadcast %cst_188 : f32 to vector<10x8xf32>
    %458 = arith.mulf %457, %456 : vector<10x8xf32>
    %cst_189 = arith.constant 0.707106769 : f32
    %459 = vector.broadcast %cst_189 : f32 to vector<10x8xf32>
    %460 = arith.mulf %456, %459 : vector<10x8xf32>
    %cst_190 = arith.constant 0.000000e+00 : f32
    %461 = vector.broadcast %cst_190 : f32 to vector<10x8xf32>
    %462 = arith.cmpf oge, %460, %461 : vector<10x8xf32>
    %cst_191 = arith.constant 1.000000e+00 : f32
    %cst_192 = arith.constant -1.000000e+00 : f32
    %463 = vector.broadcast %cst_191 : f32 to vector<10x8xf32>
    %464 = vector.broadcast %cst_192 : f32 to vector<10x8xf32>
    %465 = arith.select %462, %463, %464 : vector<10x8xi1>, vector<10x8xf32>
    %466 = math.absf %460 : vector<10x8xf32>
    %cst_193 = arith.constant 0.327591091 : f32
    %467 = vector.broadcast %cst_193 : f32 to vector<10x8xf32>
    %468 = arith.mulf %467, %466 : vector<10x8xf32>
    %cst_194 = arith.constant 1.000000e+00 : f32
    %469 = vector.broadcast %cst_194 : f32 to vector<10x8xf32>
    %470 = arith.addf %469, %468 : vector<10x8xf32>
    %471 = tpu.reciprocal %470 : vector<10x8xf32> -> vector<10x8xf32>
    %cst_195 = arith.constant 1.06140542 : f32
    %472 = vector.broadcast %cst_195 : f32 to vector<10x8xf32>
    %473 = arith.mulf %472, %471 : vector<10x8xf32>
    %cst_196 = arith.constant -1.45315206 : f32
    %474 = vector.broadcast %cst_196 : f32 to vector<10x8xf32>
    %475 = arith.addf %473, %474 : vector<10x8xf32>
    %476 = arith.mulf %475, %471 : vector<10x8xf32>
    %cst_197 = arith.constant 1.42141378 : f32
    %477 = vector.broadcast %cst_197 : f32 to vector<10x8xf32>
    %478 = arith.addf %476, %477 : vector<10x8xf32>
    %479 = arith.mulf %478, %471 : vector<10x8xf32>
    %cst_198 = arith.constant -0.284496725 : f32
    %480 = vector.broadcast %cst_198 : f32 to vector<10x8xf32>
    %481 = arith.addf %479, %480 : vector<10x8xf32>
    %482 = arith.mulf %481, %471 : vector<10x8xf32>
    %cst_199 = arith.constant 0.254829586 : f32
    %483 = vector.broadcast %cst_199 : f32 to vector<10x8xf32>
    %484 = arith.addf %482, %483 : vector<10x8xf32>
    %485 = arith.mulf %484, %471 : vector<10x8xf32>
    %cst_200 = arith.constant 0.000000e+00 : f32
    %486 = vector.broadcast %cst_200 : f32 to vector<10x8xf32>
    %487 = arith.subf %486, %466 : vector<10x8xf32>
    %488 = arith.mulf %487, %466 : vector<10x8xf32>
    %489 = math.exp %488 : vector<10x8xf32>
    %490 = arith.mulf %485, %489 : vector<10x8xf32>
    %cst_201 = arith.constant 1.000000e+00 : f32
    %491 = vector.broadcast %cst_201 : f32 to vector<10x8xf32>
    %492 = arith.subf %491, %490 : vector<10x8xf32>
    %493 = arith.mulf %465, %492 : vector<10x8xf32>
    %cst_202 = arith.constant 1.000000e+00 : f32
    %494 = vector.broadcast %cst_202 : f32 to vector<10x8xf32>
    %495 = arith.addf %494, %493 : vector<10x8xf32>
    %496 = arith.mulf %458, %495 : vector<10x8xf32>
    %c2_203 = arith.constant 2 : index
    %c0_204 = arith.constant 0 : index
    %c0_205 = arith.constant 0 : index
    %497 = vector.load %arg13[%c2_203, %c0_204, %c0_205] : memref<4x8x32xf32, #tpu.memory_space<vmem>>, vector<1x8x32xf32>
    %498 = vector.shape_cast %497 : vector<1x8x32xf32> to vector<8x32xf32>
    %cst_206 = arith.constant dense<0.000000e+00> : vector<10x32xf32>
    %499 = tpu.matmul %496, %498, %cst_206 {dimension_numbers = #tpu.dot_dimension_numbers<[1], [0], [0], [1], [0, 0, 1, 1], [], []>} : vector<10x8xf32>, vector<8x32xf32>, vector<10x32xf32> -> vector<10x32xf32>
    %500 = vector.extract_strided_slice %355 {offsets = [1, 0], sizes = [1, 32], strides = [1, 1]} : vector<8x32xf32> to vector<1x32xf32>
    %501 = vector.broadcast %500 : vector<1x32xf32> to vector<10x32xf32>
    %502 = arith.addf %499, %501 : vector<10x32xf32>
    %503 = arith.addf %502, %450 : vector<10x32xf32>
    %504 = arith.addf %503, %353 : vector<10x32xf32>
    %505 = vector.extract_strided_slice %355 {offsets = [2, 0], sizes = [1, 32], strides = [1, 1]} : vector<8x32xf32> to vector<1x32xf32>
    %506 = vector.extract_strided_slice %355 {offsets = [3, 0], sizes = [1, 32], strides = [1, 1]} : vector<8x32xf32> to vector<1x32xf32>
    %cst_207 = arith.constant dense<0.000000e+00> : vector<10xf32>
    %507 = vector.multi_reduction <add>, %504, %cst_207 [1] : vector<10x32xf32> to vector<10xf32>
    %508 = vector.shape_cast %507 : vector<10xf32> to vector<10x1xf32>
    %cst_208 = arith.constant 3.200000e+01 : f32
    %509 = vector.broadcast %cst_208 : f32 to vector<10x1xf32>
    %510 = arith.divf %508, %509 : vector<10x1xf32>
    %511 = arith.mulf %504, %504 : vector<10x32xf32>
    %cst_209 = arith.constant dense<0.000000e+00> : vector<10xf32>
    %512 = vector.multi_reduction <add>, %511, %cst_209 [1] : vector<10x32xf32> to vector<10xf32>
    %513 = vector.shape_cast %512 : vector<10xf32> to vector<10x1xf32>
    %cst_210 = arith.constant 3.200000e+01 : f32
    %514 = vector.broadcast %cst_210 : f32 to vector<10x1xf32>
    %515 = arith.divf %513, %514 : vector<10x1xf32>
    %516 = arith.mulf %510, %510 : vector<10x1xf32>
    %517 = arith.subf %515, %516 : vector<10x1xf32>
    %cst_211 = arith.constant 0.000000e+00 : f32
    %518 = vector.broadcast %cst_211 : f32 to vector<10x1xf32>
    %519 = arith.maximumf %517, %518 : vector<10x1xf32>
    %520 = vector.broadcast %510 : vector<10x1xf32> to vector<10x32xf32>
    %521 = arith.subf %504, %520 : vector<10x32xf32>
    %cst_212 = arith.constant 9.99999996E-13 : f32
    %522 = vector.broadcast %cst_212 : f32 to vector<10x1xf32>
    %523 = arith.addf %519, %522 : vector<10x1xf32>
    %524 = math.rsqrt %523 : vector<10x1xf32>
    %525 = vector.broadcast %524 : vector<10x1xf32> to vector<10x32xf32>
    %526 = arith.mulf %521, %525 : vector<10x32xf32>
    %527 = vector.broadcast %505 : vector<1x32xf32> to vector<10x32xf32>
    %528 = arith.mulf %526, %527 : vector<10x32xf32>
    %529 = vector.broadcast %506 : vector<1x32xf32> to vector<10x32xf32>
    %530 = arith.addf %528, %529 : vector<10x32xf32>
    %c1_213 = arith.constant 1 : index
    %c0_214 = arith.constant 0 : index
    %c0_215 = arith.constant 0 : index
    %531 = vector.load %arg14[%c1_213, %c0_214, %c0_215] : memref<2x32x64xf32, #tpu.memory_space<vmem>>, vector<1x32x64xf32>
    %532 = vector.shape_cast %531 : vector<1x32x64xf32> to vector<32x64xf32>
    %cst_216 = arith.constant dense<0.000000e+00> : vector<10x64xf32>
    %533 = tpu.matmul %530, %532, %cst_216 {dimension_numbers = #tpu.dot_dimension_numbers<[1], [0], [0], [1], [0, 0, 1, 1], [], []>} : vector<10x32xf32>, vector<32x64xf32>, vector<10x64xf32> -> vector<10x64xf32>
    %c1_217 = arith.constant 1 : index
    %c0_218 = arith.constant 0 : index
    %c0_219 = arith.constant 0 : index
    %534 = vector.load %arg11[%c1_217, %c0_218, %c0_219] : memref<2x1x64xf32, #tpu.memory_space<vmem>>, vector<1x1x64xf32>
    %535 = vector.shape_cast %534 : vector<1x1x64xf32> to vector<1x64xf32>
    %536 = vector.broadcast %535 : vector<1x64xf32> to vector<10x64xf32>
    %537 = arith.addf %533, %536 : vector<10x64xf32>
    %cst_220 = arith.constant 5.000000e-01 : f32
    %538 = vector.broadcast %cst_220 : f32 to vector<10x64xf32>
    %539 = arith.mulf %538, %537 : vector<10x64xf32>
    %cst_221 = arith.constant 0.707106769 : f32
    %540 = vector.broadcast %cst_221 : f32 to vector<10x64xf32>
    %541 = arith.mulf %537, %540 : vector<10x64xf32>
    %cst_222 = arith.constant 0.000000e+00 : f32
    %542 = vector.broadcast %cst_222 : f32 to vector<10x64xf32>
    %543 = arith.cmpf oge, %541, %542 : vector<10x64xf32>
    %cst_223 = arith.constant 1.000000e+00 : f32
    %cst_224 = arith.constant -1.000000e+00 : f32
    %544 = vector.broadcast %cst_223 : f32 to vector<10x64xf32>
    %545 = vector.broadcast %cst_224 : f32 to vector<10x64xf32>
    %546 = arith.select %543, %544, %545 : vector<10x64xi1>, vector<10x64xf32>
    %547 = math.absf %541 : vector<10x64xf32>
    %cst_225 = arith.constant 0.327591091 : f32
    %548 = vector.broadcast %cst_225 : f32 to vector<10x64xf32>
    %549 = arith.mulf %548, %547 : vector<10x64xf32>
    %cst_226 = arith.constant 1.000000e+00 : f32
    %550 = vector.broadcast %cst_226 : f32 to vector<10x64xf32>
    %551 = arith.addf %550, %549 : vector<10x64xf32>
    %552 = tpu.reciprocal %551 : vector<10x64xf32> -> vector<10x64xf32>
    %cst_227 = arith.constant 1.06140542 : f32
    %553 = vector.broadcast %cst_227 : f32 to vector<10x64xf32>
    %554 = arith.mulf %553, %552 : vector<10x64xf32>
    %cst_228 = arith.constant -1.45315206 : f32
    %555 = vector.broadcast %cst_228 : f32 to vector<10x64xf32>
    %556 = arith.addf %554, %555 : vector<10x64xf32>
    %557 = arith.mulf %556, %552 : vector<10x64xf32>
    %cst_229 = arith.constant 1.42141378 : f32
    %558 = vector.broadcast %cst_229 : f32 to vector<10x64xf32>
    %559 = arith.addf %557, %558 : vector<10x64xf32>
    %560 = arith.mulf %559, %552 : vector<10x64xf32>
    %cst_230 = arith.constant -0.284496725 : f32
    %561 = vector.broadcast %cst_230 : f32 to vector<10x64xf32>
    %562 = arith.addf %560, %561 : vector<10x64xf32>
    %563 = arith.mulf %562, %552 : vector<10x64xf32>
    %cst_231 = arith.constant 0.254829586 : f32
    %564 = vector.broadcast %cst_231 : f32 to vector<10x64xf32>
    %565 = arith.addf %563, %564 : vector<10x64xf32>
    %566 = arith.mulf %565, %552 : vector<10x64xf32>
    %cst_232 = arith.constant 0.000000e+00 : f32
    %567 = vector.broadcast %cst_232 : f32 to vector<10x64xf32>
    %568 = arith.subf %567, %547 : vector<10x64xf32>
    %569 = arith.mulf %568, %547 : vector<10x64xf32>
    %570 = math.exp %569 : vector<10x64xf32>
    %571 = arith.mulf %566, %570 : vector<10x64xf32>
    %cst_233 = arith.constant 1.000000e+00 : f32
    %572 = vector.broadcast %cst_233 : f32 to vector<10x64xf32>
    %573 = arith.subf %572, %571 : vector<10x64xf32>
    %574 = arith.mulf %546, %573 : vector<10x64xf32>
    %cst_234 = arith.constant 1.000000e+00 : f32
    %575 = vector.broadcast %cst_234 : f32 to vector<10x64xf32>
    %576 = arith.addf %575, %574 : vector<10x64xf32>
    %577 = arith.mulf %539, %576 : vector<10x64xf32>
    %c1_235 = arith.constant 1 : index
    %c0_236 = arith.constant 0 : index
    %c0_237 = arith.constant 0 : index
    %578 = vector.load %arg15[%c1_235, %c0_236, %c0_237] : memref<2x64x32xf32, #tpu.memory_space<vmem>>, vector<1x64x32xf32>
    %579 = vector.shape_cast %578 : vector<1x64x32xf32> to vector<64x32xf32>
    %cst_238 = arith.constant dense<0.000000e+00> : vector<10x32xf32>
    %580 = tpu.matmul %577, %579, %cst_238 {dimension_numbers = #tpu.dot_dimension_numbers<[1], [0], [0], [1], [0, 0, 1, 1], [], []>} : vector<10x64xf32>, vector<64x32xf32>, vector<10x32xf32> -> vector<10x32xf32>
    %581 = vector.extract_strided_slice %355 {offsets = [4, 0], sizes = [1, 32], strides = [1, 1]} : vector<8x32xf32> to vector<1x32xf32>
    %582 = vector.broadcast %581 : vector<1x32xf32> to vector<10x32xf32>
    %583 = arith.addf %580, %582 : vector<10x32xf32>
    %c3_239 = arith.constant 3 : index
    %c0_240 = arith.constant 0 : index
    %c0_241 = arith.constant 0 : index
    %584 = vector.load %arg12[%c3_239, %c0_240, %c0_241] : memref<4x32x8xf32, #tpu.memory_space<vmem>>, vector<1x32x8xf32>
    %585 = vector.shape_cast %584 : vector<1x32x8xf32> to vector<32x8xf32>
    %cst_242 = arith.constant dense<0.000000e+00> : vector<10x8xf32>
    %586 = tpu.matmul %583, %585, %cst_242 {dimension_numbers = #tpu.dot_dimension_numbers<[1], [0], [0], [1], [0, 0, 1, 1], [], []>} : vector<10x32xf32>, vector<32x8xf32>, vector<10x8xf32> -> vector<10x8xf32>
    %587 = vector.extract_strided_slice %357 {offsets = [1, 0], sizes = [1, 8], strides = [1, 1]} : vector<2x8xf32> to vector<1x8xf32>
    %588 = vector.broadcast %587 : vector<1x8xf32> to vector<10x8xf32>
    %589 = arith.addf %586, %588 : vector<10x8xf32>
    %cst_243 = arith.constant 5.000000e-01 : f32
    %590 = vector.broadcast %cst_243 : f32 to vector<10x8xf32>
    %591 = arith.mulf %590, %589 : vector<10x8xf32>
    %cst_244 = arith.constant 0.707106769 : f32
    %592 = vector.broadcast %cst_244 : f32 to vector<10x8xf32>
    %593 = arith.mulf %589, %592 : vector<10x8xf32>
    %cst_245 = arith.constant 0.000000e+00 : f32
    %594 = vector.broadcast %cst_245 : f32 to vector<10x8xf32>
    %595 = arith.cmpf oge, %593, %594 : vector<10x8xf32>
    %cst_246 = arith.constant 1.000000e+00 : f32
    %cst_247 = arith.constant -1.000000e+00 : f32
    %596 = vector.broadcast %cst_246 : f32 to vector<10x8xf32>
    %597 = vector.broadcast %cst_247 : f32 to vector<10x8xf32>
    %598 = arith.select %595, %596, %597 : vector<10x8xi1>, vector<10x8xf32>
    %599 = math.absf %593 : vector<10x8xf32>
    %cst_248 = arith.constant 0.327591091 : f32
    %600 = vector.broadcast %cst_248 : f32 to vector<10x8xf32>
    %601 = arith.mulf %600, %599 : vector<10x8xf32>
    %cst_249 = arith.constant 1.000000e+00 : f32
    %602 = vector.broadcast %cst_249 : f32 to vector<10x8xf32>
    %603 = arith.addf %602, %601 : vector<10x8xf32>
    %604 = tpu.reciprocal %603 : vector<10x8xf32> -> vector<10x8xf32>
    %cst_250 = arith.constant 1.06140542 : f32
    %605 = vector.broadcast %cst_250 : f32 to vector<10x8xf32>
    %606 = arith.mulf %605, %604 : vector<10x8xf32>
    %cst_251 = arith.constant -1.45315206 : f32
    %607 = vector.broadcast %cst_251 : f32 to vector<10x8xf32>
    %608 = arith.addf %606, %607 : vector<10x8xf32>
    %609 = arith.mulf %608, %604 : vector<10x8xf32>
    %cst_252 = arith.constant 1.42141378 : f32
    %610 = vector.broadcast %cst_252 : f32 to vector<10x8xf32>
    %611 = arith.addf %609, %610 : vector<10x8xf32>
    %612 = arith.mulf %611, %604 : vector<10x8xf32>
    %cst_253 = arith.constant -0.284496725 : f32
    %613 = vector.broadcast %cst_253 : f32 to vector<10x8xf32>
    %614 = arith.addf %612, %613 : vector<10x8xf32>
    %615 = arith.mulf %614, %604 : vector<10x8xf32>
    %cst_254 = arith.constant 0.254829586 : f32
    %616 = vector.broadcast %cst_254 : f32 to vector<10x8xf32>
    %617 = arith.addf %615, %616 : vector<10x8xf32>
    %618 = arith.mulf %617, %604 : vector<10x8xf32>
    %cst_255 = arith.constant 0.000000e+00 : f32
    %619 = vector.broadcast %cst_255 : f32 to vector<10x8xf32>
    %620 = arith.subf %619, %599 : vector<10x8xf32>
    %621 = arith.mulf %620, %599 : vector<10x8xf32>
    %622 = math.exp %621 : vector<10x8xf32>
    %623 = arith.mulf %618, %622 : vector<10x8xf32>
    %cst_256 = arith.constant 1.000000e+00 : f32
    %624 = vector.broadcast %cst_256 : f32 to vector<10x8xf32>
    %625 = arith.subf %624, %623 : vector<10x8xf32>
    %626 = arith.mulf %598, %625 : vector<10x8xf32>
    %cst_257 = arith.constant 1.000000e+00 : f32
    %627 = vector.broadcast %cst_257 : f32 to vector<10x8xf32>
    %628 = arith.addf %627, %626 : vector<10x8xf32>
    %629 = arith.mulf %591, %628 : vector<10x8xf32>
    %c3_258 = arith.constant 3 : index
    %c0_259 = arith.constant 0 : index
    %c0_260 = arith.constant 0 : index
    %630 = vector.load %arg13[%c3_258, %c0_259, %c0_260] : memref<4x8x32xf32, #tpu.memory_space<vmem>>, vector<1x8x32xf32>
    %631 = vector.shape_cast %630 : vector<1x8x32xf32> to vector<8x32xf32>
    %cst_261 = arith.constant dense<0.000000e+00> : vector<10x32xf32>
    %632 = tpu.matmul %629, %631, %cst_261 {dimension_numbers = #tpu.dot_dimension_numbers<[1], [0], [0], [1], [0, 0, 1, 1], [], []>} : vector<10x8xf32>, vector<8x32xf32>, vector<10x32xf32> -> vector<10x32xf32>
    %633 = vector.extract_strided_slice %355 {offsets = [5, 0], sizes = [1, 32], strides = [1, 1]} : vector<8x32xf32> to vector<1x32xf32>
    %634 = vector.broadcast %633 : vector<1x32xf32> to vector<10x32xf32>
    %635 = arith.addf %632, %634 : vector<10x32xf32>
    %636 = arith.addf %635, %583 : vector<10x32xf32>
    %637 = arith.addf %636, %530 : vector<10x32xf32>
    %638 = vector.extract_strided_slice %355 {offsets = [6, 0], sizes = [1, 32], strides = [1, 1]} : vector<8x32xf32> to vector<1x32xf32>
    %639 = vector.extract_strided_slice %355 {offsets = [7, 0], sizes = [1, 32], strides = [1, 1]} : vector<8x32xf32> to vector<1x32xf32>
    %cst_262 = arith.constant dense<0.000000e+00> : vector<10xf32>
    %640 = vector.multi_reduction <add>, %637, %cst_262 [1] : vector<10x32xf32> to vector<10xf32>
    %641 = vector.shape_cast %640 : vector<10xf32> to vector<10x1xf32>
    %cst_263 = arith.constant 3.200000e+01 : f32
    %642 = vector.broadcast %cst_263 : f32 to vector<10x1xf32>
    %643 = arith.divf %641, %642 : vector<10x1xf32>
    %644 = arith.mulf %637, %637 : vector<10x32xf32>
    %cst_264 = arith.constant dense<0.000000e+00> : vector<10xf32>
    %645 = vector.multi_reduction <add>, %644, %cst_264 [1] : vector<10x32xf32> to vector<10xf32>
    %646 = vector.shape_cast %645 : vector<10xf32> to vector<10x1xf32>
    %cst_265 = arith.constant 3.200000e+01 : f32
    %647 = vector.broadcast %cst_265 : f32 to vector<10x1xf32>
    %648 = arith.divf %646, %647 : vector<10x1xf32>
    %649 = arith.mulf %643, %643 : vector<10x1xf32>
    %650 = arith.subf %648, %649 : vector<10x1xf32>
    %cst_266 = arith.constant 0.000000e+00 : f32
    %651 = vector.broadcast %cst_266 : f32 to vector<10x1xf32>
    %652 = arith.maximumf %650, %651 : vector<10x1xf32>
    %653 = vector.broadcast %643 : vector<10x1xf32> to vector<10x32xf32>
    %654 = arith.subf %637, %653 : vector<10x32xf32>
    %cst_267 = arith.constant 9.99999996E-13 : f32
    %655 = vector.broadcast %cst_267 : f32 to vector<10x1xf32>
    %656 = arith.addf %652, %655 : vector<10x1xf32>
    %657 = math.rsqrt %656 : vector<10x1xf32>
    %658 = vector.broadcast %657 : vector<10x1xf32> to vector<10x32xf32>
    %659 = arith.mulf %654, %658 : vector<10x32xf32>
    %660 = vector.broadcast %638 : vector<1x32xf32> to vector<10x32xf32>
    %661 = arith.mulf %659, %660 : vector<10x32xf32>
    %662 = vector.broadcast %639 : vector<1x32xf32> to vector<10x32xf32>
    %663 = arith.addf %661, %662 : vector<10x32xf32>
    %664 = vector.extract_strided_slice %663 {offsets = [1, 0], sizes = [8, 32], strides = [1, 1]} : vector<10x32xf32> to vector<8x32xf32>
    %c0_268 = arith.constant 0 : index
    %c0_269 = arith.constant 0 : index
    %c0_270 = arith.constant 0 : index
    %665 = vector.load %arg16[%c0_268, %c0_269, %c0_270] : memref<1x8x32xf32, #tpu.memory_space<vmem>>, vector<1x8x32xf32>
    %666 = vector.shape_cast %665 : vector<1x8x32xf32> to vector<8x32xf32>
    %667 = vector.shape_cast %664 : vector<8x32xf32> to vector<1x8x32xf32>
    tpu.vector_store %arg16[%c0_268, %c0_269, %c0_270], %667 {strides = array<i32>} : memref<1x8x32xf32, #tpu.memory_space<vmem>>, vector<1x8x32xf32>,
    return
  }
  func.func @transform_0(%arg0: i32) -> (i32, i32, i32) {
    %c0_i32 = arith.constant 0 : i32
    %c0_i32_0 = arith.constant 0 : i32
    %c0_i32_1 = arith.constant 0 : i32
    return %arg0, %c0_i32, %c0_i32_0 : i32, i32, i32
  }
  func.func @transform_1(%arg0: i32) -> (i32, i32, i32) {
    %c0_i32 = arith.constant 0 : i32
    %c0_i32_0 = arith.constant 0 : i32
    %c0_i32_1 = arith.constant 0 : i32
    return %arg0, %c0_i32, %c0_i32_0 : i32, i32, i32
  }
  func.func @transform_2(%arg0: i32) -> (i32, i32) {
    %c0_i32 = arith.constant 0 : i32
    %c0_i32_0 = arith.constant 0 : i32
    %c0_i32_1 = arith.constant 0 : i32
    return %c0_i32, %c0_i32_0 : i32, i32
  }
  func.func @transform_3(%arg0: i32) -> (i32, i32) {
    %c0_i32 = arith.constant 0 : i32
    %c0_i32_0 = arith.constant 0 : i32
    %c0_i32_1 = arith.constant 0 : i32
    return %c0_i32, %c0_i32_0 : i32, i32
  }
  func.func @transform_4(%arg0: i32) -> (i32, i32) {
    %c0_i32 = arith.constant 0 : i32
    %c0_i32_0 = arith.constant 0 : i32
    %c0_i32_1 = arith.constant 0 : i32
    return %c0_i32, %c0_i32_0 : i32, i32
  }
  func.func @transform_5(%arg0: i32) -> (i32, i32, i32) {
    %c0_i32 = arith.constant 0 : i32
    %c0_i32_0 = arith.constant 0 : i32
    %c0_i32_1 = arith.constant 0 : i32
    %c0_i32_2 = arith.constant 0 : i32
    return %c0_i32, %c0_i32_0, %c0_i32_1 : i32, i32, i32
  }
  func.func @transform_6(%arg0: i32) -> (i32, i32, i32) {
    %c0_i32 = arith.constant 0 : i32
    %c0_i32_0 = arith.constant 0 : i32
    %c0_i32_1 = arith.constant 0 : i32
    %c0_i32_2 = arith.constant 0 : i32
    return %c0_i32, %c0_i32_0, %c0_i32_1 : i32, i32, i32
  }
  func.func @transform_7(%arg0: i32) -> (i32, i32, i32) {
    %c0_i32 = arith.constant 0 : i32
    %c0_i32_0 = arith.constant 0 : i32
    %c0_i32_1 = arith.constant 0 : i32
    %c0_i32_2 = arith.constant 0 : i32
    return %c0_i32, %c0_i32_0, %c0_i32_1 : i32, i32, i32
  }
  func.func @transform_8(%arg0: i32) -> (i32, i32, i32) {
    %c0_i32 = arith.constant 0 : i32
    %c0_i32_0 = arith.constant 0 : i32
    %c0_i32_1 = arith.constant 0 : i32
    %c0_i32_2 = arith.constant 0 : i32
    return %c0_i32, %c0_i32_0, %c0_i32_1 : i32, i32, i32
  }
  func.func @transform_9(%arg0: i32) -> (i32, i32, i32) {
    %c0_i32 = arith.constant 0 : i32
    %c0_i32_0 = arith.constant 0 : i32
    %c0_i32_1 = arith.constant 0 : i32
    %c0_i32_2 = arith.constant 0 : i32
    return %c0_i32, %c0_i32_0, %c0_i32_1 : i32, i32, i32
  }
  func.func @transform_10(%arg0: i32) -> (i32, i32, i32) {
    %c0_i32 = arith.constant 0 : i32
    %c0_i32_0 = arith.constant 0 : i32
    %c0_i32_1 = arith.constant 0 : i32
    %c0_i32_2 = arith.constant 0 : i32
    return %c0_i32, %c0_i32_0, %c0_i32_1 : i32, i32, i32
  }
  func.func @transform_11(%arg0: i32) -> (i32, i32, i32) {
    %c0_i32 = arith.constant 0 : i32
    %c0_i32_0 = arith.constant 0 : i32
    %c0_i32_1 = arith.constant 0 : i32
    %c0_i32_2 = arith.constant 0 : i32
    return %c0_i32, %c0_i32_0, %c0_i32_1 : i32, i32, i32
  }
  func.func @transform_12(%arg0: i32) -> (i32, i32, i32) {
    %c0_i32 = arith.constant 0 : i32
    %c0_i32_0 = arith.constant 0 : i32
    %c0_i32_1 = arith.constant 0 : i32
    %c0_i32_2 = arith.constant 0 : i32
    return %c0_i32, %c0_i32_0, %c0_i32_1 : i32, i32, i32
  }
  func.func @transform_13(%arg0: i32) -> (i32, i32, i32) {
    %c0_i32 = arith.constant 0 : i32
    %c0_i32_0 = arith.constant 0 : i32
    %c0_i32_1 = arith.constant 0 : i32
    %c0_i32_2 = arith.constant 0 : i32
    return %c0_i32, %c0_i32_0, %c0_i32_1 : i32, i32, i32
  }
  func.func @transform_14(%arg0: i32) -> (i32, i32, i32) {
    %c0_i32 = arith.constant 0 : i32
    %c0_i32_0 = arith.constant 0 : i32
    %c0_i32_1 = arith.constant 0 : i32
    %c0_i32_2 = arith.constant 0 : i32
    return %c0_i32, %c0_i32_0, %c0_i32_1 : i32, i32, i32
  }
  func.func @transform_15(%arg0: i32) -> (i32, i32, i32) {
    %c0_i32 = arith.constant 0 : i32
    %c0_i32_0 = arith.constant 0 : i32
    %c0_i32_1 = arith.constant 0 : i32
    return %arg0, %c0_i32, %c0_i32_0 : i32, i32, i32
  }
}

</mosaic_0001>

<bundles_post_ra>
// kernel: _lambda_.1
= control target key start
LH: loop header
LB: loop body
LE: loop exit
PB: predicated region body
PF: predicated region fallthrough
CT: control target
= control target key end

     0   :  { %s6017_s0 = inlined_call_operand.vmem [shape: s32[2,10,1], index: 0, kind: input, shape index: {}]   ;;  %s6018_s1 = inlined_call_operand.vmem [shape: f32[2,1,10], index: 1, kind: input, shape index: {}]   ;;  %s6019_s2 = inlined_call_operand.vmem [shape: f32[130,32], index: 2, kind: input, shape index: {}]   ;;  %s6020_s3 = inlined_call_operand.vmem [shape: f32[32,32], index: 3, kind: input, shape index: {}]   ;;  %s6021_s4 = inlined_call_operand.vmem [shape: f32[3,32], index: 4, kind: input, shape index: {}]   ;;  %s6022_s5 = inlined_call_operand.vmem [shape: f32[2,32,1536], index: 5, kind: input, shape index: {}]   ;;  %s6023_s6 = inlined_call_operand.vmem [shape: f32[2,1,1536], index: 6, kind: input, shape index: {}]   ;;  %s6024_s7 = inlined_call_operand.vmem [shape: f32[8,128,32], index: 7, kind: input, shape index: {}]   ;;  %s6025_s8 = inlined_call_operand.vmem [shape: f32[2,8,32], index: 8, kind: input, shape index: {}]   ;;  %s6026_s9 = inlined_call_operand.vmem [shape: f32[2,2,8], index: 9, kind: input, shape index: {}]   ;;  %s6027_s10 = inlined_call_operand.vmem [shape: f32[2,1,64], index: 10, kind: input, shape index: {}]   ;;  %s6028_s11 = inlined_call_operand.vmem [shape: f32[4,32,8], index: 11, kind: input, shape index: {}]   ;;  %s6029_s12 = inlined_call_operand.vmem [shape: f32[4,8,32], index: 12, kind: input, shape index: {}]   ;;  %s6030_s13 = inlined_call_operand.vmem [shape: f32[2,32,64], index: 13, kind: input, shape index: {}]   ;;  %s6031_s14 = inlined_call_operand.vmem [shape: f32[2,64,32], index: 14, kind: input, shape index: {}]   ;;  %s6032_s15 = inlined_call_operand.hbm [shape: f32[2,8,32], index: 15, kind: output, shape index: {}]  }
   0x1   :  { %6041 = sst [smem:[#allocation12_spill]] %s6017_s0 }
   0x2   :  { %20 = vsyncpa [#allocation3], 0 }
   0x3   :  { %22 = vsyncpa [#allocation3 + $0x1], 0  ;;  %s4421_s18 = smov 0   ;;  %s4423_s19 = smov 0  }
   0x4   :  { %s4425_s20 = smov 0   ;;  %s4427_s21 = smov 0  }
   0x5 LB: > { %6042 = sst [smem:[#allocation5_spill]] %s4322_s18  ;;  %s4442_s22 = sadd.s32 4294967295, %s4334_s21   ;;  %s4334_s21 = sphi %s4427_s21, %s6056_s21   ;;  %s4330_s20 = sphi %s4425_s20, %s6058_s20   ;;  %s4326_s19 = sphi %s4423_s19, %s6060_s19   ;;  %s4322_s18 = sphi %s4421_s18, %s6059_s18  }
   0x6   : > { %6043 = sst [smem:[#allocation6_spill]] %s4330_s20  ;;  %s3779_s23 = sadd.s32 4294967294, %s4334_s21  }
   0x7   : > { %6044 = sst [smem:[#allocation7_spill]] %s4334_s21  ;;  %s4446_s24 = sadd.s32 1, %s4334_s21  }
   0x8   : > { %6045 = sst [smem:[#allocation8_spill]] %s4446_s24  ;;  %s360_s25 = sadd.s32 1, %s4330_s20 }
   0x9   : > { %s357_s26 = ssub.s32 %s4334_s21, %s4446_s24  ;;  %p370_p0 = scmp.ne.s32.totalorder %s4330_s20, %s4326_s19 }
   0xa   : > { %p358_p1 = scmp.eq.s32.totalorder %s357_s26, 0  ;;  %p371_p2 = scmp.eq.s32.totalorder %s4442_s22, 1 }
   0xb   : > { %p376_p3 = scmp.ne.s32.totalorder %s4326_s19, %s4322_s18  ;;  %p377_p4 = scmp.eq.s32.totalorder %s3779_s23, 1 }
   0xc   : > { %s4457_s27 = scalar_select %p358_p1, %s4330_s20, %s360_s25  }
   0xd   : > { %p4459_p5 = por %p371_p2, %p370_p0  ;;  %p4463_p6 = por %p377_p4, %p376_p3 }
   0xe   : > { %6046 = sst [smem:[#allocation9_spill]] %s4457_s27  ;;  %p3782_p7 = scmp.ge.s32.totalorder %s4334_s21, 1 }
   0xf   : > { %s6047_s28 = scalar_select %p4459_p5, 1, 0 }
  0x10   : > { %s6049_s29 = scalar_select %p4463_p6, 1, 0 }
  0x11   : > { %6048 = sst [smem:[#allocation10_spill]] %s6047_s28  ;;  %p448_p8 = scmp.lt.s32.totalorder %s4334_s21, 3 }
  0x12   : > { %6050 = sst [smem:[#allocation11_spill]] %s6049_s29 }
  0x13   : > { %p449_p9 = pnand %p3782_p7, %p448_p8 }
  0x14   : > { %p499_p10 = scmp.lt.s32.totalorder (!%p449_p9), %s4442_s22, 1  ;;  %s6051_s0 = sld [smem:[#allocation12_spill]] (!%p449_p9) }
  0x15   : > { %452 = sbr.rel (%p449_p9) target bundleno = 5456 (0x1550), region = 80  ;;  %s4084_s29 = sshll.u32 (!%p449_p9), %s4442_s22, 3 }
  0x16   : > { %s3706_s28 = scalar_lea.hbm (!%p449_p9), %s6032_s15, %s4084_s29  ;;  %s4292_s29 = scalar_lea.hbm (!%p449_p9), %s6032_s15, 16 }
  0x17   : > { %s3710_s23 = sshll.u32 (!%p449_p9), %s3706_s28, 4  ;;  %s3711_s23 = int_to_ptr.hbm [resolvable:$true] %s3710_s23 }
  0x1a   : > { %v545_v0 = vld [vmem:[%s6019_s2 + $0x78] sm:$0xff]  ;;  %v544_v1 = vld [vmem:[%s6019_s2 + $0x70] sm:$0xff]  ;;  %v4336_v2 = vmov 0   ;;  %s500_s25 = scalar_select %p499_p10, %s4442_s22, 1  ;;  %v543_v3 = vld [vmem:[%s6019_s2 + $0x68] sm:$0xff]  ;;  %vm556_vm0 = vcmask 1041408   ;;  %v509_v20 = vlaneseq }
  0x1b   : > { %4132 = vset.pattern.permute.xlu0 %v4336_v2  ;;  %560 = vmatpush.msra.mxu0 %v545_v0  ;;  %v542_v4 = vld [vmem:[%s6019_s2 + $0x60] sm:$0xff]  ;;  %v541_v6 = vld [vmem:[%s6019_s2 + $0x58] sm:$0xff]  ;;  %v540_v7 = vld [vmem:[%s6019_s2 + $0x50] sm:$0xff]  ;;  %vm549_vm1 = vcmask 15360   ;;  %v4337_v24 = vmov 1.0   ;;  %v4338_v25 = vmov 0.0  }
  0x1c   : > { %s4087_s20 = sshll.u32 %s500_s25, 4  ;;  %s4483_s18 = scalar_lea.vmem %s6018_s1, %s500_s25  ;;  %v539_v8 = vld [vmem:[%s6019_s2 + $0x48] sm:$0xff]  ;;  %v538_v10 = vld [vmem:[%s6019_s2 + $0x40] sm:$0xff]  ;;  %v537_v11 = vld [vmem:[%s6019_s2 + $0x38] sm:$0xff]  ;;  %v510_v21 = vand.u32 127, %v509_v20  ;;  %vm610_vm6 = vcmask 261120  }
  0x1d   : > { %561 = vmatpush.msra.mxu0 %v544_v1  ;;  %s503_s21 = scalar_lea.vmem %s6051_s0, %s4087_s20  ;;  %v536_v12 = vld [vmem:[%s6019_s2 + $0x30] sm:$0xff]  ;;  %v535_v13 = vld [vmem:[%s6019_s2 + $0x28] sm:$0xff]  ;;  %v534_v14 = vld [vmem:[%s6019_s2 + $0x20] sm:$0xff]  ;;  %vm614_vm7 = vcmask 254976   ;;  %v4339_v49 = vmov 32.0   ;;  %vm1062_vm15 = vcmask 80896  }
  0x1e   : > { %v507_v5 = vld [vmem:[%s503_s21] sm:$0xff]  ;;  %v508_v9 = vld [vmem:[%s503_s21 + $0x8] sm:$0x3]  ;;  %v533_v15 = vld [vmem:[%s6019_s2 + $0x18] sm:$0xff]  ;;  %v511_v22 = vadd.s32 128, %v510_v21  ;;  %4136 = vrcp.f32 %v4339_v49  ;;  %s496_s21 = sand.u32 1, %s4326_s19  }
  0x1f   : > { %562 = vmatpush.msra.mxu0 %v543_v3  ;;  %513 = vperm.xlu0 %4132, %v507_v5   ;;  %v532_v16 = vld [vmem:[%s6019_s2 + $0x10] sm:$0xff]  ;;  %v531_v17 = vld [vmem:[%s6019_s2 + $0x8] sm:$0xff]  ;;  %v530_v18 = vld [vmem:[%s6019_s2] sm:$0xff]  ;;  %s3783_s24 = sshll.u32 %s496_s21, 3  ;;  %s3696_s22 = scalar_lea.sflag [#allocation3], %s496_s21 }
  0x20   : > { %v546_v19 = vld [vmem:[%s6019_s2 + $0x80] sm:$0x3]  ;;  %v548_v37 = vld [vmem:[%s6020_s3 + $0x8] sm:$0xff]  ;;  %v716_v58 = vld [vmem:[%s6022_s5 + $0x130] sm:$0xff]  ;;  %s498_s25 = scalar_lea.vmem [#allocation2], %s3783_s24 }
  0x21   : > { %563 = vmatpush.msra.mxu0 %v542_v4  ;;  %3792 = vmatpush.msk.msra.mxu1 %vm556_vm0, %v546_v19  ;;  %v547_v29 = vld [vmem:[%s6020_s3] sm:$0xff]  ;;  %v715_v57 = vld [vmem:[%s6022_s5 + $0x128] sm:$0xff]  ;;  %v704_v63 = vld [vmem:[%s6022_s5 + $0xd0] sm:$0xff]  ;;  %s3708_s17 = sshll.u32 %s498_s25, 4  ;;  %s3709_s17 = int_to_ptr.vmem [resolvable:$true] %s3708_s17 }
  0x22   : > { %v4537_v30 = vld [vmem:[%s6021_s4] sm:$0x7]  ;;  %795 = vmatpush.msra.mxu3 %v715_v57  ;;  %v703_v62 = vld [vmem:[%s6022_s5 + $0xc8] sm:$0xff]  ;;  %v692_v4 = vld [vmem:[%s6022_s5 + $0x70] sm:$0xff] }
  0x23   : > { %564 = vmatpush.msra.mxu0 %v541_v6  ;;  %v607_v34 = vperm.slane %v4537_v30, 0  ;;  %v714_v56 = vld [vmem:[%s6022_s5 + $0x120] sm:$0xff]  ;;  %818 = vmatpush.msrb.mxu1 %v716_v58  ;;  %v691_v3 = vld [vmem:[%s6022_s5 + $0x68] sm:$0xff]  ;;  %v720_v58 = vld [vmem:[%s6022_s5 + $0x150] sm:$0xff] }
  0x24   : > { %v4137_v50 = vpop.eup %4136  ;;  %772 = vmatpush.msra.mxu2 %v714_v56  ;;  %v722_v60 = vld [vmem:[%s6022_s5 + $0x160] sm:$0xff]  ;;  %796 = vmatpush.msra.mxu3 %v703_v62  ;;  %v709_v62 = vld [vmem:[%s6022_s5 + $0xf8] sm:$0xff] }
  0x25   : > { %565 = vmatpush.msra.mxu0 %v540_v7  ;;  %v619_v51 = vmul.f32 32.0, %v4137_v50  ;;  %vm623_vm8 = vweird.f32 %v4137_v50  ;;  %v702_v61 = vld [vmem:[%s6022_s5 + $0xc0] sm:$0xff]  ;;  %819 = vmatpush.msrb.mxu1 %v704_v63  ;;  %v679_v7 = vld [vmem:[%s6022_s5 + $0x8] sm:$0xff] }
  0x26   : > { %773 = vmatpush.msra.mxu2 %v702_v61  ;;  %v710_v0 = vld [vmem:[%s6022_s5 + $0x100] sm:$0xff]  ;;  %797 = vmatpush.msra.mxu3 %v691_v3 }
  0x27   : > { %566 = vmatpush.msra.mxu0 %v539_v8  ;;  %516 = vperm.xlu0 %4132, %v508_v9   ;;  %v620_v52 = vsub.f32 1.0, %v619_v51  ;;  %v690_v2 = vld [vmem:[%s6022_s5 + $0x60] sm:$0xff]  ;;  %v680_v8 = vld [vmem:[%s6022_s5 + $0x10] sm:$0xff]  ;;  %v672_v51 = vperm.slane %v4537_v30, 2 }
  0x28   : > { %774 = vmatpush.msra.mxu2 %v690_v2  ;;  %v698_v5 = vld [vmem:[%s6022_s5 + $0xa0] sm:$0xff]  ;;  %820 = vmatpush.msrb.mxu1 %v692_v4  ;;  %v697_v2 = vld [vmem:[%s6022_s5 + $0x98] sm:$0xff]  ;;  %v699_v4 = vld [vmem:[%s6022_s5 + $0xa8] sm:$0xff] }
  0x29   : > { %567 = vmatpush.msra.mxu0 %v538_v10  ;;  %v621_v53 = vmul.f32 %v4137_v50, %v620_v52  ;;  %v678_v6 = vld [vmem:[%s6022_s5] sm:$0xff]  ;;  %798 = vmatpush.msra.mxu3 %v679_v7  ;;  %v685_v7 = vld [vmem:[%s6022_s5 + $0x38] sm:$0xff] }
  0x2a   : > { %775 = vmatpush.msra.mxu2 %v678_v6  ;;  %821 = vmatpush.msrb.mxu1 %v680_v8  ;;  %v684_v6 = vld [vmem:[%s6022_s5 + $0x30] sm:$0xff]  ;;  %v687_v8 = vld [vmem:[%s6022_s5 + $0x48] sm:$0xff] }
  0x2b   : > { %568 = vmatpush.msra.mxu0 %v537_v11  ;;  %v622_v54 = vadd.f32 %v4137_v50, %v621_v53  ;;  %v686_v11 = vld [vmem:[%s6022_s5 + $0x40] sm:$0xff] }
  0x2d   : > { %569 = vmatpush.msra.mxu0 %v536_v12  ;;  %v4566_v59 = vsel %vm623_vm8, %v4137_v50, %v622_v54 }
  0x2f   : > { %570 = vmatpush.msra.mxu0 %v535_v13 }
  0x31   : > { %571 = vmatpush.msra.mxu0 %v534_v14 }
  0x33   : > { %572 = vmatpush.msra.mxu0 %v533_v15 }
  0x35   : > { %573 = vmatpush.msra.mxu0 %v532_v16 }
  0x37   : > { %574 = vmatpush.msra.mxu0 %v531_v17 }
  0x39   : > { %575 = vmatpush.msra.mxu0 %v530_v18 }
  0x3b   : > { %956 = vmatpush.msrb.mxu0 %v722_v60  ;;  %v723_v60 = vld [vmem:[%s6022_s5 + $0x168] sm:$0xff] }
  0x3d   : > { %957 = vmatpush.msrb.mxu0 %v710_v0  ;;  %v711_v0 = vld [vmem:[%s6022_s5 + $0x108] sm:$0xff] }
  0x3f   : > { %958 = vmatpush.msrb.mxu0 %v698_v5 }
  0x41   : > { %959 = vmatpush.msrb.mxu0 %v686_v11  ;;  %v712_v11 = vld [vmem:[%s6022_s5 + $0x110] sm:$0xff] }
  0x91   : > { %v514_v23 = vpop.permute.xlu0 %513 }
  0x92   : > { %vm519_vm2 = vcmp.eq.s32.totalorder %v514_v23, %v511_v22  ;;  %vm518_vm3 = vcmp.eq.s32.totalorder %v514_v23, %v510_v21  ;;  %v719_v23 = vld [vmem:[%s6022_s5 + $0x148] sm:$0xff] }
  0x93   : > { %3790 = vmatmul.msk.f32.vlgmr.msra.gmra.mxu0 %vm518_vm3, %v4337_v24  ;;  %v3787_v26 = vsel %vm519_vm2, 1.0, %v4338_v25 }
  0x94   : > { %3793 = vmatmul.msk.f32.vlgmr.msra.gmra.mxu1 %vm549_vm1, %v3787_v26  ;;  %v706_v26 = vld [vmem:[%s6022_s5 + $0xe0] sm:$0xff] }
  0x95   : > { %887 = vmatpush.msra.mxu1 %v719_v23 }
  0x99   : > { %v517_v27 = vpop.permute.xlu0 %516 }
  0x9a   : > { %vm521_vm4 = vcmp.eq.s32.totalorder %v517_v27, %v511_v22  ;;  %vm520_vm5 = vcmp.eq.s32.totalorder %v517_v27, %v510_v21  ;;  %v717_v21 = vld [vmem:[%s6022_s5 + $0x138] sm:$0xff]  ;;  %v718_v22 = vld [vmem:[%s6022_s5 + $0x140] sm:$0xff]  ;;  %v707_v27 = vld [vmem:[%s6022_s5 + $0xe8] sm:$0xff] }
  0x9b   : > { %3791 = vmatmul.msk.f32.gmra.mxu0 %vm520_vm5, %v4337_v24  ;;  %v3789_v28 = vsel %vm521_vm4, 1.0, %v4338_v25  ;;  %841 = vmatpush.msrb.mxu2 %v717_v21  ;;  %v705_v25 = vld [vmem:[%s6022_s5 + $0xd8] sm:$0xff] }
  0x9c   : > { %3794 = vmatmul.msk.f32.gmra.mxu1 %vm549_vm1, %v3789_v28  ;;  %864 = vmatpush.msrb.mxu3 %v718_v22  ;;  %v693_v28 = vld [vmem:[%s6022_s5 + $0x78] sm:$0xff]  ;;  %vm1066_vm1 = vcmask 74752  }
  0x9d   : > { %842 = vmatpush.msrb.mxu2 %v705_v25  ;;  %888 = vmatpush.msra.mxu1 %v707_v27 }
  0x9e   : > { %865 = vmatpush.msrb.mxu3 %v706_v26 }
  0x9f   : > { %843 = vmatpush.msrb.mxu2 %v693_v28 }
 0x110   : > { %v577_v31 = vpop.f32.mrf.mxu0 }
 0x111   : > { %v578_v32 = vadd.f32 %v577_v31, %v547_v29  ;;  %v600_v33 = vpop.f32.mrf.mxu1  ;;  %v694_v29 = vld [vmem:[%s6022_s5 + $0x80] sm:$0xff] }
 0x112   : > { %866 = vmatpush.msrb.mxu3 %v694_v29 }
 0x113   : > { %v601_v35 = vadd.f32 %v600_v33, %v578_v32  ;;  %v695_v32 = vld [vmem:[%s6022_s5 + $0x88] sm:$0xff]  ;;  %v681_v33 = vld [vmem:[%s6022_s5 + $0x18] sm:$0xff] }
 0x114   : > { %889 = vmatpush.msra.mxu1 %v695_v32  ;;  %844 = vmatpush.msrb.mxu2 %v681_v33 }
 0x115   : > { %v4540_v36 = vadd.f32 %v607_v34, %v601_v35 }
 0x117   : > { %v611_v38 = vsel %vm610_vm6, %v4540_v36, 0.0  ;;  %v627_v43 = vmul.f32 %v4540_v36, %v4540_v36 }
 0x118   : > { %612 = vadd.xlane.f32.xlu1 %v611_v38  ;;  %v580_v39 = vpop.f32.mrf.mxu0  ;;  %v683_v38 = vld [vmem:[%s6022_s5 + $0x28] sm:$0xff] }
 0x119   : > { %v581_v40 = vadd.f32 %v580_v39, %v548_v37  ;;  %v603_v41 = vpop.f32.mrf.mxu1  ;;  %v629_v45 = vsel %vm610_vm6, %v627_v43, 0.0  ;;  %890 = vmatpush.msra.mxu1 %v683_v38  ;;  %v3839_v38 = vld [vmem:[%s6024_s7 + $0xf0] sm:$0xff] }
 0x11b   : > { %v604_v42 = vadd.f32 %v603_v41, %v581_v40 }
 0x11d   : > { %v4549_v44 = vadd.f32 %v607_v34, %v604_v42  ;;  %v682_v34 = vld [vmem:[%s6022_s5 + $0x20] sm:$0xff] }
 0x11e   : > { %867 = vmatpush.msrb.mxu3 %v682_v34  ;;  %v3840_v34 = vld [vmem:[%s6024_s7 + $0xf8] sm:$0xff] }
 0x11f   : > { %v615_v46 = vsel %vm614_vm7, %v4549_v44, 0.0  ;;  %v628_v47 = vmul.f32 %v4549_v44, %v4549_v44 }
 0x120   : > { %630 = vadd.xlane.f32.xlu1 %v629_v45  ;;  %616 = vadd.xlane.f32.xlu2 %v615_v46 }
 0x121   : > { %v632_v48 = vsel %vm614_vm7, %v628_v47, 0.0  ;;  %v669_v47 = vperm.slane %v4537_v30, 1 }
 0x128   : > { %633 = vadd.xlane.f32.xlu2 %v632_v48 }
 0x18b   : > { %v613_v55 = vpop.xlane.xlu1 %612 }
 0x18c   : > { %v4584_v1 = vmul.f32 %v4566_v59, %v613_v55 }
 0x18e   : > { %v637_v12 = vmul.f32 %v4584_v1, %v4584_v1  ;;  %v643_v48 = vsub.f32 %v4540_v36, %v4584_v1  ;;  %v721_v36 = vld [vmem:[%s6022_s5 + $0x158] sm:$0xff]  ;;  %v696_v1 = vld [vmem:[%s6022_s5 + $0x90] sm:$0xff] }
 0x193   : > { %v631_v9 = vpop.xlane.xlu1 %630  ;;  %v617_v10 = vpop.xlane.xlu2 %616 }
 0x194   : > { %v635_v13 = vmul.f32 %v631_v9, %v4566_v59  ;;  %v4614_v16 = vmul.f32 %v4566_v59, %v617_v10  ;;  %v724_v9 = vld [vmem:[%s6022_s5 + $0x170] sm:$0xff]  ;;  %v725_v10 = vld [vmem:[%s6022_s5 + $0x178] sm:$0xff] }
 0x196   : > { %v639_v14 = vsub.f32 %v635_v13, %v637_v12  ;;  %v638_v19 = vmul.f32 %v4614_v16, %v4614_v16  ;;  %v644_v30 = vsub.f32 %v4549_v44, %v4614_v16  ;;  %v708_v44 = vld [vmem:[%s6022_s5 + $0xf0] sm:$0xff]  ;;  %v713_v12 = vld [vmem:[%s6022_s5 + $0x118] sm:$0xff] }
 0x197   : > { %v700_v13 = vld [vmem:[%s6022_s5 + $0xb0] sm:$0xff]  ;;  %v689_v16 = vld [vmem:[%s6022_s5 + $0x58] sm:$0xff] }
 0x198   : > { %v641_v15 = vmax.f32 %v639_v14, 0.0  ;;  %v701_v14 = vld [vmem:[%s6022_s5 + $0xb8] sm:$0xff] }
 0x19a   : > { %v645_v17 = vadd.f32 1e-12, %v641_v15  ;;  %v688_v15 = vld [vmem:[%s6022_s5 + $0x50] sm:$0xff] }
 0x19b   : > { %v634_v18 = vpop.xlane.xlu2 %633 }
 0x19c   : > { %4138 = vrsqrt.f32 %v645_v17  ;;  %v636_v20 = vmul.f32 %v634_v18, %v4566_v59  ;;  %vm653_vm10 = vweird.f32 %v645_v17  ;;  %v4776_v18 = vld [vmem:[%s6023_s6] sm:$0xff] }
 0x19d   : > { %v731_v25 = vperm.slane %v4776_v18, 1 }
 0x19e   : > { %v640_v24 = vsub.f32 %v636_v20, %v638_v19  ;;  %v732_v20 = vperm.slane %v4776_v18, 2 }
 0x1a0   : > { %v642_v31 = vmax.f32 %v640_v24, 0.0 }
 0x1a2   : > { %v4139_v35 = vpop.eup %4138  ;;  %v646_v37 = vadd.f32 1e-12, %v642_v31  ;;  %v730_v31 = vperm.slane %v4776_v18, 0 }
 0x1a3   : > { %v648_v39 = vmul.f32 %v4139_v35, %v645_v17  ;;  %vm654_vm9 = vweird.f32 %v4139_v35 }
 0x1a4   : > { %4140 = vrsqrt.f32 %v646_v37  ;;  %vm655_vm11 = vmor %vm653_vm10, %vm654_vm9  ;;  %vm663_vm13 = vweird.f32 %v646_v37 }
 0x1a5   : > { %v649_v40 = vmul.f32 %v4139_v35, %v648_v39  ;;  %v4791_v39 = vld [vmem:[%s6023_s6 + $0x8] sm:$0xf] }
 0x1a7   : > { %v650_v41 = vmul.f32 0.5, %v649_v40  ;;  %v735_v40 = vperm.slane %v4776_v18, 5 }
 0x1a9   : > { %v651_v42 = vsub.f32 1.5, %v650_v41  ;;  %v3838_v41 = vld [vmem:[%s6024_s7 + $0xe8] sm:$0xff] }
 0x1aa   : > { %v4141_v43 = vpop.eup %4140 }
 0x1ab   : > { %v652_v45 = vmul.f32 %v4139_v35, %v651_v42  ;;  %v658_v46 = vmul.f32 %v4141_v43, %v646_v37  ;;  %vm664_vm12 = vweird.f32 %v4141_v43 }
 0x1ac   : > { %vm665_vm14 = vmor %vm663_vm13, %vm664_vm12 }
 0x1ad   : > { %v656_v49 = vsel %vm655_vm11, %v4139_v35, %v652_v45  ;;  %v659_v50 = vmul.f32 %v4141_v43, %v658_v46  ;;  %v3837_v46 = vld [vmem:[%s6024_s7 + $0xe0] sm:$0xff] }
 0x1ae   : > { %v667_v52 = vmul.f32 %v656_v49, %v643_v48  ;;  %v3836_v49 = vld [vmem:[%s6024_s7 + $0xd8] sm:$0xff] }
 0x1af   : > { %v660_v53 = vmul.f32 0.5, %v659_v50 }
 0x1b0   : > { %v670_v54 = vmul.f32 %v669_v47, %v667_v52  ;;  %v734_v52 = vperm.slane %v4776_v18, 4 }
 0x1b1   : > { %v661_v55 = vsub.f32 1.5, %v660_v53 }
 0x1b2   : > { %v4659_v56 = vadd.f32 %v672_v51, %v670_v54 }
 0x1b3   : > { %v662_v57 = vmul.f32 %v4141_v43, %v661_v55 }
 0x1b4   : > { %3795 = vmatmul.msk.f32.vlgmr.msra.gmra.mxu2 %vm610_vm6, %v4659_v56  ;;  %3797 = vmatmul.msk.f32.vlgmr.msra.gmra.mxu3 %vm610_vm6, %v4659_v56 }
 0x1b5   : > { %v666_v61 = vsel %vm665_vm14, %v4141_v43, %v662_v57  ;;  %3799 = vmatmul.msk.f32.vlgmr.msrb.gmra.mxu1 %vm610_vm6, %v4659_v56  ;;  %3811 = vmatmul.msk.f32.vlgmr.msrb.gmra.mxu0 %vm610_vm6, %v4659_v56 }
 0x1b6   : > { %v668_v63 = vmul.f32 %v666_v61, %v644_v30  ;;  %910 = vmatpush.msra.mxu2 %v720_v58  ;;  %933 = vmatpush.msra.mxu3 %v721_v36  ;;  %v3835_v58 = vld [vmem:[%s6024_s7 + $0xd0] sm:$0xff]  ;;  %v3834_v36 = vld [vmem:[%s6024_s7 + $0xc8] sm:$0xff]  ;;  %v733_v30 = vperm.slane %v4776_v18, 3  ;;  %v3833_v61 = vld [vmem:[%s6024_s7 + $0xc0] sm:$0xff] }
 0x1b7   : > { %979 = vmatpush.msrb.mxu1 %v723_v60 }
 0x1b8   : > { %v671_v3 = vmul.f32 %v669_v47, %v668_v63  ;;  %911 = vmatpush.msra.mxu2 %v708_v44  ;;  %934 = vmatpush.msra.mxu3 %v709_v62  ;;  %v738_v47 = vperm.slane %v4791_v39, 0  ;;  %v3832_v44 = vld [vmem:[%s6024_s7 + $0xb8] sm:$0xff] }
 0x1b9   : > { %980 = vmatpush.msrb.mxu1 %v711_v0 }
 0x1ba   : > { %v4698_v5 = vadd.f32 %v672_v51, %v671_v3  ;;  %912 = vmatpush.msra.mxu2 %v696_v1  ;;  %935 = vmatpush.msra.mxu3 %v697_v2  ;;  %v3831_v1 = vld [vmem:[%s6024_s7 + $0xb0] sm:$0xff]  ;;  %v3830_v2 = vld [vmem:[%s6024_s7 + $0xa8] sm:$0xff]  ;;  %v3829_v3 = vld [vmem:[%s6024_s7 + $0xa0] sm:$0xff] }
 0x1bb   : > { %981 = vmatpush.msrb.mxu1 %v699_v4  ;;  %v737_v4 = vperm.slane %v4776_v18, 7 }
 0x1bc   : > { %3796 = vmatmul.msk.f32.gmra.mxu2 %vm610_vm6, %v4698_v5  ;;  %3798 = vmatmul.msk.f32.gmra.mxu3 %vm610_vm6, %v4698_v5 }
 0x1bd   : > { %3800 = vmatmul.msk.f32.gmra.mxu1 %vm610_vm6, %v4698_v5  ;;  %3812 = vmatmul.msk.f32.gmra.mxu0 %vm610_vm6, %v4698_v5 }
 0x1be   : > { %913 = vmatpush.msra.mxu2 %v684_v6  ;;  %936 = vmatpush.msra.mxu3 %v685_v7  ;;  %v3828_v6 = vld [vmem:[%s6024_s7 + $0x98] sm:$0xff] }
 0x1bf   : > { %982 = vmatpush.msrb.mxu1 %v687_v8 }
 0x1c4   : > { %3801 = vmatmul.msk.f32.vlgmr.msrb.gmra.mxu2 %vm610_vm6, %v4659_v56  ;;  %3803 = vmatmul.msk.f32.vlgmr.msrb.gmra.mxu3 %vm610_vm6, %v4659_v56 }
 0x1c5   : > { %3805 = vmatmul.msk.f32.vlgmr.msra.gmra.mxu1 %vm610_vm6, %v4659_v56  ;;  %1002 = vmatpush.msrb.mxu2 %v724_v9 }
 0x1c6   : > { %1025 = vmatpush.msrb.mxu3 %v725_v10  ;;  %v3827_v10 = vld [vmem:[%s6024_s7 + $0x90] sm:$0xff] }
 0x1c7   : > { %1003 = vmatpush.msrb.mxu2 %v712_v11 }
 0x1c8   : > { %1026 = vmatpush.msrb.mxu3 %v713_v12  ;;  %v3826_v12 = vld [vmem:[%s6024_s7 + $0x88] sm:$0xff] }
 0x1c9   : > { %1004 = vmatpush.msrb.mxu2 %v700_v13  ;;  %v736_v13 = vperm.slane %v4776_v18, 6 }
 0x1ca   : > { %1027 = vmatpush.msrb.mxu3 %v701_v14 }
 0x1cb   : > { %1005 = vmatpush.msrb.mxu2 %v688_v15  ;;  %v3825_v15 = vld [vmem:[%s6024_s7 + $0x80] sm:$0xff] }
 0x1cc   : > { %3802 = vmatmul.msk.f32.gmra.mxu2 %vm610_vm6, %v4698_v5  ;;  %3804 = vmatmul.msk.f32.gmra.mxu3 %vm610_vm6, %v4698_v5 }
 0x1cd   : > { %3806 = vmatmul.msk.f32.gmra.mxu1 %vm610_vm6, %v4698_v5  ;;  %1028 = vmatpush.msrb.mxu3 %v689_v16 }
 0x1d4   : > { %3807 = vmatmul.msk.f32.vlgmr.msra.gmra.mxu2 %vm610_vm6, %v4659_v56  ;;  %3809 = vmatmul.msk.f32.vlgmr.msra.gmra.mxu3 %vm610_vm6, %v4659_v56 }
 0x1d5   : > { %3813 = vmatmul.msk.f32.vlgmr.msrb.gmra.mxu1 %vm610_vm6, %v4659_v56 }
 0x1dc   : > { %3808 = vmatmul.msk.f32.gmra.mxu2 %vm610_vm6, %v4698_v5  ;;  %3810 = vmatmul.msk.f32.gmra.mxu3 %vm610_vm6, %v4698_v5 }
 0x1dd   : > { %3814 = vmatmul.msk.f32.gmra.mxu1 %vm610_vm6, %v4698_v5 }
 0x1e4   : > { %3815 = vmatmul.msk.f32.vlgmr.msrb.gmra.mxu2 %vm610_vm6, %v4659_v56  ;;  %3817 = vmatmul.msk.f32.vlgmr.msrb.gmra.mxu3 %vm610_vm6, %v4659_v56 }
 0x1ec   : > { %3816 = vmatmul.msk.f32.gmra.mxu2 %vm610_vm6, %v4698_v5  ;;  %3818 = vmatmul.msk.f32.gmra.mxu3 %vm610_vm6, %v4698_v5 }
 0x232   : > { %v823_v17 = vpop.f32.mrf.mxu1  ;;  %v961_v28 = vpop.f32.mrf.mxu0 }
 0x233   : > { %v824_v24 = vadd.f32 %v823_v17, %v732_v20  ;;  %v962_v55 = vadd.f32 %v961_v28, %v738_v47 }
 0x237   : > { %v800_v19 = vpop.f32.mrf.mxu3  ;;  %v777_v21 = vpop.f32.mrf.mxu2 }
 0x238   : > { %v801_v32 = vadd.f32 %v800_v19, %v731_v25  ;;  %v778_v35 = vadd.f32 %v777_v21, %v730_v31 }
 0x23a   : > { %v826_v22 = vpop.f32.mrf.mxu1  ;;  %v964_v43 = vpop.f32.mrf.mxu0 }
 0x23b   : > { %v827_v23 = vadd.f32 %v826_v22, %v732_v20  ;;  %v965_v50 = vadd.f32 %v964_v43, %v738_v47  ;;  %v741_v20 = vperm.slane %v4791_v39, 3 }
 0x23d   : > { %3819 = vmatpush.msk.msra.mxu1 %vm556_vm0, %v827_v23 }
 0x23f   : > { %1136 = vmatpush.msra.mxu1 %v824_v24  ;;  %v803_v26 = vpop.f32.mrf.mxu3  ;;  %v780_v33 = vpop.f32.mrf.mxu2 }
 0x240   : > { %v804_v27 = vadd.f32 %v803_v26, %v731_v25  ;;  %v781_v54 = vadd.f32 %v780_v33, %v730_v31  ;;  %v4850_v26 = vld [vmem:[%s4483_s18] ss:$0 sm:$0xff] }
 0x242   : > { %v892_v29 = vpop.f32.mrf.mxu1  ;;  %1053 = vmatpush.xpose.msra.mxu0 %v804_v27 }
 0x243   : > { %v893_v48 = vadd.f32 %v892_v29, %v735_v40 }
 0x246   : > { %1054 = vmatpush.xpose.msra.mxu0 %v801_v32 }
 0x247   : > { %v869_v37 = vpop.f32.mrf.mxu3  ;;  %v846_v51 = vpop.f32.mrf.mxu2 }
 0x248   : > { %v870_v60 = vadd.f32 %v869_v37, %v734_v52  ;;  %v847_v62 = vadd.f32 %v846_v51, %v733_v30 }
 0x249   : > { %1055 = vmatmul.f32.vlgmr.msra.gmra.mxu0 %v778_v35 }
 0x24a   : > { %1280 = vmatpush.msrb.mxu0 %v3840_v34  ;;  %v895_v42 = vpop.f32.mrf.mxu1 }
 0x24b   : > { %v896_v45 = vadd.f32 %v895_v42, %v735_v40 }
 0x24c   : > { %1281 = vmatpush.msrb.mxu0 %v3839_v38 }
 0x24d   : > { %3822 = vmatpush.msk.msra.mxu3 %vm556_vm0, %v896_v45 }
 0x24e   : > { %1282 = vmatpush.msrb.mxu0 %v3838_v41 }
 0x24f   : > { %1255 = vmatpush.msra.mxu3 %v893_v48  ;;  %v872_v53 = vpop.f32.mrf.mxu3  ;;  %v849_v0 = vpop.f32.mrf.mxu2 }
 0x250   : > { %1283 = vmatpush.msrb.mxu0 %v3837_v46  ;;  %v873_v57 = vadd.f32 %v872_v53, %v734_v52  ;;  %v850_v8 = vadd.f32 %v849_v0, %v733_v30 }
 0x251   : > { %3841 = vmatpush.msk.msrb.mxu3 %vm556_vm0, %v965_v50  ;;  %1058 = vmatmul.f32.gmra.mxu0 %v781_v54 }
 0x252   : > { %1284 = vmatpush.msrb.mxu0 %v3836_v49  ;;  %1174 = vmatpush.xpose.msra.mxu2 %v873_v57 }
 0x253   : > { %1421 = vmatpush.msrb.mxu3 %v962_v55 }
 0x254   : > { %1285 = vmatpush.msrb.mxu0 %v3835_v58 }
 0x256   : > { %1286 = vmatpush.msrb.mxu0 %v3834_v36  ;;  %1175 = vmatpush.xpose.msra.mxu2 %v870_v60 }
 0x257   : > { %v938_v63 = vpop.f32.mrf.mxu3  ;;  %v915_v11 = vpop.f32.mrf.mxu2 }
 0x258   : > { %1287 = vmatpush.msrb.mxu0 %v3833_v61  ;;  %v939_v14 = vadd.f32 %v938_v63, %v737_v4  ;;  %v916_v16 = vadd.f32 %v915_v11, %v736_v13 }
 0x259   : > { %1176 = vmatmul.f32.vlgmr.msra.gmra.mxu2 %v847_v62 }
 0x25a   : > { %1288 = vmatpush.msrb.mxu0 %v3832_v44 }
 0x25c   : > { %1289 = vmatpush.msrb.mxu0 %v3831_v1 }
 0x25e   : > { %1290 = vmatpush.msrb.mxu0 %v3830_v2 }
 0x25f   : > { %v941_v7 = vpop.f32.mrf.mxu3  ;;  %v918_v19 = vpop.f32.mrf.mxu2 }
 0x260   : > { %1291 = vmatpush.msrb.mxu0 %v3829_v3  ;;  %v942_v9 = vadd.f32 %v941_v7, %v737_v4  ;;  %v919_v22 = vadd.f32 %v918_v19, %v736_v13 }
 0x261   : > { %1179 = vmatmul.f32.gmra.mxu2 %v850_v8 }
 0x262   : > { %1292 = vmatpush.msrb.mxu0 %v3828_v6  ;;  %1340 = vmatpush.xpose.msrb.mxu2 %v942_v9 }
 0x264   : > { %1293 = vmatpush.msrb.mxu0 %v3827_v10 }
 0x266   : > { %1294 = vmatpush.msrb.mxu0 %v3826_v12  ;;  %1341 = vmatpush.xpose.msrb.mxu2 %v939_v14 }
 0x267   : > { %v1030_v17 = vpop.f32.mrf.mxu3  ;;  %v4845_v24 = vpop.f32.mrf.mxu2 }
 0x268   : > { %1295 = vmatpush.msrb.mxu0 %v3825_v15  ;;  %v1031_v18 = vadd.f32 %v1030_v17, %v741_v20 }
 0x269   : > { %1342 = vmatmul.f32.vlgmr.msrb.gmra.mxu2 %v916_v16 }
 0x26f   : > { %v1033_v21 = vpop.f32.mrf.mxu3  ;;  %v4847_v25 = vpop.f32.mrf.mxu2 }
 0x270   : > { %v1034_v23 = vadd.f32 %v1033_v21, %v741_v20  ;;  %v740_v20 = vperm.slane %v4791_v39, 2 }
 0x271   : > { %1345 = vmatmul.f32.gmra.mxu2 %v919_v22 }
 0x272   : > { %3860 = vmatpush.msk.msra.mxu0 %vm556_vm0, %v1034_v23 }
 0x274   : > { %1566 = vmatpush.msra.mxu0 %v1031_v18  ;;  %v1011_v18 = vadd.f32 %v4847_v25, %v740_v20 }
 0x2c6   : > { %v1056_v30 = vpop.f32.mrf.mxu0 }
 0x2c7   : > { %v4870_v44 = vadd.f32 %v4850_v26, %v1056_v30 }
 0x2c9   : > { %v1063_v0 = vsel %vm1062_vm15, %v4870_v44, -inf }
 0x2ce   : > { %v1059_v1 = vpop.f32.mrf.mxu0 }
 0x2cf   : > { %v4879_v2 = vadd.f32 %v4850_v26, %v1059_v1 }
 0x2d1   : > { %v1067_v3 = vsel %vm1066_vm1, %v4879_v2, -inf }
 0x2dc   : > { %v1177_v27 = vpop.f32.mrf.mxu2 }
 0x2dd   : > { %v1178_v28 = vadd.f32 %v4850_v26, %v1177_v27 }
 0x2df   : > { %v1183_v29 = vsel %vm1062_vm15, %v1178_v28, -inf }
 0x2e0   : > { %1184 = vmax.xlane.f32.xlu0 %v1183_v29 }
 0x2e4   : > { %v1180_v31 = vpop.f32.mrf.mxu2 }
 0x2e5   : > { %v1181_v32 = vadd.f32 %v4850_v26, %v1180_v31 }
 0x2e7   : > { %v1186_v33 = vsel %vm1066_vm1, %v1181_v32, -inf }
 0x2e8   : > { %1187 = vmax.xlane.f32.xlu1 %v1186_v33  ;;  %v1008_v33 = vadd.f32 %v4845_v24, %v740_v20  ;;  %v3859_v24 = vld [vmem:[%s6024_s7 + $0x178] sm:$0xff] }
 0x2e9   : > { %1446 = vmatpush.msra.mxu2 %v3859_v24  ;;  %v3847_v20 = vld [vmem:[%s6024_s7 + $0x118] sm:$0xff] }
 0x2ec   : > { %v1343_v34 = vpop.f32.mrf.mxu2 }
 0x2ed   : > { %v1344_v35 = vadd.f32 %v4850_v26, %v1343_v34 }
 0x2ef   : > { %v1349_v37 = vsel %vm1062_vm15, %v1344_v35, -inf }
 0x2f0   : > { %1350 = vmax.xlane.f32.xlu2 %v1349_v37 }
 0x2f4   : > { %v1346_v38 = vpop.f32.mrf.mxu2 }
 0x2f5   : > { %v1347_v40 = vadd.f32 %v4850_v26, %v1346_v38 }
 0x2f7   : > { %v1352_v41 = vsel %vm1066_vm1, %v1347_v40, -inf }
 0x2f8   : > { %1353 = vmax.xlane.f32.xlu1 %v1352_v41 }
 0x353   : > { %v1185_v42 = vpop.xlane.xlu0 %1184 }
 0x354   : > { %v1189_v43 = vsub.f32 %v1178_v28, %v1185_v42 }
 0x356   : > { %v1191_v45 = vmul.f32 1.442695, %v1189_v43 }
 0x358   : > { %4142 = vpow2.f32 %v1191_v45 }
 0x35b   : > { %v1188_v46 = vpop.xlane.xlu1 %1187 }
 0x35c   : > { %v1190_v47 = vsub.f32 %v1181_v32, %v1188_v46  ;;  %v3858_v46 = vld [vmem:[%s6024_s7 + $0x170] sm:$0xff] }
 0x35d   : > { %1447 = vmatpush.msra.mxu2 %v3858_v46  ;;  %v1159_v46 = vld [vmem:[%s6024_s7 + $0x78] sm:$0xff] }
 0x35e   : > { %v4143_v48 = vpop.eup %4142  ;;  %v1193_v49 = vmul.f32 1.442695, %v1190_v47  ;;  %1303 = vmatpush.msrb.mxu1 %v1159_v46 }
 0x35f   : > { %v1195_v50 = vsel %vm1062_vm15, %v4143_v48, 0.0 }
 0x360   : > { %4144 = vpow2.f32 %v1193_v49  ;;  %1196 = vadd.xlane.f32.xlu2 %v1195_v50  ;;  %v3857_v50 = vld [vmem:[%s6024_s7 + $0x168] sm:$0xff] }
 0x361   : > { %1448 = vmatpush.msra.mxu2 %v3857_v50 }
 0x363   : > { %v1351_v51 = vpop.xlane.xlu2 %1350 }
 0x364   : > { %v1355_v52 = vsub.f32 %v1344_v35, %v1351_v51 }
 0x366   : > { %v4861_v53 = vpop.eup %4144  ;;  %v1357_v54 = vmul.f32 1.442695, %v1355_v52 }
 0x367   : > { %v1198_v55 = vsel %vm1066_vm1, %v4861_v53, 0.0 }
 0x368   : > { %4146 = vpow2.f32 %v1357_v54  ;;  %1199 = vadd.xlane.f32.xlu1 %v1198_v55 }
 0x36b   : > { %v1354_v57 = vpop.xlane.xlu1 %1353 }
 0x36c   : > { %v1356_v58 = vsub.f32 %v1347_v40, %v1354_v57  ;;  %v3856_v57 = vld [vmem:[%s6024_s7 + $0x160] sm:$0xff] }
 0x36d   : > { %1449 = vmatpush.msra.mxu2 %v3856_v57 }
 0x36e   : > { %v4865_v36 = vpop.eup %4146  ;;  %v1359_v60 = vmul.f32 1.442695, %v1356_v58 }
 0x36f   : > { %v1361_v61 = vsel %vm1062_vm15, %v4865_v36, 0.0 }
 0x370   : > { %4148 = vpow2.f32 %v1359_v60  ;;  %1362 = vadd.xlane.f32.xlu2 %v1361_v61 }
 0x376   : > { %v4872_v62 = vpop.eup %4148 }
 0x377   : > { %v1364_v63 = vsel %vm1066_vm1, %v4872_v62, 0.0 }
 0x378   : > { %1365 = vadd.xlane.f32.xlu1 %v1364_v63  ;;  %1064 = vmax.xlane.f32.xlu2 %v1063_v0  ;;  %v3855_v63 = vld [vmem:[%s6024_s7 + $0x158] sm:$0xff] }
 0x379   : > { %1450 = vmatpush.msra.mxu2 %v3855_v63 }
 0x380   : > { %1068 = vmax.xlane.f32.xlu1 %v1067_v3 }
 0x3d3   : > { %v1197_v4 = vpop.xlane.xlu2 %1196 }
 0x3d4   : > { %4150 = vrcp.f32 %v1197_v4  ;;  %v1212_v10 = vand.u32 2147483648, %v1197_v4  ;;  %v1210_v12 = vand.u32 2147483647, %v1197_v4  ;;  %vm1206_vm3 = vweird.f32 %v1197_v4 }
 0x3d6   : > { %v1213_v15 = vor.u32 1.1754944e-38, %v1212_v10  ;;  %vm1211_vm5 = vcmp.eq.f32.partialorder %v1210_v12, 8.507059e+37  ;;  %v739_v12 = vperm.slane %v4791_v39, 1  ;;  %v3849_v39 = vld [vmem:[%s6024_s7 + $0x128] sm:$0xff] }
 0x3da   : > { %v4151_v6 = vpop.eup %4150 }
 0x3db   : > { %v1202_v7 = vmul.f32 %v4151_v6, %v1197_v4  ;;  %v1200_v8 = vpop.xlane.xlu1 %1199  ;;  %vm1207_vm2 = vweird.f32 %v4151_v6  ;;  %v3853_v4 = vld [vmem:[%s6024_s7 + $0x148] sm:$0xff] }
 0x3dc   : > { %4152 = vrcp.f32 %v1200_v8  ;;  %vm1208_vm4 = vmor %vm1206_vm3, %vm1207_vm2  ;;  %v1226_v28 = vand.u32 2147483648, %v1200_v8  ;;  %v1224_v29 = vand.u32 2147483647, %v1200_v8  ;;  %vm1220_vm9 = vweird.f32 %v1200_v8 }
 0x3dd   : > { %v1203_v9 = vsub.f32 1.0, %v1202_v7 }
 0x3de   : > { %v1227_v34 = vor.u32 1.1754944e-38, %v1226_v28  ;;  %vm1225_vm11 = vcmp.eq.f32.partialorder %v1224_v29, 8.507059e+37 }
 0x3df   : > { %v1204_v11 = vmul.f32 %v4151_v6, %v1203_v9 }
 0x3e1   : > { %v1205_v13 = vadd.f32 %v4151_v6, %v1204_v11  ;;  %v984_v11 = vpop.f32.mrf.mxu1 }
 0x3e2   : > { %v4153_v14 = vpop.eup %4152 }
 0x3e3   : > { %v1209_v16 = vsel %vm1208_vm4, %v4151_v6, %v1205_v13  ;;  %v1216_v17 = vmul.f32 %v4153_v14, %v1200_v8  ;;  %v1363_v19 = vpop.xlane.xlu2 %1362  ;;  %vm1221_vm8 = vweird.f32 %v4153_v14  ;;  %v985_v13 = vadd.f32 %v984_v11, %v739_v12 }
 0x3e4   : > { %v1214_v21 = vsel %vm1211_vm5, %v1213_v15, %v1209_v16  ;;  %4154 = vrcp.f32 %v1363_v19  ;;  %vm1222_vm10 = vmor %vm1220_vm9, %vm1221_vm8  ;;  %v1378_v41 = vand.u32 2147483648, %v1363_v19  ;;  %v1376_v45 = vand.u32 2147483647, %v1363_v19  ;;  %v3851_v16 = vld [vmem:[%s6024_s7 + $0x138] sm:$0xff] }
 0x3e5   : > { %v1217_v22 = vsub.f32 1.0, %v1216_v17  ;;  %v1229_v23 = vmul.f32 %v4143_v48, %v1214_v21  ;;  %vm1372_vm13 = vweird.f32 %v1363_v19  ;;  %v3850_v17 = vld [vmem:[%s6024_s7 + $0x130] sm:$0xff] }
 0x3e6   : > { %v1379_v49 = vor.u32 1.1754944e-38, %v1378_v41  ;;  %vm1377_vm2 = vcmp.eq.f32.partialorder %v1376_v45, 8.507059e+37  ;;  %v3846_v21 = vld [vmem:[%s6024_s7 + $0x110] sm:$0xff] }
 0x3e7   : > { %v1218_v27 = vmul.f32 %v4153_v14, %v1217_v22  ;;  %3823 = vmatmul.msk.f32.vlgmr.msra.gmra.mxu3 %vm1062_vm15, %v1229_v23  ;;  %v3845_v22 = vld [vmem:[%s6024_s7 + $0x108] sm:$0xff]  ;;  %v3844_v23 = vld [vmem:[%s6024_s7 + $0x100] sm:$0xff] }
 0x3e8   : > { %1485 = vmatpush.xpose.msra.mxu3 %v1011_v18 }
 0x3e9   : > { %v1219_v31 = vadd.f32 %v4153_v14, %v1218_v27 }
 0x3ea   : > { %v4155_v32 = vpop.eup %4154 }
 0x3eb   : > { %v1368_v35 = vmul.f32 %v4155_v32, %v1363_v19  ;;  %v1366_v37 = vpop.xlane.xlu1 %1365  ;;  %v1223_v38 = vsel %vm1222_vm10, %v4153_v14, %v1219_v31  ;;  %vm1373_vm12 = vweird.f32 %v4155_v32  ;;  %v987_v14 = vpop.f32.mrf.mxu1  ;;  %v3848_v19 = vld [vmem:[%s6024_s7 + $0x120] sm:$0xff] }
 0x3ec   : > { %4156 = vrcp.f32 %v1366_v37  ;;  %1486 = vmatpush.xpose.msra.mxu3 %v1008_v33  ;;  %v1228_v40 = vsel %vm1225_vm11, %v1227_v34, %v1223_v38  ;;  %vm1374_vm14 = vmor %vm1372_vm13, %vm1373_vm12  ;;  %v1392_v60 = vand.u32 2147483648, %v1366_v37  ;;  %v1390_v1 = vand.u32 2147483647, %v1366_v37  ;;  %v1065_v29 = vpop.xlane.xlu2 %1064 }
 0x3ed   : > { %v1369_v25 = vsub.f32 1.0, %v1368_v35  ;;  %v1230_v42 = vmul.f32 %v4861_v53, %v1228_v40  ;;  %vm1386_vm4 = vweird.f32 %v1366_v37  ;;  %v988_v15 = vadd.f32 %v987_v14, %v739_v12 }
 0x3ee   : > { %v1393_v3 = vor.u32 1.1754944e-38, %v1392_v60  ;;  %vm1391_vm8 = vcmp.eq.f32.partialorder %v1390_v1, 8.507059e+37 }
 0x3ef   : > { %v1370_v43 = vmul.f32 %v4155_v32, %v1369_v25  ;;  %3824 = vmatmul.msk.f32.gmra.mxu3 %vm1062_vm15, %v1230_v42 }
 0x3f1   : > { %v1371_v47 = vadd.f32 %v4155_v32, %v1370_v43 }
 0x3f2   : > { %v4157_v48 = vpop.eup %4156 }
 0x3f3   : > { %v1375_v51 = vsel %vm1374_vm14, %v4155_v32, %v1371_v47  ;;  %v1382_v52 = vmul.f32 %v4157_v48, %v1366_v37  ;;  %v1069_v53 = vpop.xlane.xlu1 %1068  ;;  %vm1387_vm3 = vweird.f32 %v4157_v48  ;;  %v1070_v32 = vsub.f32 %v4870_v44, %v1065_v29  ;;  %v1158_v47 = vld [vmem:[%s6024_s7 + $0x70] sm:$0xff]  ;;  %v1144_v29 = vld [vmem:[%s6024_s7] sm:$0xff] }
 0x3f4   : > { %v1380_v54 = vsel %vm1377_vm2, %v1379_v49, %v1375_v51  ;;  %v1071_v55 = vsub.f32 %v4879_v2, %v1069_v53  ;;  %v3854_v2 = vld [vmem:[%s6024_s7 + $0x150] sm:$0xff]  ;;  %vm1388_vm5 = vmor %vm1386_vm4, %vm1387_vm3  ;;  %1304 = vmatpush.msrb.mxu1 %v1158_v47  ;;  %v3871_v47 = vld [vmem:[%s6024_s7 + $0x1c0] sm:$0xff] }
 0x3f5   : > { %v1383_v58 = vsub.f32 1.0, %v1382_v52  ;;  %v1395_v30 = vmul.f32 %v4865_v36, %v1380_v54  ;;  %1451 = vmatpush.msra.mxu2 %v3854_v2  ;;  %v1072_v33 = vmul.f32 1.442695, %v1070_v32  ;;  %v3878_v32 = vld [vmem:[%s6024_s7 + $0x1f8] sm:$0xff] }
 0x3f6   : > { %v1074_v61 = vmul.f32 1.442695, %v1071_v55 }
 0x3f7   : > { %v1384_v0 = vmul.f32 %v4157_v48, %v1383_v58  ;;  %3842 = vmatmul.msk.f32.vlgmr.msrb.gmra.mxu3 %vm1062_vm15, %v1395_v30  ;;  %1452 = vmatpush.msra.mxu2 %v3853_v4 }
 0x3f8   : > { %4158 = vpow2.f32 %v1074_v61 }
 0x3f9   : > { %v1385_v36 = vadd.f32 %v4157_v48, %v1384_v0  ;;  %4160 = vpow2.f32 %v1072_v33  ;;  %v3877_v33 = vld [vmem:[%s6024_s7 + $0x1f0] sm:$0xff] }
 0x3fb   : > { %v1389_v6 = vsel %vm1388_vm5, %v4157_v48, %v1385_v36 }
 0x3fc   : > { %v1394_v7 = vsel %vm1391_vm8, %v1393_v3, %v1389_v6 }
 0x3fd   : > { %v1396_v8 = vmul.f32 %v4872_v62, %v1394_v7  ;;  %v3852_v62 = vld [vmem:[%s6024_s7 + $0x140] sm:$0xff] }
 0x3fe   : > { %v4914_v9 = vpop.eup %4158  ;;  %1453 = vmatpush.msra.mxu2 %v3852_v62 }
 0x3ff   : > { %v1079_v10 = vsel %vm1066_vm1, %v4914_v9, 0.0  ;;  %3843 = vmatmul.msk.f32.gmra.mxu3 %vm1062_vm15, %v1396_v8  ;;  %v4161_v38 = vpop.eup %4160 }
 0x400   : > { %1080 = vadd.xlane.f32.xlu0 %v1079_v10  ;;  %1454 = vmatpush.msra.mxu2 %v3851_v16  ;;  %v1076_v41 = vsel %vm1062_vm15, %v4161_v38, 0.0  ;;  %v1156_v16 = vld [vmem:[%s6024_s7 + $0x60] sm:$0xff] }
 0x402   : > { %1455 = vmatpush.msra.mxu2 %v3850_v17  ;;  %v1155_v17 = vld [vmem:[%s6024_s7 + $0x58] sm:$0xff] }
 0x404   : > { %1456 = vmatpush.msra.mxu2 %v3849_v39  ;;  %v1154_v39 = vld [vmem:[%s6024_s7 + $0x50] sm:$0xff] }
 0x406   : > { %1457 = vmatpush.msra.mxu2 %v3848_v19  ;;  %v1152_v19 = vld [vmem:[%s6024_s7 + $0x40] sm:$0xff] }
 0x407   : > { %1487 = vmatmul.f32.vlgmr.msra.gmra.mxu3 %v985_v13 }
 0x408   : > { %1458 = vmatpush.msra.mxu2 %v3847_v20  ;;  %v1151_v20 = vld [vmem:[%s6024_s7 + $0x38] sm:$0xff] }
 0x40a   : > { %1459 = vmatpush.msra.mxu2 %v3846_v21  ;;  %v1150_v21 = vld [vmem:[%s6024_s7 + $0x30] sm:$0xff] }
 0x40c   : > { %1460 = vmatpush.msra.mxu2 %v3845_v22  ;;  %v1149_v22 = vld [vmem:[%s6024_s7 + $0x28] sm:$0xff] }
 0x40e   : > { %1461 = vmatpush.msra.mxu2 %v3844_v23  ;;  %v1148_v23 = vld [vmem:[%s6024_s7 + $0x20] sm:$0xff] }
 0x40f   : > { %1490 = vmatmul.f32.gmra.mxu3 %v988_v15 }
 0x46a   : > { %v1257_v18 = vpop.f32.mrf.mxu3 }
 0x46b   : > { %1296 = vmatmul.f32.vlgmr.msrb.gmra.mxu0 %v1257_v18  ;;  %v1147_v18 = vld [vmem:[%s6024_s7 + $0x18] sm:$0xff] }
 0x472   : > { %v1260_v27 = vpop.f32.mrf.mxu3 }
 0x473   : > { %1299 = vmatmul.f32.gmra.mxu0 %v1260_v27  ;;  %v1081_v43 = vpop.xlane.xlu0 %1080  ;;  %v1146_v27 = vld [vmem:[%s6024_s7 + $0x10] sm:$0xff] }
 0x474   : > { %4162 = vrcp.f32 %v1081_v43  ;;  %v1107_v8 = vand.u32 2147483648, %v1081_v43  ;;  %vm1101_vm14 = vweird.f32 %v1081_v43  ;;  %v1105_v12 = vand.u32 2147483647, %v1081_v43 }
 0x476   : > { %v1108_v14 = vor.u32 1.1754944e-38, %v1107_v8  ;;  %vm1106_vm3 = vcmp.eq.f32.partialorder %v1105_v12, 8.507059e+37  ;;  %v3864_v8 = vld [vmem:[%s6024_s7 + $0x188] sm:$0xff] }
 0x47a   : > { %v1423_v28 = vpop.f32.mrf.mxu3  ;;  %v4163_v50 = vpop.eup %4162 }
 0x47b   : > { %1462 = vmatmul.f32.vlgmr.msra.gmra.mxu2 %v1423_v28  ;;  %v1097_v53 = vmul.f32 %v4163_v50, %v1081_v43  ;;  %vm1102_vm13 = vweird.f32 %v4163_v50  ;;  %v1145_v28 = vld [vmem:[%s6024_s7 + $0x8] sm:$0xff] }
 0x47c   : > { %vm1103_vm2 = vmor %vm1101_vm14, %vm1102_vm13 }
 0x47d   : > { %v1098_v58 = vsub.f32 1.0, %v1097_v53 }
 0x47f   : > { %v1099_v0 = vmul.f32 %v4163_v50, %v1098_v58 }
 0x481   : > { %v1100_v7 = vadd.f32 %v4163_v50, %v1099_v0 }
 0x482   : > { %v1426_v31 = vpop.f32.mrf.mxu3 }
 0x483   : > { %1465 = vmatmul.f32.gmra.mxu2 %v1426_v31  ;;  %v1104_v13 = vsel %vm1103_vm2, %v4163_v50, %v1100_v7  ;;  %v3870_v50 = vld [vmem:[%s6024_s7 + $0x1b8] sm:$0xff] }
 0x484   : > { %v1109_v15 = vsel %vm1106_vm3, %v1108_v14, %v1104_v13 }
 0x485   : > { %v1111_v62 = vmul.f32 %v4914_v9, %v1109_v15  ;;  %v1153_v9 = vld [vmem:[%s6024_s7 + $0x48] sm:$0xff] }
 0x48a   : > { %v1488_v34 = vpop.f32.mrf.mxu3 }
 0x48b   : > { %v1489_v35 = vadd.f32 %v4850_v26, %v1488_v34  ;;  %v3876_v34 = vld [vmem:[%s6024_s7 + $0x1e8] sm:$0xff] }
 0x48d   : > { %v1494_v37 = vsel %vm1062_vm15, %v1489_v35, -inf }
 0x48e   : > { %1495 = vmax.xlane.f32.xlu2 %v1494_v37 }
 0x492   : > { %v1491_v25 = vpop.f32.mrf.mxu3 }
 0x493   : > { %v1492_v40 = vadd.f32 %v4850_v26, %v1491_v25  ;;  %v1157_v26 = vld [vmem:[%s6024_s7 + $0x68] sm:$0xff]  ;;  %v3874_v25 = vld [vmem:[%s6024_s7 + $0x1d8] sm:$0xff] }
 0x494   : > { %1305 = vmatpush.msrb.mxu1 %v1157_v26 }
 0x495   : > { %v1497_v42 = vsel %vm1066_vm1, %v1492_v40, -inf }
 0x496   : > { %1077 = vadd.xlane.f32.xlu2 %v1076_v41  ;;  %1498 = vmax.xlane.f32.xlu1 %v1497_v42  ;;  %v3873_v42 = vld [vmem:[%s6024_s7 + $0x1d0] sm:$0xff] }
 0x497   : > { %1306 = vmatpush.msrb.mxu1 %v1156_v16  ;;  %v1620_v16 = vld [vmem:[%s6028_s11 + $0x8] sm:$0xff] }
 0x499   : > { %1307 = vmatpush.msrb.mxu1 %v1155_v17  ;;  %v1619_v17 = vld [vmem:[%s6028_s11] sm:$0xff] }
 0x49b   : > { %1308 = vmatpush.msrb.mxu1 %v1154_v39 }
 0x49d   : > { %1309 = vmatpush.msrb.mxu1 %v1153_v9 }
 0x49f   : > { %1310 = vmatpush.msrb.mxu1 %v1152_v19 }
 0x4a1   : > { %1311 = vmatpush.msrb.mxu1 %v1151_v20  ;;  %v5079_v20 = vld [vmem:[%s6025_s8] sm:$0xff] }
 0x4a3   : > { %1312 = vmatpush.msrb.mxu1 %v1150_v21 }
 0x4a5   : > { %1313 = vmatpush.msrb.mxu1 %v1149_v22 }
 0x4a7   : > { %1314 = vmatpush.msrb.mxu1 %v1148_v23  ;;  %v1616_v23 = vperm.slane %v5079_v20, 0 }
 0x4a9   : > { %1315 = vmatpush.msrb.mxu1 %v1147_v18 }
 0x4ab   : > { %1316 = vmatpush.msrb.mxu1 %v1146_v27 }
 0x4ad   : > { %1317 = vmatpush.msrb.mxu1 %v1145_v28 }
 0x4af   : > { %1318 = vmatpush.msrb.mxu1 %v1144_v29 }
 0x4e8   : > { %v1297_v12 = vpop.f32.mrf.mxu0 }
 0x4f0   : > { %v1300_v13 = vpop.f32.mrf.mxu0 }
 0x4fe   : > { %v1463_v21 = vpop.f32.mrf.mxu2 }
 0x501   : > { %v1496_v44 = vpop.xlane.xlu2 %1495 }
 0x502   : > { %v1500_v45 = vsub.f32 %v1489_v35, %v1496_v44  ;;  %v3875_v35 = vld [vmem:[%s6024_s7 + $0x1e0] sm:$0xff] }
 0x504   : > { %v1502_v24 = vmul.f32 1.442695, %v1500_v45 }
 0x506   : > { %4164 = vpow2.f32 %v1502_v24  ;;  %v3872_v24 = vld [vmem:[%s6024_s7 + $0x1c8] sm:$0xff] }
 0x509   : > { %v1078_v48 = vpop.xlane.xlu2 %1077  ;;  %v1499_v49 = vpop.xlane.xlu1 %1498 }
 0x50a   : > { %4166 = vrcp.f32 %v1078_v48  ;;  %v1501_v51 = vsub.f32 %v1492_v40, %v1499_v49  ;;  %v1093_v61 = vand.u32 2147483648, %v1078_v48  ;;  %v1091_v2 = vand.u32 2147483647, %v1078_v48 }
 0x50b   : > { %vm1087_vm10 = vweird.f32 %v1078_v48 }
 0x50c   : > { %v4962_v52 = vpop.eup %4164  ;;  %v1504_v54 = vmul.f32 1.442695, %v1501_v51  ;;  %v1094_v4 = vor.u32 1.1754944e-38, %v1093_v61  ;;  %vm1092_vm12 = vcmp.eq.f32.partialorder %v1091_v2, 8.507059e+37  ;;  %v3866_v2 = vld [vmem:[%s6024_s7 + $0x198] sm:$0xff] }
 0x50d   : > { %v1506_v55 = vsel %vm1062_vm15, %v4962_v52, 0.0 }
 0x50e   : > { %1507 = vadd.xlane.f32.xlu1 %v1506_v55  ;;  %4168 = vpow2.f32 %v1504_v54  ;;  %v3869_v55 = vld [vmem:[%s6024_s7 + $0x1b0] sm:$0xff] }
 0x510   : > { %v4167_v57 = vpop.eup %4166 }
 0x511   : > { %v1083_v30 = vmul.f32 %v4167_v57, %v1078_v48  ;;  %vm1088_vm9 = vweird.f32 %v4167_v57 }
 0x512   : > { %vm1089_vm11 = vmor %vm1087_vm10, %vm1088_vm9 }
 0x513   : > { %v1084_v60 = vsub.f32 1.0, %v1083_v30  ;;  %v3868_v30 = vld [vmem:[%s6024_s7 + $0x1a8] sm:$0xff] }
 0x514   : > { %v4966_v63 = vpop.eup %4168 }
 0x515   : > { %v1085_v1 = vmul.f32 %v4167_v57, %v1084_v60  ;;  %v1509_v36 = vsel %vm1066_vm1, %v4966_v63, 0.0 }
 0x516   : > { %1510 = vadd.xlane.f32.xlu2 %v1509_v36 }
 0x517   : > { %v1086_v3 = vadd.f32 %v4167_v57, %v1085_v1 }
 0x519   : > { %v1090_v6 = vsel %vm1089_vm11, %v4167_v57, %v1086_v3 }
 0x51a   : > { %v1095_v10 = vsel %vm1092_vm12, %v1094_v4, %v1090_v6  ;;  %v3865_v6 = vld [vmem:[%s6024_s7 + $0x190] sm:$0xff] }
 0x51b   : > { %v1110_v11 = vmul.f32 %v4161_v38, %v1095_v10 }
 0x51d   : > { %3820 = vmatmul.msk.f32.vlgmr.msra.gmra.mxu1 %vm1062_vm15, %v1110_v11  ;;  %v3863_v11 = vld [vmem:[%s6024_s7 + $0x180] sm:$0xff] }
 0x51e   : > { %1591 = vmatpush.msra.mxu1 %v3878_v32 }
 0x520   : > { %1592 = vmatpush.msra.mxu1 %v3877_v33 }
 0x522   : > { %1593 = vmatpush.msra.mxu1 %v3876_v34 }
 0x524   : > { %1594 = vmatpush.msra.mxu1 %v3875_v35 }
 0x525   : > { %3821 = vmatmul.msk.f32.gmra.mxu1 %vm1062_vm15, %v1111_v62  ;;  %v1621_v62 = vld [vmem:[%s6028_s11 + $0x10] sm:$0xff] }
 0x526   : > { %1595 = vmatpush.msra.mxu1 %v3874_v25 }
 0x528   : > { %1596 = vmatpush.msra.mxu1 %v3873_v42 }
 0x52a   : > { %1597 = vmatpush.msra.mxu1 %v3872_v24 }
 0x52c   : > { %1598 = vmatpush.msra.mxu1 %v3871_v47 }
 0x52e   : > { %1599 = vmatpush.msra.mxu1 %v3870_v50 }
 0x530   : > { %1600 = vmatpush.msra.mxu1 %v3869_v55 }
 0x532   : > { %1601 = vmatpush.msra.mxu1 %v3868_v30 }
 0x581   : > { %v1508_v31 = vpop.xlane.xlu1 %1507 }
 0x582   : > { %4170 = vrcp.f32 %v1508_v31  ;;  %v1523_v43 = vand.u32 2147483648, %v1508_v31  ;;  %v1521_v45 = vand.u32 2147483647, %v1508_v31  ;;  %vm1517_vm5 = vweird.f32 %v1508_v31 }
 0x584   : > { %v1524_v26 = vor.u32 1.1754944e-38, %v1523_v43  ;;  %vm1522_vm9 = vcmp.eq.f32.partialorder %v1521_v45, 8.507059e+37 }
 0x588   : > { %v4171_v37 = vpop.eup %4170 }
 0x589   : > { %v1513_v38 = vmul.f32 %v4171_v37, %v1508_v31  ;;  %v1511_v40 = vpop.xlane.xlu2 %1510  ;;  %vm1518_vm4 = vweird.f32 %v4171_v37  ;;  %v1466_v31 = vpop.f32.mrf.mxu2 }
 0x58a   : > { %4172 = vrcp.f32 %v1511_v40  ;;  %vm1519_vm8 = vmor %vm1517_vm5, %vm1518_vm4  ;;  %v1537_v58 = vand.u32 2147483648, %v1511_v40  ;;  %v1535_v61 = vand.u32 2147483647, %v1511_v40  ;;  %vm1531_vm11 = vweird.f32 %v1511_v40 }
 0x58b   : > { %v1514_v41 = vsub.f32 1.0, %v1513_v38 }
 0x58c   : > { %v1538_v1 = vor.u32 1.1754944e-38, %v1537_v58  ;;  %vm1536_vm13 = vcmp.eq.f32.partialorder %v1535_v61, 8.507059e+37 }
 0x58d   : > { %v1515_v44 = vmul.f32 %v4171_v37, %v1514_v41 }
 0x58f   : > { %v1516_v46 = vadd.f32 %v4171_v37, %v1515_v44 }
 0x590   : > { %v4173_v48 = vpop.eup %4172 }
 0x591   : > { %v1520_v49 = vsel %vm1519_vm8, %v4171_v37, %v1516_v46  ;;  %v1527_v53 = vmul.f32 %v4173_v48, %v1511_v40  ;;  %vm1532_vm10 = vweird.f32 %v4173_v48  ;;  %v5093_v37 = vld [vmem:[%s6026_s9] sm:$0x3] }
 0x592   : > { %v1525_v51 = vsel %vm1522_vm9, %v1524_v26, %v1520_v49  ;;  %vm1533_vm12 = vmor %vm1531_vm11, %vm1532_vm10  ;;  %v1623_v38 = vperm.slane %v5093_v37, 0 }
 0x593   : > { %v1540_v54 = vmul.f32 %v4962_v52, %v1525_v51  ;;  %v1528_v57 = vsub.f32 1.0, %v1527_v53  ;;  %v3867_v52 = vld [vmem:[%s6024_s7 + $0x1a0] sm:$0xff] }
 0x594   : > { %1602 = vmatpush.msra.mxu1 %v3867_v52 }
 0x595   : > { %3861 = vmatmul.msk.f32.vlgmr.msra.gmra.mxu0 %vm1062_vm15, %v1540_v54  ;;  %v1529_v60 = vmul.f32 %v4173_v48, %v1528_v57  ;;  %v1731_v57 = vld [vmem:[%s6029_s12] sm:$0xff] }
 0x596   : > { %1603 = vmatpush.msra.mxu1 %v3866_v2  ;;  %1755 = vmatpush.msrb.mxu0 %v1731_v57 }
 0x597   : > { %v1530_v0 = vadd.f32 %v4173_v48, %v1529_v60 }
 0x598   : > { %1604 = vmatpush.msra.mxu1 %v3865_v6 }
 0x599   : > { %v1534_v3 = vsel %vm1533_vm12, %v4173_v48, %v1530_v0  ;;  %vm1733_vm12 = vcmask 64512  }
 0x59a   : > { %v1138_v36 = vpop.f32.mrf.mxu1  ;;  %v1539_v4 = vsel %vm1536_vm13, %v1538_v1, %v1534_v3  ;;  %1605 = vmatpush.msra.mxu1 %v3864_v8 }
 0x59b   : > { %1319 = vmatmul.f32.vlgmr.msrb.gmra.mxu1 %v1138_v36  ;;  %v1541_v7 = vmul.f32 %v4966_v63, %v1539_v4  ;;  %v1622_v63 = vld [vmem:[%s6028_s11 + $0x18] sm:$0xff] }
 0x59c   : > { %1606 = vmatpush.msra.mxu1 %v3863_v11  ;;  %1642 = vmatpush.msrb.mxu3 %v1622_v63 }
 0x59d   : > { %3862 = vmatmul.msk.f32.gmra.mxu0 %vm1062_vm15, %v1541_v7 }
 0x59e   : > { %1643 = vmatpush.msrb.mxu3 %v1621_v62 }
 0x5a0   : > { %1644 = vmatpush.msrb.mxu3 %v1620_v16 }
 0x5a2   : > { %v1141_v10 = vpop.f32.mrf.mxu1  ;;  %1645 = vmatpush.msrb.mxu3 %v1619_v17 }
 0x5a3   : > { %1322 = vmatmul.f32.gmra.mxu1 %v1141_v10 }
 0x612   : > { %v1568_v14 = vpop.f32.mrf.mxu0 }
 0x613   : > { %1607 = vmatmul.f32.vlgmr.msra.gmra.mxu1 %v1568_v14 }
 0x618   : > { %v1320_v39 = vpop.f32.mrf.mxu1 }
 0x619   : > { %v1321_v19 = vadd.f32 %v1320_v39, %v1297_v12 }
 0x61a   : > { %v1571_v15 = vpop.f32.mrf.mxu0 }
 0x61b   : > { %1610 = vmatmul.f32.gmra.mxu1 %v1571_v15  ;;  %v1469_v22 = vadd.f32 %v1463_v21, %v1321_v19 }
 0x620   : > { %v1323_v9 = vpop.f32.mrf.mxu1 }
 0x621   : > { %v1324_v29 = vadd.f32 %v1323_v9, %v1300_v13 }
 0x623   : > { %v1470_v32 = vadd.f32 %v1466_v31, %v1324_v29 }
 0x690   : > { %v1608_v18 = vpop.f32.mrf.mxu1 }
 0x691   : > { %v1614_v27 = vadd.f32 %v1608_v18, %v1469_v22 }
 0x693   : > { %v5082_v28 = vadd.f32 %v1616_v23, %v1614_v27 }
 0x695   : > { %3879 = vmatmul.msk.f32.vlgmr.msrb.gmra.mxu3 %vm610_vm6, %v5082_v28 }
 0x698   : > { %v1611_v33 = vpop.f32.mrf.mxu1 }
 0x699   : > { %v1615_v34 = vadd.f32 %v1611_v33, %v1470_v32 }
 0x69b   : > { %v5086_v35 = vadd.f32 %v1616_v23, %v1615_v34 }
 0x69d   : > { %3880 = vmatmul.msk.f32.gmra.mxu3 %vm610_vm6, %v5086_v35 }
 0x718   : > { %v1647_v25 = vpop.f32.mrf.mxu3 }
 0x719   : > { %v5096_v40 = vadd.f32 %v1647_v25, %v1623_v38  ;;  %v4340_v25 = vmov -1.0  }
 0x71b   : > { %v5099_v41 = vmul.f32 0.70710677, %v5096_v40 }
 0x71d   : > { %v1661_v42 = vand.u32 2147483647, %v5099_v41  ;;  %vm1657_vm11 = vcmp.ge.f32.partialorder %v5099_v41, 0.0 }
 0x71f   : > { %v1663_v43 = vmul.f32 0.3275911, %v1661_v42  ;;  %v1713_v0 = vsub.f32 0.0, %v1661_v42 }
 0x720   : > { %v1650_v45 = vpop.f32.mrf.mxu3 }
 0x721   : > { %v1665_v44 = vadd.f32 1.0, %v1663_v43  ;;  %v5102_v24 = vadd.f32 %v1650_v45, %v1623_v38  ;;  %v1715_v6 = vmul.f32 %v1713_v0, %v1661_v42  ;;  %v1659_v42 = vsel %vm1657_vm11, 1.0, %v4340_v25 }
 0x723   : > { %4174 = vrcp.f32 %v1665_v44  ;;  %v5105_v46 = vmul.f32 0.70710677, %v5102_v24  ;;  %v1678_v53 = vand.u32 2147483648, %v1665_v44  ;;  %v1676_v55 = vand.u32 2147483647, %v1665_v44 }
 0x724   : > { %vm1672_vm2 = vweird.f32 %v1665_v44  ;;  %v1717_v13 = vmul.f32 1.442695, %v1715_v6 }
 0x725   : > { %v1662_v47 = vand.u32 2147483647, %v5105_v46  ;;  %v1679_v30 = vor.u32 1.1754944e-38, %v1678_v53  ;;  %vm1677_vm4 = vcmp.eq.f32.partialorder %v1676_v55, 8.507059e+37  ;;  %vm1658_vm13 = vcmp.ge.f32.partialorder %v5105_v46, 0.0 }
 0x726   : > { %v1660_v53 = vsel %vm1658_vm13, 1.0, %v4340_v25  ;;  %v1654_v55 = vmul.f32 0.5, %v5102_v24 }
 0x727   : > { %v1664_v26 = vmul.f32 0.3275911, %v1662_v47  ;;  %v1714_v62 = vsub.f32 0.0, %v1662_v47 }
 0x729   : > { %v4175_v48 = vpop.eup %4174  ;;  %v1666_v50 = vadd.f32 1.0, %v1664_v26  ;;  %v1716_v21 = vmul.f32 %v1714_v62, %v1662_v47  ;;  %v1653_v47 = vmul.f32 0.5, %v5096_v40  ;;  %v1732_v40 = vperm.slane %v5079_v20, 1 }
 0x72a   : > { %v1668_v49 = vmul.f32 %v4175_v48, %v1665_v44  ;;  %vm1673_vm14 = vweird.f32 %v4175_v48 }
 0x72b   : > { %4176 = vrcp.f32 %v1666_v50  ;;  %vm1674_vm3 = vmor %vm1672_vm2, %vm1673_vm14  ;;  %v1692_v4 = vand.u32 2147483648, %v1666_v50  ;;  %v1690_v8 = vand.u32 2147483647, %v1666_v50  ;;  %vm1686_vm8 = vweird.f32 %v1666_v50 }
 0x72c   : > { %v1669_v51 = vsub.f32 1.0, %v1668_v49  ;;  %4178 = vpow2.f32 %v1717_v13  ;;  %v1719_v29 = vmul.f32 1.442695, %v1716_v21 }
 0x72d   : > { %v1693_v63 = vor.u32 1.1754944e-38, %v1692_v4  ;;  %vm1691_vm10 = vcmp.eq.f32.partialorder %v1690_v8, 8.507059e+37 }
 0x72e   : > { %v1670_v54 = vmul.f32 %v4175_v48, %v1669_v51  ;;  %4180 = vpow2.f32 %v1719_v29 }
 0x730   : > { %v1671_v58 = vadd.f32 %v4175_v48, %v1670_v54 }
 0x731   : > { %v4177_v60 = vpop.eup %4176 }
 0x732   : > { %v1675_v61 = vsel %vm1674_vm3, %v4175_v48, %v1671_v58  ;;  %v1682_v1 = vmul.f32 %v4177_v60, %v1666_v50  ;;  %vm1687_vm5 = vweird.f32 %v4177_v60  ;;  %v4179_v31 = vpop.eup %4178 }
 0x733   : > { %v1680_v52 = vsel %vm1677_vm4, %v1679_v30, %v1675_v61  ;;  %vm1688_vm9 = vmor %vm1686_vm8, %vm1687_vm5 }
 0x734   : > { %v1695_v2 = vmul.f32 1.0614054, %v1680_v52  ;;  %v1683_v36 = vsub.f32 1.0, %v1682_v1  ;;  %v4181_v49 = vpop.eup %4180 }
 0x736   : > { %v1697_v3 = vadd.f32 -1.4531521, %v1695_v2  ;;  %v1684_v7 = vmul.f32 %v4177_v60, %v1683_v36 }
 0x738   : > { %v1699_v10 = vmul.f32 %v1697_v3, %v1680_v52  ;;  %v1685_v11 = vadd.f32 %v4177_v60, %v1684_v7  ;;  %v1825_v7 = vld [vmem:[%s6030_s13 + $0x10] sm:$0xff] }
 0x73a   : > { %v1701_v12 = vadd.f32 1.4214138, %v1699_v10  ;;  %v1689_v14 = vsel %vm1688_vm9, %v4177_v60, %v1685_v11 }
 0x73b   : > { %v1694_v16 = vsel %vm1691_vm10, %v1693_v63, %v1689_v14  ;;  %v1823_v63 = vld [vmem:[%s6030_s13] sm:$0xff] }
 0x73c   : > { %v1703_v15 = vmul.f32 %v1701_v12, %v1680_v52  ;;  %v1696_v17 = vmul.f32 1.0614054, %v1694_v16 }
 0x73e   : > { %v1705_v39 = vadd.f32 -0.28449672, %v1703_v15  ;;  %v1698_v9 = vadd.f32 -1.4531521, %v1696_v17 }
 0x740   : > { %v1707_v19 = vmul.f32 %v1705_v39, %v1680_v52  ;;  %v1700_v22 = vmul.f32 %v1698_v9, %v1694_v16 }
 0x742   : > { %v1709_v23 = vadd.f32 0.2548296, %v1707_v19  ;;  %v1702_v18 = vadd.f32 1.4214138, %v1700_v22 }
 0x744   : > { %v1711_v27 = vmul.f32 %v1709_v23, %v1680_v52  ;;  %v1704_v32 = vmul.f32 %v1702_v18, %v1694_v16 }
 0x746   : > { %v1721_v33 = vmul.f32 %v4179_v31, %v1711_v27  ;;  %v1706_v34 = vadd.f32 -0.28449672, %v1704_v32 }
 0x748   : > { %v1723_v38 = vsub.f32 1.0, %v1721_v33  ;;  %v1708_v43 = vmul.f32 %v1706_v34, %v1694_v16 }
 0x74a   : > { %v1725_v44 = vmul.f32 %v1723_v38, %v1659_v42  ;;  %v1710_v45 = vadd.f32 0.2548296, %v1708_v43  ;;  %v1817_v42 = vperm.slane %v5079_v20, 2 }
 0x74c   : > { %v1727_v26 = vadd.f32 1.0, %v1725_v44  ;;  %v1712_v48 = vmul.f32 %v1710_v45, %v1694_v16 }
 0x74e   : > { %v1729_v50 = vmul.f32 %v1727_v26, %v1653_v47  ;;  %v1722_v41 = vmul.f32 %v4181_v49, %v1712_v48  ;;  %v1820_v47 = vperm.slane %v5079_v20, 3 }
 0x750   : > { %3881 = vmatmul.msk.f32.vlgmr.msrb.gmra.mxu0 %vm1733_vm12, %v1729_v50  ;;  %v1724_v51 = vsub.f32 1.0, %v1722_v41 }
 0x752   : > { %v1726_v54 = vmul.f32 %v1724_v51, %v1660_v53 }
 0x754   : > { %v1728_v57 = vadd.f32 1.0, %v1726_v54 }
 0x756   : > { %v1730_v58 = vmul.f32 %v1728_v57, %v1654_v55 }
 0x758   : > { %3882 = vmatmul.msk.f32.gmra.mxu0 %vm1733_vm12, %v1730_v58  ;;  %v4134_v58 = vld [vmem:[%s6027_s10] ss:$0 sm:$0xff] }
 0x7cd   : > { %v1757_v30 = vpop.f32.mrf.mxu0 }
 0x7ce   : > { %v1758_v60 = vadd.f32 %v1757_v30, %v1732_v40 }
 0x7d0   : > { %v1763_v61 = vadd.f32 %v1758_v60, %v5082_v28 }
 0x7d2   : > { %v1765_v46 = vadd.f32 %v1763_v61, %v4659_v56  ;;  %v1826_v56 = vld [vmem:[%s6030_s13 + $0x18] sm:$0xff] }
 0x7d3   : > { %1849 = vmatpush.msrb.mxu2 %v1826_v56 }
 0x7d4   : > { %v1767_v52 = vsel %vm610_vm6, %v1765_v46, 0.0  ;;  %v1775_v0 = vmul.f32 %v1765_v46, %v1765_v46 }
 0x7d5   : > { %1768 = vadd.xlane.f32.xlu0 %v1767_v52  ;;  %v1760_v1 = vpop.f32.mrf.mxu0  ;;  %1850 = vmatpush.msrb.mxu2 %v1825_v7 }
 0x7d6   : > { %v1777_v2 = vsel %vm610_vm6, %v1775_v0, 0.0  ;;  %v1761_v24 = vadd.f32 %v1760_v1, %v1732_v40 }
 0x7d7   : > { %1778 = vadd.xlane.f32.xlu1 %v1777_v2  ;;  %v1945_v2 = vld [vmem:[%s6031_s14 + $0x38] sm:$0xff] }
 0x7d8   : > { %v1764_v36 = vadd.f32 %v1761_v24, %v5086_v35  ;;  %v1824_v35 = vld [vmem:[%s6030_s13 + $0x8] sm:$0xff]  ;;  %1962 = vmatpush.msra.mxu3 %v1945_v2 }
 0x7d9   : > { %1851 = vmatpush.msrb.mxu2 %v1824_v35 }
 0x7da   : > { %v1766_v3 = vadd.f32 %v1764_v36, %v4698_v5  ;;  %v1944_v36 = vld [vmem:[%s6031_s14 + $0x30] sm:$0xff] }
 0x7db   : > { %1852 = vmatpush.msrb.mxu2 %v1823_v63  ;;  %1963 = vmatpush.msra.mxu3 %v1944_v36 }
 0x7dc   : > { %v1770_v4 = vsel %vm614_vm7, %v1766_v3, 0.0  ;;  %v1776_v6 = vmul.f32 %v1766_v3, %v1766_v3 }
 0x7dd   : > { %1771 = vadd.xlane.f32.xlu2 %v1770_v4  ;;  %v1943_v4 = vld [vmem:[%s6031_s14 + $0x28] sm:$0xff] }
 0x7de   : > { %v1780_v28 = vsel %vm614_vm7, %v1776_v6, 0.0  ;;  %1964 = vmatpush.msra.mxu3 %v1943_v4 }
 0x7df   : > { %1781 = vadd.xlane.f32.xlu0 %v1780_v28  ;;  %v1942_v28 = vld [vmem:[%s6031_s14 + $0x20] sm:$0xff] }
 0x7e0   : > { %1965 = vmatpush.msra.mxu3 %v1942_v28 }
 0x848   : > { %v1769_v8 = vpop.xlane.xlu0 %1768 }
 0x849   : > { %v1773_v5 = vmul.f32 %v1769_v8, %v4566_v59 }
 0x84a   : > { %v1779_v10 = vpop.xlane.xlu1 %1778 }
 0x84b   : > { %v1785_v11 = vmul.f32 %v1773_v5, %v1773_v5  ;;  %v1783_v12 = vmul.f32 %v1779_v10, %v4566_v59  ;;  %v1791_v34 = vsub.f32 %v1765_v46, %v1773_v5  ;;  %v1941_v5 = vld [vmem:[%s6031_s14 + $0x18] sm:$0xff]  ;;  %v1940_v10 = vld [vmem:[%s6031_s14 + $0x10] sm:$0xff] }
 0x84c   : > { %1966 = vmatpush.msra.mxu3 %v1941_v5 }
 0x84d   : > { %v1787_v13 = vsub.f32 %v1783_v12, %v1785_v11 }
 0x84e   : > { %1967 = vmatpush.msra.mxu3 %v1940_v10 }
 0x84f   : > { %v1789_v14 = vmax.f32 %v1787_v13, 0.0  ;;  %v1939_v13 = vld [vmem:[%s6031_s14 + $0x8] sm:$0xff] }
 0x850   : > { %v1772_v62 = vpop.xlane.xlu2 %1771  ;;  %1968 = vmatpush.msra.mxu3 %v1939_v13 }
 0x851   : > { %v1793_v15 = vadd.f32 1e-12, %v1789_v14  ;;  %v1774_v16 = vmul.f32 %v1772_v62, %v4566_v59  ;;  %v1938_v14 = vld [vmem:[%s6031_s14] sm:$0xff] }
 0x852   : > { %v1782_v17 = vpop.xlane.xlu0 %1781  ;;  %1969 = vmatpush.msra.mxu3 %v1938_v14 }
 0x853   : > { %4182 = vrsqrt.f32 %v1793_v15  ;;  %v1786_v39 = vmul.f32 %v1774_v16, %v1774_v16  ;;  %v1784_v9 = vmul.f32 %v1782_v17, %v4566_v59  ;;  %vm1801_vm2 = vweird.f32 %v1793_v15 }
 0x854   : > { %v1792_v51 = vsub.f32 %v1766_v3, %v1774_v16 }
 0x855   : > { %v1788_v19 = vsub.f32 %v1784_v9, %v1786_v39 }
 0x857   : > { %v1790_v21 = vmax.f32 %v1788_v19, 0.0 }
 0x859   : > { %v4183_v22 = vpop.eup %4182  ;;  %v1794_v18 = vadd.f32 1e-12, %v1790_v21 }
 0x85a   : > { %v1796_v23 = vmul.f32 %v4183_v22, %v1793_v15  ;;  %vm1802_vm14 = vweird.f32 %v4183_v22 }
 0x85b   : > { %4184 = vrsqrt.f32 %v1794_v18  ;;  %vm1803_vm3 = vmor %vm1801_vm2, %vm1802_vm14  ;;  %vm1811_vm5 = vweird.f32 %v1794_v18 }
 0x85c   : > { %v1797_v27 = vmul.f32 %v4183_v22, %v1796_v23 }
 0x85e   : > { %v1798_v29 = vmul.f32 0.5, %v1797_v27 }
 0x860   : > { %v1799_v31 = vsub.f32 1.5, %v1798_v29 }
 0x861   : > { %v4185_v32 = vpop.eup %4184 }
 0x862   : > { %v1800_v33 = vmul.f32 %v4183_v22, %v1799_v31  ;;  %v1806_v38 = vmul.f32 %v4185_v32, %v1794_v18  ;;  %vm1812_vm4 = vweird.f32 %v4185_v32 }
 0x863   : > { %vm1813_vm8 = vmor %vm1811_vm5, %vm1812_vm4 }
 0x864   : > { %v1804_v43 = vsel %vm1803_vm3, %v4183_v22, %v1800_v33  ;;  %v1807_v45 = vmul.f32 %v4185_v32, %v1806_v38  ;;  %v3889_v38 = vld [vmem:[%s6028_s11 + $0x30] sm:$0xff] }
 0x865   : > { %v1815_v44 = vmul.f32 %v1804_v43, %v1791_v34  ;;  %v3890_v34 = vld [vmem:[%s6028_s11 + $0x38] sm:$0xff] }
 0x866   : > { %v1808_v26 = vmul.f32 0.5, %v1807_v45  ;;  %2001 = vmatpush.msra.mxu0 %v3890_v34 }
 0x867   : > { %v1818_v48 = vmul.f32 %v1817_v42, %v1815_v44 }
 0x868   : > { %v1809_v49 = vsub.f32 1.5, %v1808_v26  ;;  %2002 = vmatpush.msra.mxu0 %v3889_v38 }
 0x869   : > { %v5146_v50 = vadd.f32 %v1820_v47, %v1818_v48 }
 0x86a   : > { %v1810_v41 = vmul.f32 %v4185_v32, %v1809_v49 }
 0x86b   : > { %3883 = vmatmul.msk.f32.vlgmr.msrb.gmra.mxu2 %vm610_vm6, %v5146_v50 }
 0x86c   : > { %v1814_v53 = vsel %vm1813_vm8, %v4185_v32, %v1810_v41  ;;  %vm1947_vm8 = vcmask 523264  }
 0x86d   : > { %v1816_v54 = vmul.f32 %v1814_v53, %v1792_v51 }
 0x86f   : > { %v1819_v55 = vmul.f32 %v1817_v42, %v1816_v54 }
 0x871   : > { %v5150_v57 = vadd.f32 %v1820_v47, %v1819_v55 }
 0x873   : > { %3884 = vmatmul.msk.f32.gmra.mxu2 %vm610_vm6, %v5150_v57 }
 0x8ee   : > { %v1854_v40 = vpop.f32.mrf.mxu2 }
 0x8ef   : > { %v5157_v30 = vadd.f32 %v4134_v58, %v1854_v40 }
 0x8f1   : > { %v5160_v60 = vmul.f32 0.70710677, %v5157_v30 }
 0x8f3   : > { %v1868_v61 = vand.u32 2147483647, %v5160_v60  ;;  %vm1864_vm5 = vcmp.ge.f32.partialorder %v5160_v60, 0.0 }
 0x8f5   : > { %v1870_v46 = vmul.f32 0.3275911, %v1868_v61  ;;  %v1920_v9 = vsub.f32 0.0, %v1868_v61 }
 0x8f6   : > { %v1857_v0 = vpop.f32.mrf.mxu2 }
 0x8f7   : > { %v1872_v52 = vadd.f32 1.0, %v1870_v46  ;;  %v5163_v1 = vadd.f32 %v4134_v58, %v1857_v0  ;;  %v1922_v27 = vmul.f32 %v1920_v9, %v1868_v61  ;;  %v1982_v9 = vperm.slane %v5093_v37, 1 }
 0x8f9   : > { %4186 = vrcp.f32 %v1872_v52  ;;  %v5169_v24 = vmul.f32 0.70710677, %v5163_v1  ;;  %v1885_v11 = vand.u32 2147483648, %v1872_v52  ;;  %v1883_v63 = vand.u32 2147483647, %v1872_v52 }
 0x8fa   : > { %vm1879_vm10 = vweird.f32 %v1872_v52  ;;  %v1924_v44 = vmul.f32 1.442695, %v1922_v27  ;;  %v1861_v13 = vmul.f32 0.5, %v5163_v1 }
 0x8fb   : > { %v1869_v3 = vand.u32 2147483647, %v5169_v24  ;;  %v1886_v62 = vor.u32 1.1754944e-38, %v1885_v11  ;;  %vm1884_vm13 = vcmp.eq.f32.partialorder %v1883_v63, 8.507059e+37 }
 0x8fd   : > { %v1871_v6 = vmul.f32 0.3275911, %v1869_v3  ;;  %v1921_v26 = vsub.f32 0.0, %v1869_v3 }
 0x8ff   : > { %v4187_v56 = vpop.eup %4186  ;;  %v1873_v8 = vadd.f32 1.0, %v1871_v6  ;;  %v1923_v54 = vmul.f32 %v1921_v26, %v1869_v3  ;;  %v1866_v6 = vsel %vm1864_vm5, 1.0, %v4340_v25  ;;  %v1860_v3 = vmul.f32 0.5, %v5157_v30  ;;  %v3888_v30 = vld [vmem:[%s6028_s11 + $0x28] sm:$0xff] }
 0x900   : > { %v1875_v7 = vmul.f32 %v4187_v56, %v1872_v52  ;;  %vm1880_vm9 = vweird.f32 %v4187_v56  ;;  %2003 = vmatpush.msra.mxu0 %v3888_v30  ;;  %v3893_v26 = vld [vmem:[%s6029_s12 + $0x8] sm:$0xff] }
 0x901   : > { %4188 = vrcp.f32 %v1873_v8  ;;  %vm1881_vm11 = vmor %vm1879_vm10, %vm1880_vm9  ;;  %v1899_v18 = vand.u32 2147483648, %v1873_v8  ;;  %v1897_v31 = vand.u32 2147483647, %v1873_v8  ;;  %vm1893_vm2 = vweird.f32 %v1873_v8  ;;  %2114 = vmatpush.msrb.mxu1 %v3893_v26 }
 0x902   : > { %v1876_v35 = vsub.f32 1.0, %v1875_v7  ;;  %4190 = vpow2.f32 %v1924_v44  ;;  %v1926_v46 = vmul.f32 1.442695, %v1923_v54  ;;  %vm1865_vm9 = vcmp.ge.f32.partialorder %v5169_v24, 0.0  ;;  %v3887_v24 = vld [vmem:[%s6028_s11 + $0x20] sm:$0xff] }
 0x903   : > { %v1900_v43 = vor.u32 1.1754944e-38, %v1899_v18  ;;  %vm1898_vm4 = vcmp.eq.f32.partialorder %v1897_v31, 8.507059e+37  ;;  %2004 = vmatpush.msra.mxu0 %v3887_v24 }
 0x904   : > { %v1877_v12 = vmul.f32 %v4187_v56, %v1876_v35  ;;  %4192 = vpow2.f32 %v1926_v46 }
 0x906   : > { %v1878_v15 = vadd.f32 %v4187_v56, %v1877_v12  ;;  %v1867_v12 = vsel %vm1865_vm9, 1.0, %v4340_v25 }
 0x907   : > { %v4189_v16 = vpop.eup %4188 }
 0x908   : > { %v1882_v17 = vsel %vm1881_vm11, %v4187_v56, %v1878_v15  ;;  %v1889_v19 = vmul.f32 %v4189_v16, %v1873_v8  ;;  %vm1894_vm14 = vweird.f32 %v4189_v16  ;;  %v4191_v52 = vpop.eup %4190 }
 0x909   : > { %v1887_v39 = vsel %vm1884_vm13, %v1886_v62, %v1882_v17  ;;  %vm1895_vm3 = vmor %vm1893_vm2, %vm1894_vm14  ;;  %v1946_v62 = vperm.slane %v5079_v20, 4 }
 0x90a   : > { %v1902_v21 = vmul.f32 1.0614054, %v1887_v39  ;;  %v1890_v22 = vsub.f32 1.0, %v1889_v19  ;;  %v4193_v35 = vpop.eup %4192 }
 0x90c   : > { %v1904_v23 = vadd.f32 -1.4531521, %v1902_v21  ;;  %v1891_v29 = vmul.f32 %v4189_v16, %v1890_v22 }
 0x90e   : > { %v1906_v32 = vmul.f32 %v1904_v23, %v1887_v39  ;;  %v1892_v33 = vadd.f32 %v4189_v16, %v1891_v29 }
 0x910   : > { %v1908_v42 = vadd.f32 1.4214138, %v1906_v32  ;;  %v1896_v45 = vsel %vm1895_vm3, %v4189_v16, %v1892_v33 }
 0x911   : > { %v1901_v48 = vsel %vm1898_vm4, %v1900_v43, %v1896_v45 }
 0x912   : > { %v1910_v47 = vmul.f32 %v1908_v42, %v1887_v39  ;;  %v1903_v49 = vmul.f32 1.0614054, %v1901_v48 }
 0x914   : > { %v1912_v41 = vadd.f32 -0.28449672, %v1910_v47  ;;  %v1905_v51 = vadd.f32 -1.4531521, %v1903_v49 }
 0x916   : > { %v1914_v53 = vmul.f32 %v1912_v41, %v1887_v39  ;;  %v1907_v55 = vmul.f32 %v1905_v51, %v1901_v48 }
 0x918   : > { %v1916_v58 = vadd.f32 0.2548296, %v1914_v53  ;;  %v1909_v40 = vadd.f32 1.4214138, %v1907_v55 }
 0x91a   : > { %v1918_v61 = vmul.f32 %v1916_v58, %v1887_v39  ;;  %v1911_v0 = vmul.f32 %v1909_v40, %v1901_v48 }
 0x91c   : > { %v1928_v2 = vmul.f32 %v4191_v52, %v1918_v61  ;;  %v1913_v36 = vadd.f32 -0.28449672, %v1911_v0 }
 0x91e   : > { %v1930_v4 = vsub.f32 1.0, %v1928_v2  ;;  %v1915_v28 = vmul.f32 %v1913_v36, %v1901_v48 }
 0x920   : > { %v1932_v56 = vmul.f32 %v1930_v4, %v1866_v6  ;;  %v1917_v7 = vadd.f32 0.2548296, %v1915_v28 }
 0x922   : > { %v1934_v8 = vadd.f32 1.0, %v1932_v56  ;;  %v1919_v5 = vmul.f32 %v1917_v7, %v1901_v48 }
 0x924   : > { %v1936_v10 = vmul.f32 %v1934_v8, %v1860_v3  ;;  %v1929_v11 = vmul.f32 %v4193_v35, %v1919_v5 }
 0x926   : > { %3885 = vmatmul.msk.f32.vlgmr.msra.gmra.mxu3 %vm1947_vm8, %v1936_v10  ;;  %v1931_v60 = vsub.f32 1.0, %v1929_v11 }
 0x928   : > { %v1933_v63 = vmul.f32 %v1931_v60, %v1867_v12 }
 0x92a   : > { %v1935_v14 = vadd.f32 1.0, %v1933_v63 }
 0x92c   : > { %v1937_v15 = vmul.f32 %v1935_v14, %v1861_v13 }
 0x92e   : > { %3886 = vmatmul.msk.f32.gmra.mxu3 %vm1947_vm8, %v1937_v15 }
 0x9a9   : > { %v1971_v16 = vpop.f32.mrf.mxu3 }
 0x9aa   : > { %v5214_v17 = vadd.f32 %v1971_v16, %v1946_v62 }
 0x9ac   : > { %3891 = vmatmul.msk.f32.vlgmr.msra.gmra.mxu0 %vm610_vm6, %v5214_v17 }
 0x9b1   : > { %v1974_v1 = vpop.f32.mrf.mxu3 }
 0x9b2   : > { %v5218_v39 = vadd.f32 %v1974_v1, %v1946_v62 }
 0x9b4   : > { %3892 = vmatmul.msk.f32.gmra.mxu0 %vm610_vm6, %v5218_v39 }
 0xa29   : > { %v2006_v19 = vpop.f32.mrf.mxu0 }
 0xa2a   : > { %v5223_v21 = vadd.f32 %v2006_v19, %v1982_v9 }
 0xa2c   : > { %v5226_v22 = vmul.f32 0.70710677, %v5223_v21 }
 0xa2e   : > { %v2020_v23 = vand.u32 2147483647, %v5226_v22  ;;  %vm2016_vm9 = vcmp.ge.f32.partialorder %v5226_v22, 0.0 }
 0xa2f   : > { %v2018_v19 = vsel %vm2016_vm9, 1.0, %v4340_v25 }
 0xa30   : > { %v2022_v18 = vmul.f32 0.3275911, %v2020_v23  ;;  %v2072_v54 = vsub.f32 0.0, %v2020_v23 }
 0xa31   : > { %v2009_v29 = vpop.f32.mrf.mxu0 }
 0xa32   : > { %v2024_v27 = vadd.f32 1.0, %v2022_v18  ;;  %v5229_v31 = vadd.f32 %v2009_v29, %v1982_v9  ;;  %v2074_v52 = vmul.f32 %v2072_v54, %v2020_v23  ;;  %v2012_v29 = vmul.f32 0.5, %v5223_v21 }
 0xa33   : > { %v2092_v21 = vperm.slane %v5079_v20, 5 }
 0xa34   : > { %4194 = vrcp.f32 %v2024_v27  ;;  %v5232_v32 = vmul.f32 0.70710677, %v5229_v31  ;;  %v2037_v44 = vand.u32 2147483648, %v2024_v27  ;;  %v2035_v47 = vand.u32 2147483647, %v2024_v27 }
 0xa35   : > { %vm2031_vm11 = vweird.f32 %v2024_v27  ;;  %v2076_v56 = vmul.f32 1.442695, %v2074_v52  ;;  %v3937_v52 = vld [vmem:[%s6022_s5 + $0x2b8] sm:$0xff] }
 0xa36   : > { %v2021_v33 = vand.u32 2147483647, %v5232_v32  ;;  %v2038_v49 = vor.u32 1.1754944e-38, %v2037_v44  ;;  %vm2036_vm14 = vcmp.eq.f32.partialorder %v2035_v47, 8.507059e+37  ;;  %2351 = vmatpush.msra.mxu1 %v3937_v52 }
 0xa38   : > { %v2023_v37 = vmul.f32 0.3275911, %v2021_v33  ;;  %v2073_v8 = vsub.f32 0.0, %v2021_v33 }
 0xa3a   : > { %v4195_v34 = vpop.eup %4194  ;;  %v2025_v42 = vadd.f32 1.0, %v2023_v37  ;;  %v2075_v12 = vmul.f32 %v2073_v8, %v2021_v33 }
 0xa3b   : > { %v2027_v38 = vmul.f32 %v4195_v34, %v2024_v27  ;;  %vm2032_vm10 = vweird.f32 %v4195_v34 }
 0xa3c   : > { %4196 = vrcp.f32 %v2025_v42  ;;  %vm2033_vm13 = vmor %vm2031_vm11, %vm2032_vm10  ;;  %v2051_v46 = vand.u32 2147483648, %v2025_v42  ;;  %v2049_v2 = vand.u32 2147483647, %v2025_v42  ;;  %vm2045_vm3 = vweird.f32 %v2025_v42 }
 0xa3d   : > { %v2028_v43 = vsub.f32 1.0, %v2027_v38  ;;  %4198 = vpow2.f32 %v2076_v56  ;;  %v2078_v30 = vmul.f32 1.442695, %v2075_v12  ;;  %vm2017_vm10 = vcmp.ge.f32.partialorder %v5232_v32, 0.0  ;;  %v3910_v56 = vld [vmem:[%s6022_s5 + $0x1e0] sm:$0xff]  ;;  %v3900_v12 = vld [vmem:[%s6022_s5 + $0x190] sm:$0xff] }
 0xa3e   : > { %v2052_v28 = vor.u32 1.1754944e-38, %v2051_v46  ;;  %vm2050_vm5 = vcmp.eq.f32.partialorder %v2049_v2, 8.507059e+37  ;;  %v3934_v46 = vld [vmem:[%s6022_s5 + $0x2a0] sm:$0xff]  ;;  %v3923_v2 = vld [vmem:[%s6022_s5 + $0x248] sm:$0xff] }
 0xa3f   : > { %v2029_v45 = vmul.f32 %v4195_v34, %v2028_v43  ;;  %4200 = vpow2.f32 %v2078_v30  ;;  %v2019_v43 = vsel %vm2017_vm10, 1.0, %v4340_v25  ;;  %2282 = vmatpush.msra.mxu2 %v3934_v46  ;;  %v4270_v46 = vld [vmem:[%s6025_s8] sm:$0xff] }
 0xa41   : > { %v2030_v48 = vadd.f32 %v4195_v34, %v2029_v45  ;;  %v2013_v45 = vmul.f32 0.5, %v5229_v31 }
 0xa42   : > { %v4197_v41 = vpop.eup %4196 }
 0xa43   : > { %v2034_v51 = vsel %vm2033_vm13, %v4195_v34, %v2030_v48  ;;  %v2041_v55 = vmul.f32 %v4197_v41, %v2025_v42  ;;  %vm2046_vm2 = vweird.f32 %v4197_v41  ;;  %v4199_v24 = vpop.eup %4198 }
 0xa44   : > { %v2039_v53 = vsel %vm2036_vm14, %v2038_v49, %v2034_v51  ;;  %vm2047_vm4 = vmor %vm2045_vm3, %vm2046_vm2 }
 0xa45   : > { %v2054_v58 = vmul.f32 1.0614054, %v2039_v53  ;;  %v2042_v40 = vsub.f32 1.0, %v2041_v55  ;;  %v4201_v34 = vpop.eup %4200 }
 0xa47   : > { %v2056_v61 = vadd.f32 -1.4531521, %v2054_v58  ;;  %v2043_v0 = vmul.f32 %v4197_v41, %v2042_v40 }
 0xa49   : > { %v2058_v36 = vmul.f32 %v2056_v61, %v2039_v53  ;;  %v2044_v4 = vadd.f32 %v4197_v41, %v2043_v0  ;;  %v3922_v0 = vld [vmem:[%s6022_s5 + $0x240] sm:$0xff] }
 0xa4a   : > { %2283 = vmatpush.msra.mxu2 %v3922_v0 }
 0xa4b   : > { %v2060_v6 = vadd.f32 1.4214138, %v2058_v36  ;;  %v2048_v7 = vsel %vm2047_vm4, %v4197_v41, %v2044_v4  ;;  %v3924_v36 = vld [vmem:[%s6022_s5 + $0x250] sm:$0xff] }
 0xa4c   : > { %v2053_v5 = vsel %vm2050_vm5, %v2052_v28, %v2048_v7  ;;  %v3911_v7 = vld [vmem:[%s6022_s5 + $0x1e8] sm:$0xff]  ;;  %2284 = vmatpush.msra.mxu2 %v3910_v56  ;;  %v3945_v56 = vld [vmem:[%s6022_s5 + $0x2f8] sm:$0xff] }
 0xa4d   : > { %v2062_v3 = vmul.f32 %v2060_v6, %v2039_v53  ;;  %v2055_v35 = vmul.f32 1.0614054, %v2053_v5  ;;  %v3925_v6 = vld [vmem:[%s6022_s5 + $0x258] sm:$0xff] }
 0xa4e   : > { %2352 = vmatpush.msra.mxu1 %v3925_v6 }
 0xa4f   : > { %v2064_v10 = vadd.f32 -0.28449672, %v2062_v3  ;;  %v2057_v11 = vadd.f32 -1.4531521, %v2055_v35  ;;  %v3912_v3 = vld [vmem:[%s6022_s5 + $0x1f0] sm:$0xff] }
 0xa51   : > { %v2066_v60 = vmul.f32 %v2064_v10, %v2039_v53  ;;  %v2059_v63 = vmul.f32 %v2057_v11, %v2053_v5  ;;  %v3898_v11 = vld [vmem:[%s6022_s5 + $0x180] sm:$0xff] }
 0xa52   : > { %2285 = vmatpush.msra.mxu2 %v3898_v11  ;;  %v3918_v11 = vld [vmem:[%s6022_s5 + $0x220] sm:$0xff] }
 0xa53   : > { %v2068_v13 = vadd.f32 0.2548296, %v2066_v60  ;;  %v2061_v14 = vadd.f32 1.4214138, %v2059_v63  ;;  %v3899_v60 = vld [vmem:[%s6022_s5 + $0x188] sm:$0xff]  ;;  %v3901_v63 = vld [vmem:[%s6022_s5 + $0x198] sm:$0xff] }
 0xa55   : > { %v2070_v15 = vmul.f32 %v2068_v13, %v2039_v53  ;;  %v2063_v62 = vmul.f32 %v2061_v14, %v2053_v5 }
 0xa57   : > { %v2080_v16 = vmul.f32 %v4199_v24, %v2070_v15  ;;  %v2065_v1 = vadd.f32 -0.28449672, %v2063_v62 }
 0xa59   : > { %v2082_v9 = vsub.f32 1.0, %v2080_v16  ;;  %v2067_v23 = vmul.f32 %v2065_v1, %v2053_v5 }
 0xa5b   : > { %v2084_v18 = vmul.f32 %v2082_v9, %v2018_v19  ;;  %v2069_v27 = vadd.f32 0.2548296, %v2067_v23  ;;  %v3938_v9 = vld [vmem:[%s6022_s5 + $0x2c0] sm:$0xff]  ;;  %v3939_v19 = vld [vmem:[%s6022_s5 + $0x2c8] sm:$0xff]  ;;  %v3940_v23 = vld [vmem:[%s6022_s5 + $0x2d0] sm:$0xff] }
 0xa5c   : > { %2374 = vmatpush.msrb.mxu2 %v3938_v9  ;;  %v5486_v9 = vld [vmem:[%s6023_s6 + $0xc] sm:$0xff] }
 0xa5d   : > { %v2086_v33 = vadd.f32 1.0, %v2084_v18  ;;  %v2071_v37 = vmul.f32 %v2069_v27, %v2053_v5  ;;  %v3913_v5 = vld [vmem:[%s6022_s5 + $0x1f8] sm:$0xff] }
 0xa5e   : > { %2353 = vmatpush.msra.mxu1 %v3913_v5  ;;  %v3941_v27 = vld [vmem:[%s6022_s5 + $0x2d8] sm:$0xff] }
 0xa5f   : > { %v2088_v38 = vmul.f32 %v2086_v33, %v2012_v29  ;;  %v2081_v42 = vmul.f32 %v4201_v34, %v2071_v37  ;;  %v3926_v29 = vld [vmem:[%s6022_s5 + $0x260] sm:$0xff]  ;;  %v3927_v33 = vld [vmem:[%s6022_s5 + $0x268] sm:$0xff]  ;;  %v3928_v37 = vld [vmem:[%s6022_s5 + $0x270] sm:$0xff] }
 0xa60   : > { %2354 = vmatpush.msra.mxu1 %v3901_v63  ;;  %v3929_v34 = vld [vmem:[%s6022_s5 + $0x278] sm:$0xff]  ;;  %2375 = vmatpush.msrb.mxu2 %v3926_v29 }
 0xa61   : > { %3894 = vmatmul.msk.f32.vlgmr.msrb.gmra.mxu1 %vm1733_vm12, %v2088_v38  ;;  %v2083_v22 = vsub.f32 1.0, %v2081_v42  ;;  %v3914_v38 = vld [vmem:[%s6022_s5 + $0x200] sm:$0xff]  ;;  %v3921_v63 = vld [vmem:[%s6022_s5 + $0x238] sm:$0xff] }
 0xa62   : > { %2443 = vmatpush.msrb.mxu1 %v3941_v27  ;;  %2376 = vmatpush.msrb.mxu2 %v3914_v38 }
 0xa63   : > { %v2085_v44 = vmul.f32 %v2083_v22, %v2019_v43  ;;  %v3915_v22 = vld [vmem:[%s6022_s5 + $0x208] sm:$0xff]  ;;  %v3916_v43 = vld [vmem:[%s6022_s5 + $0x210] sm:$0xff] }
 0xa64   : > { %2444 = vmatpush.msrb.mxu1 %v3929_v34  ;;  %v2241_v34 = vperm.slane %v5486_v9, 1 }
 0xa65   : > { %v2087_v47 = vadd.f32 1.0, %v2085_v44  ;;  %v3917_v44 = vld [vmem:[%s6022_s5 + $0x218] sm:$0xff] }
 0xa66   : > { %2445 = vmatpush.msrb.mxu1 %v3917_v44  ;;  %v2240_v44 = vperm.slane %v5486_v9, 0 }
 0xa67   : > { %v2089_v26 = vmul.f32 %v2087_v47, %v2013_v45  ;;  %v3902_v47 = vld [vmem:[%s6022_s5 + $0x1a0] sm:$0xff] }
 0xa68   : > { %2377 = vmatpush.msrb.mxu2 %v3902_v47 }
 0xa69   : > { %3895 = vmatmul.msk.f32.gmra.mxu1 %vm1733_vm12, %v2089_v26  ;;  %v3903_v26 = vld [vmem:[%s6022_s5 + $0x1a8] sm:$0xff] }
 0xade   : > { %v2116_v48 = vpop.f32.mrf.mxu1 }
 0xadf   : > { %v2117_v49 = vadd.f32 %v2116_v48, %v2092_v21 }
 0xae1   : > { %v2122_v41 = vadd.f32 %v2117_v49, %v5214_v17  ;;  %v3904_v49 = vld [vmem:[%s6022_s5 + $0x1b0] sm:$0xff] }
 0xae3   : > { %v5249_v32 = vadd.f32 %v2122_v41, %v5146_v50  ;;  %v3905_v41 = vld [vmem:[%s6022_s5 + $0x1b8] sm:$0xff] }
 0xae4   : > { %2446 = vmatpush.msrb.mxu1 %v3905_v41  ;;  %v4008_v41 = vld [vmem:[%s6024_s7 + $0x2f0] sm:$0xff] }
 0xae5   : > { %v2126_v51 = vsel %vm610_vm6, %v5249_v32, 0.0  ;;  %v2134_v53 = vmul.f32 %v5249_v32, %v5249_v32 }
 0xae6   : > { %2127 = vadd.xlane.f32.xlu1 %v2126_v51  ;;  %v2119_v31 = vpop.f32.mrf.mxu1 }
 0xae7   : > { %v2136_v54 = vsel %vm610_vm6, %v2134_v53, 0.0  ;;  %v2120_v55 = vadd.f32 %v2119_v31, %v2092_v21 }
 0xae8   : > { %2137 = vadd.xlane.f32.xlu2 %v2136_v54 }
 0xae9   : > { %v2123_v58 = vadd.f32 %v2120_v55, %v5218_v39  ;;  %v3935_v39 = vld [vmem:[%s6022_s5 + $0x2a8] sm:$0xff] }
 0xaea   : > { %2305 = vmatpush.msrb.mxu3 %v3935_v39  ;;  %v2179_v39 = vperm.slane %v4270_v46, 7 }
 0xaeb   : > { %v5258_v40 = vadd.f32 %v2123_v58, %v5150_v57  ;;  %v3936_v57 = vld [vmem:[%s6022_s5 + $0x2b0] sm:$0xff] }
 0xaec   : > { %2328 = vmatpush.msrb.mxu0 %v3936_v57  ;;  %2306 = vmatpush.msrb.mxu3 %v3923_v2 }
 0xaed   : > { %v2129_v50 = vsel %vm614_vm7, %v5258_v40, 0.0  ;;  %v2135_v17 = vmul.f32 %v5258_v40, %v5258_v40 }
 0xaee   : > { %2130 = vadd.xlane.f32.xlu0 %v2129_v50  ;;  %2329 = vmatpush.msrb.mxu0 %v3924_v36  ;;  %v2176_v50 = vperm.slane %v5079_v20, 6  ;;  %v3942_v20 = vld [vmem:[%s6022_s5 + $0x2e0] sm:$0xff] }
 0xaef   : > { %v2139_v61 = vsel %vm614_vm7, %v2135_v17, 0.0  ;;  %2307 = vmatpush.msrb.mxu3 %v3911_v7 }
 0xaf0   : > { %2140 = vadd.xlane.f32.xlu1 %v2139_v61  ;;  %2330 = vmatpush.msrb.mxu0 %v3912_v3  ;;  %v3930_v3 = vld [vmem:[%s6022_s5 + $0x280] sm:$0xff] }
 0xaf1   : > { %2308 = vmatpush.msrb.mxu3 %v3899_v60  ;;  %v3919_v60 = vld [vmem:[%s6022_s5 + $0x228] sm:$0xff] }
 0xaf2   : > { %2331 = vmatpush.msrb.mxu0 %v3900_v12  ;;  %v3920_v12 = vld [vmem:[%s6022_s5 + $0x230] sm:$0xff] }
 0xaf3   : > { %2397 = vmatpush.msra.mxu3 %v3939_v19 }
 0xaf4   : > { %2420 = vmatpush.msra.mxu0 %v3940_v23 }
 0xaf5   : > { %2398 = vmatpush.msra.mxu3 %v3927_v33 }
 0xaf6   : > { %2421 = vmatpush.msra.mxu0 %v3928_v37 }
 0xaf7   : > { %2399 = vmatpush.msra.mxu3 %v3915_v22 }
 0xaf8   : > { %2422 = vmatpush.msra.mxu0 %v3916_v43 }
 0xaf9   : > { %2400 = vmatpush.msra.mxu3 %v3903_v26  ;;  %v4009_v26 = vld [vmem:[%s6024_s7 + $0x2f8] sm:$0xff] }
 0xafa   : > { %2423 = vmatpush.msra.mxu0 %v3904_v49 }
 0xb59   : > { %v2128_v4 = vpop.xlane.xlu1 %2127 }
 0xb5a   : > { %v5290_v28 = vmul.f32 %v2128_v4, %v4566_v59 }
 0xb5b   : > { %v2138_v8 = vpop.xlane.xlu2 %2137 }
 0xb5c   : > { %v2144_v35 = vmul.f32 %v5290_v28, %v5290_v28  ;;  %v2142_v10 = vmul.f32 %v2138_v8, %v4566_v59  ;;  %v2150_v58 = vsub.f32 %v5249_v32, %v5290_v28  ;;  %v3943_v32 = vld [vmem:[%s6022_s5 + $0x2e8] sm:$0xff]  ;;  %v3944_v28 = vld [vmem:[%s6022_s5 + $0x2f0] sm:$0xff] }
 0xb5d   : > { %v3931_v8 = vld [vmem:[%s6022_s5 + $0x288] sm:$0xff] }
 0xb5e   : > { %v2146_v13 = vsub.f32 %v2142_v10, %v2144_v35  ;;  %v3933_v35 = vld [vmem:[%s6022_s5 + $0x298] sm:$0xff] }
 0xb60   : > { %v2148_v14 = vmax.f32 %v2146_v13, 0.0 }
 0xb61   : > { %v2131_v30 = vpop.xlane.xlu0 %2130 }
 0xb62   : > { %v2152_v15 = vadd.f32 1e-12, %v2148_v14  ;;  %v5320_v24 = vmul.f32 %v2131_v30, %v4566_v59  ;;  %v3906_v14 = vld [vmem:[%s6022_s5 + $0x1c0] sm:$0xff] }
 0xb63   : > { %v2141_v62 = vpop.xlane.xlu1 %2140 }
 0xb64   : > { %4202 = vrsqrt.f32 %v2152_v15  ;;  %v2145_v16 = vmul.f32 %v5320_v24, %v5320_v24  ;;  %v2143_v1 = vmul.f32 %v2141_v62, %v4566_v59  ;;  %vm2160_vm13 = vweird.f32 %v2152_v15  ;;  %v3909_v62 = vld [vmem:[%s6022_s5 + $0x1d8] sm:$0xff] }
 0xb65   : > { %v2151_v7 = vsub.f32 %v5258_v40, %v5320_v24  ;;  %v3932_v40 = vld [vmem:[%s6022_s5 + $0x290] sm:$0xff] }
 0xb66   : > { %v2147_v18 = vsub.f32 %v2143_v1, %v2145_v16  ;;  %v3908_v24 = vld [vmem:[%s6022_s5 + $0x1d0] sm:$0xff] }
 0xb68   : > { %v2149_v42 = vmax.f32 %v2147_v18, 0.0  ;;  %v2242_v18 = vperm.slane %v5486_v9, 2 }
 0xb6a   : > { %v4203_v45 = vpop.eup %4202  ;;  %v2153_v48 = vadd.f32 1e-12, %v2149_v42 }
 0xb6b   : > { %v2155_v21 = vmul.f32 %v4203_v45, %v2152_v15  ;;  %vm2161_vm11 = vweird.f32 %v4203_v45  ;;  %v3907_v15 = vld [vmem:[%s6022_s5 + $0x1c8] sm:$0xff] }
 0xb6c   : > { %4204 = vrsqrt.f32 %v2153_v48  ;;  %vm2162_vm14 = vmor %vm2160_vm13, %vm2161_vm11  ;;  %vm2170_vm3 = vweird.f32 %v2153_v48 }
 0xb6d   : > { %v2156_v51 = vmul.f32 %v4203_v45, %v2155_v21 }
 0xb6f   : > { %v2157_v53 = vmul.f32 0.5, %v2156_v51  ;;  %v4007_v51 = vld [vmem:[%s6024_s7 + $0x2e8] sm:$0xff] }
 0xb71   : > { %v2158_v31 = vsub.f32 1.5, %v2157_v53 }
 0xb72   : > { %v4205_v54 = vpop.eup %4204 }
 0xb73   : > { %v2159_v55 = vmul.f32 %v4203_v45, %v2158_v31  ;;  %v2165_v17 = vmul.f32 %v4205_v54, %v2153_v48  ;;  %vm2171_vm2 = vweird.f32 %v4205_v54  ;;  %v4006_v31 = vld [vmem:[%s6024_s7 + $0x2e0] sm:$0xff] }
 0xb74   : > { %vm2172_vm4 = vmor %vm2170_vm3, %vm2171_vm2 }
 0xb75   : > { %v2163_v61 = vsel %vm2162_vm14, %v4203_v45, %v2159_v55  ;;  %v2166_v52 = vmul.f32 %v4205_v54, %v2165_v17  ;;  %v4005_v55 = vld [vmem:[%s6024_s7 + $0x2d8] sm:$0xff] }
 0xb76   : > { %v2174_v57 = vmul.f32 %v2163_v61, %v2150_v58  ;;  %v2244_v58 = vperm.slane %v5486_v9, 4 }
 0xb77   : > { %v2167_v2 = vmul.f32 0.5, %v2166_v52  ;;  %v4004_v52 = vld [vmem:[%s6024_s7 + $0x2d0] sm:$0xff] }
 0xb78   : > { %v2177_v0 = vmul.f32 %v2176_v50, %v2174_v57 }
 0xb79   : > { %v2168_v4 = vsub.f32 1.5, %v2167_v2 }
 0xb7a   : > { %v5379_v36 = vadd.f32 %v2179_v39, %v2177_v0 }
 0xb7b   : > { %v2169_v6 = vmul.f32 %v4205_v54, %v2168_v4  ;;  %v4003_v4 = vld [vmem:[%s6024_s7 + $0x2c8] sm:$0xff] }
 0xb7c   : > { %3948 = vmatmul.msk.f32.vlgmr.msra.gmra.mxu2 %vm610_vm6, %v5379_v36  ;;  %3950 = vmatmul.msk.f32.vlgmr.msrb.gmra.mxu3 %vm610_vm6, %v5379_v36 }
 0xb7d   : > { %3952 = vmatmul.msk.f32.vlgmr.msrb.gmra.mxu0 %vm610_vm6, %v5379_v36  ;;  %3954 = vmatmul.msk.f32.vlgmr.msra.gmra.mxu1 %vm610_vm6, %v5379_v36  ;;  %v2173_v5 = vsel %vm2172_vm4, %v4205_v54, %v2169_v6  ;;  %v5513_v54 = vld [vmem:[%s6023_s6 + $0x14] sm:$0xf]  ;;  %v2247_v6 = vperm.slane %v5486_v9, 7 }
 0xb7e   : > { %2466 = vmatpush.msra.mxu2 %v3942_v20  ;;  %2489 = vmatpush.msrb.mxu3 %v3943_v32  ;;  %v2175_v10 = vmul.f32 %v2173_v5, %v2151_v7  ;;  %v2250_v57 = vperm.slane %v5513_v54, 2  ;;  %v2243_v32 = vperm.slane %v5486_v9, 3  ;;  %v4002_v7 = vld [vmem:[%s6024_s7 + $0x2c0] sm:$0xff]  ;;  %v4001_v5 = vld [vmem:[%s6024_s7 + $0x2b8] sm:$0xff] }
 0xb7f   : > { %2512 = vmatpush.msrb.mxu0 %v3944_v28  ;;  %2535 = vmatpush.msra.mxu1 %v3945_v56 }
 0xb80   : > { %2467 = vmatpush.msra.mxu2 %v3930_v3  ;;  %2490 = vmatpush.msrb.mxu3 %v3931_v8  ;;  %v2178_v13 = vmul.f32 %v2176_v50, %v2175_v10  ;;  %v2245_v50 = vperm.slane %v5486_v9, 5  ;;  %v4000_v10 = vld [vmem:[%s6024_s7 + $0x2b0] sm:$0xff] }
 0xb81   : > { %2513 = vmatpush.msrb.mxu0 %v3932_v40  ;;  %2536 = vmatpush.msra.mxu1 %v3933_v35 }
 0xb82   : > { %2468 = vmatpush.msra.mxu2 %v3918_v11  ;;  %2491 = vmatpush.msrb.mxu3 %v3919_v60  ;;  %v5433_v30 = vadd.f32 %v2179_v39, %v2178_v13  ;;  %v3997_v13 = vld [vmem:[%s6024_s7 + $0x298] sm:$0xff] }
 0xb83   : > { %2514 = vmatpush.msrb.mxu0 %v3920_v12  ;;  %2537 = vmatpush.msra.mxu1 %v3921_v63  ;;  %v3999_v12 = vld [vmem:[%s6024_s7 + $0x2a8] sm:$0xff]  ;;  %v3998_v63 = vld [vmem:[%s6024_s7 + $0x2a0] sm:$0xff] }
 0xb84   : > { %2469 = vmatpush.msra.mxu2 %v3906_v14  ;;  %2492 = vmatpush.msrb.mxu3 %v3907_v15  ;;  %v2248_v14 = vperm.slane %v5513_v54, 0 }
 0xb85   : > { %3949 = vmatmul.msk.f32.gmra.mxu2 %vm610_vm6, %v5433_v30  ;;  %3951 = vmatmul.msk.f32.gmra.mxu3 %vm610_vm6, %v5433_v30 }
 0xb86   : > { %3953 = vmatmul.msk.f32.gmra.mxu0 %vm610_vm6, %v5433_v30  ;;  %3955 = vmatmul.msk.f32.gmra.mxu1 %vm610_vm6, %v5433_v30 }
 0xb87   : > { %2515 = vmatpush.msrb.mxu0 %v3908_v24  ;;  %2538 = vmatpush.msra.mxu1 %v3909_v62  ;;  %v3996_v62 = vld [vmem:[%s6024_s7 + $0x290] sm:$0xff] }
 0xb8d   : > { %3956 = vmatmul.msk.f32.vlgmr.msrb.gmra.mxu2 %vm610_vm6, %v5379_v36  ;;  %3958 = vmatmul.msk.f32.vlgmr.msra.gmra.mxu3 %vm610_vm6, %v5379_v36 }
 0xb8e   : > { %3960 = vmatmul.msk.f32.vlgmr.msra.gmra.mxu0 %vm610_vm6, %v5379_v36  ;;  %3962 = vmatmul.msk.f32.vlgmr.msrb.gmra.mxu1 %vm610_vm6, %v5379_v36 }
 0xb95   : > { %3957 = vmatmul.msk.f32.gmra.mxu2 %vm610_vm6, %v5433_v30  ;;  %3959 = vmatmul.msk.f32.gmra.mxu3 %vm610_vm6, %v5433_v30 }
 0xb96   : > { %3961 = vmatmul.msk.f32.gmra.mxu0 %vm610_vm6, %v5433_v30  ;;  %3963 = vmatmul.msk.f32.gmra.mxu1 %vm610_vm6, %v5433_v30 }
 0xb9d   : > { %3964 = vmatmul.msk.f32.vlgmr.msra.gmra.mxu2 %vm610_vm6, %v5379_v36  ;;  %3966 = vmatmul.msk.f32.vlgmr.msrb.gmra.mxu3 %vm610_vm6, %v5379_v36 }
 0xb9e   : > { %3968 = vmatmul.msk.f32.vlgmr.msrb.gmra.mxu0 %vm610_vm6, %v5379_v36  ;;  %3970 = vmatmul.msk.f32.vlgmr.msra.gmra.mxu1 %vm610_vm6, %v5379_v36 }
 0xba5   : > { %3965 = vmatmul.msk.f32.gmra.mxu2 %vm610_vm6, %v5433_v30  ;;  %3967 = vmatmul.msk.f32.gmra.mxu3 %vm610_vm6, %v5433_v30 }
 0xba6   : > { %3969 = vmatmul.msk.f32.gmra.mxu0 %vm610_vm6, %v5433_v30  ;;  %3971 = vmatmul.msk.f32.gmra.mxu1 %vm610_vm6, %v5433_v30 }
 0xbfa   : > { %v2333_v16 = vpop.f32.mrf.mxu0  ;;  %v5481_v1 = vpop.f32.mrf.mxu1 }
 0xbfb   : > { %v2334_v37 = vadd.f32 %v2333_v16, %v2242_v18  ;;  %v2357_v40 = vadd.f32 %v5481_v1, %v2243_v32  ;;  %v3995_v1 = vld [vmem:[%s6024_s7 + $0x288] sm:$0xff] }
 0xbff   : > { %v2287_v19 = vpop.f32.mrf.mxu2  ;;  %v2310_v23 = vpop.f32.mrf.mxu3 }
 0xc00   : > { %v2311_v45 = vadd.f32 %v2310_v23, %v2241_v34  ;;  %v2288_v21 = vadd.f32 %v2287_v19, %v2240_v44 }
 0xc03   : > { %v2336_v27 = vpop.f32.mrf.mxu0  ;;  %v5489_v29 = vpop.f32.mrf.mxu1 }
 0xc04   : > { %v2337_v33 = vadd.f32 %v2336_v27, %v2242_v18  ;;  %v2360_v15 = vadd.f32 %v5489_v29, %v2243_v32  ;;  %v2246_v18 = vperm.slane %v5486_v9, 6  ;;  %v2251_v27 = vperm.slane %v5513_v54, 3  ;;  %v3994_v29 = vld [vmem:[%s6024_s7 + $0x280] sm:$0xff] }
 0xc06   : > { %3972 = vmatpush.msk.msra.mxu3 %vm556_vm0, %v2337_v33 }
 0xc08   : > { %2641 = vmatpush.msra.mxu3 %v2334_v37  ;;  %v2290_v38 = vpop.f32.mrf.mxu2  ;;  %v2313_v42 = vpop.f32.mrf.mxu3 }
 0xc09   : > { %v2314_v22 = vadd.f32 %v2313_v42, %v2241_v34  ;;  %v2291_v61 = vadd.f32 %v2290_v38, %v2240_v44 }
 0xc0b   : > { %v5493_v43 = vpop.f32.mrf.mxu0  ;;  %2560 = vmatpush.xpose.msrb.mxu2 %v2314_v22  ;;  %v2448_v47 = vpop.f32.mrf.mxu1  ;;  %v5573_v22 = vld [vmem:[%s4483_s18] ss:$0 sm:$0xff]  ;;  %s4286_s18 = sshra.s32 %s3711_s23, 4  ;;  %s4287_s18 = int_to_ptr.hbm [resolvable:$true] %s4286_s18 }
 0xc0c   : > { %v2449_v60 = vadd.f32 %v2448_v47, %v2247_v6  ;;  %v2426_v37 = vadd.f32 %v5493_v43, %v2246_v18  ;;  %s4288_s27 = scalar_lea.hbm %s4287_s18, 8  ;;  %p4293_p0 = scmp.lt.s32.totalorder %s4287_s18, %s6032_s15 }
 0xc0d   : > { %p4289_p11 = scmp.ne.s32.totalorder %s4287_s18, %s4288_s27  ;;  %p4294_p1 = scmp.lt.s32.totalorder %s4292_s29, %s4288_s27 }
 0xc0f   : > { %2561 = vmatpush.xpose.msrb.mxu2 %v2311_v45  ;;  %p4290_p12 = pnand %p4289_p11, %p4459_p5  ;;  %p4295_p2 = por %p4294_p1, %p4293_p0 }
 0xc10   : > { %v2379_v48 = vpop.f32.mrf.mxu2  ;;  %v2402_v49 = vpop.f32.mrf.mxu3 }
 0xc11   : > { %v2403_v28 = vadd.f32 %v2402_v49, %v2245_v50  ;;  %v2380_v3 = vadd.f32 %v2379_v48, %v2244_v58  ;;  %p4291_p13 = pneg %p4290_p12 }
 0xc12   : > { %2562 = vmatmul.f32.vlgmr.msrb.gmra.mxu2 %v2288_v21 }
 0xc13   : > { %2786 = vmatpush.msra.mxu2 %v4009_v26  ;;  %v5505_v53 = vpop.f32.mrf.mxu0  ;;  %v2451_v17 = vpop.f32.mrf.mxu1  ;;  %p4296_p3 = pnand %p4295_p2, %p4291_p13 }
 0xc14   : > { %v2452_v8 = vadd.f32 %v2451_v17, %v2247_v6  ;;  %v2429_v9 = vadd.f32 %v5505_v53, %v2246_v18 }
 0xc15   : > { %2787 = vmatpush.msra.mxu2 %v4008_v41 }
 0xc17   : > { %2788 = vmatpush.msra.mxu2 %v4007_v51 }
 0xc18   : > { %v2382_v46 = vpop.f32.mrf.mxu2  ;;  %v2405_v39 = vpop.f32.mrf.mxu3 }
 0xc19   : > { %2789 = vmatpush.msra.mxu2 %v4006_v31  ;;  %v2383_v0 = vadd.f32 %v2382_v46, %v2244_v58  ;;  %v2406_v2 = vadd.f32 %v2405_v39, %v2245_v50 }
 0xc1a   : > { %2565 = vmatmul.f32.gmra.mxu2 %v2291_v61 }
 0xc1b   : > { %2790 = vmatpush.msra.mxu2 %v4005_v55  ;;  %v2517_v20 = vpop.f32.mrf.mxu0  ;;  %2680 = vmatpush.xpose.msra.mxu0 %v2383_v0  ;;  %v2540_v11 = vpop.f32.mrf.mxu1 }
 0xc1c   : > { %v5531_v56 = vadd.f32 %v2517_v20, %v2250_v57  ;;  %3991 = vmatpush.msk.msrb.mxu1 %vm556_vm0, %v2406_v2  ;;  %v2541_v34 = vadd.f32 %v2540_v11, %v2251_v27 }
 0xc1d   : > { %2791 = vmatpush.msra.mxu2 %v4004_v52 }
 0xc1e   : > { %2761 = vmatpush.msrb.mxu1 %v2403_v28 }
 0xc1f   : > { %2792 = vmatpush.msra.mxu2 %v4003_v4  ;;  %2681 = vmatpush.xpose.msra.mxu0 %v2380_v3 }
 0xc20   : > { %v2471_v35 = vpop.f32.mrf.mxu2 }
 0xc21   : > { %2793 = vmatpush.msra.mxu2 %v4002_v7  ;;  %v2472_v19 = vadd.f32 %v2471_v35, %v2248_v14 }
 0xc22   : > { %2682 = vmatmul.f32.vlgmr.msra.gmra.mxu0 %v2357_v40 }
 0xc23   : > { %2846 = vmatpush.xpose.msrb.mxu0 %v2452_v8  ;;  %2794 = vmatpush.msra.mxu2 %v4001_v5  ;;  %v2543_v23 = vpop.f32.mrf.mxu1  ;;  %v5570_v38 = vpop.f32.mrf.mxu0 }
 0xc24   : > { %v2544_v33 = vadd.f32 %v2543_v23, %v2251_v27 }
 0xc25   : > { %2795 = vmatpush.msra.mxu2 %v4000_v10 }
 0xc27   : > { %2847 = vmatpush.xpose.msrb.mxu0 %v2449_v60  ;;  %2796 = vmatpush.msra.mxu2 %v3999_v12 }
 0xc28   : > { %v2474_v24 = vpop.f32.mrf.mxu2 }
 0xc29   : > { %2797 = vmatpush.msra.mxu2 %v3998_v63  ;;  %v2475_v16 = vadd.f32 %v2474_v24, %v2248_v14 }
 0xc2a   : > { %2685 = vmatmul.f32.gmra.mxu0 %v2360_v15 }
 0xc2b   : > { %2798 = vmatpush.msra.mxu2 %v3997_v13  ;;  %4010 = vmatpush.msk.msra.mxu1 %vm556_vm0, %v2475_v16 }
 0xc2d   : > { %2799 = vmatpush.msra.mxu2 %v3996_v62  ;;  %2927 = vmatpush.msra.mxu1 %v2472_v19 }
 0xc2f   : > { %2800 = vmatpush.msra.mxu2 %v3995_v1 }
 0xc31   : > { %2801 = vmatpush.msra.mxu2 %v3994_v29 }
 0xc32   : > { %2848 = vmatmul.f32.vlgmr.msrb.gmra.mxu0 %v2426_v37 }
 0xc33   : > { %4029 = vmatpush.msk.msrb.mxu2 %vm556_vm0, %v2544_v33 }
 0xc35   : > { %3072 = vmatpush.msrb.mxu2 %v2541_v34 }
 0xc3a   : > { %2851 = vmatmul.f32.gmra.mxu0 %v2429_v9 }
 0xc95   : > { %v2563_v4 = vpop.f32.mrf.mxu2 }
 0xc96   : > { %v2564_v6 = vadd.f32 %v5573_v22, %v2563_v4  ;;  %v4026_v4 = vld [vmem:[%s6024_s7 + $0x368] sm:$0xff] }
 0xc98   : > { %v2569_v40 = vsel %vm1062_vm15, %v2564_v6, -inf }
 0xc9d   : > { %v2566_v35 = vpop.f32.mrf.mxu2 }
 0xc9e   : > { %v5595_v10 = vadd.f32 %v5573_v22, %v2566_v35 }
 0xc9f   : > { %v2683_v42 = vpop.f32.mrf.mxu0 }
 0xca0   : > { %v2684_v44 = vadd.f32 %v5573_v22, %v2683_v42  ;;  %v2572_v12 = vsel %vm1066_vm1, %v5595_v10, -inf }
 0xca2   : > { %v2689_v45 = vsel %vm1062_vm15, %v2684_v44, -inf }
 0xca3   : > { %2690 = vmax.xlane.f32.xlu2 %v2689_v45  ;;  %v2521_v45 = vadd.f32 %v5570_v38, %v2250_v57 }
 0xca7   : > { %v2686_v47 = vpop.f32.mrf.mxu0 }
 0xca8   : > { %v2687_v43 = vadd.f32 %v5573_v22, %v2686_v47 }
 0xcaa   : > { %v2692_v26 = vsel %vm1066_vm1, %v2687_v43, -inf }
 0xcab   : > { %2693 = vmax.xlane.f32.xlu0 %v2692_v26 }
 0xcaf   : > { %v2849_v21 = vpop.f32.mrf.mxu0 }
 0xcb0   : > { %v2850_v48 = vadd.f32 %v5573_v22, %v2849_v21 }
 0xcb2   : > { %v2855_v49 = vsel %vm1062_vm15, %v2850_v48, -inf }
 0xcb3   : > { %2856 = vmax.xlane.f32.xlu1 %v2855_v49 }
 0xcb7   : > { %v2852_v41 = vpop.f32.mrf.mxu0 }
 0xcb8   : > { %v2853_v51 = vadd.f32 %v5573_v22, %v2852_v41 }
 0xcba   : > { %v2858_v53 = vsel %vm1066_vm1, %v2853_v51, -inf }
 0xcbb   : > { %2859 = vmax.xlane.f32.xlu2 %v2858_v53 }
 0xd16   : > { %v2691_v31 = vpop.xlane.xlu2 %2690 }
 0xd17   : > { %v2695_v55 = vsub.f32 %v2684_v44, %v2691_v31 }
 0xd19   : > { %v2697_v58 = vmul.f32 1.442695, %v2695_v55 }
 0xd1b   : > { %4206 = vpow2.f32 %v2697_v58 }
 0xd1e   : > { %v2694_v50 = vpop.xlane.xlu0 %2693 }
 0xd1f   : > { %v2696_v17 = vsub.f32 %v2687_v43, %v2694_v50 }
 0xd21   : > { %v4207_v61 = vpop.eup %4206  ;;  %v2699_v46 = vmul.f32 1.442695, %v2696_v17 }
 0xd22   : > { %v2701_v39 = vsel %vm1062_vm15, %v4207_v61, 0.0 }
 0xd23   : > { %4208 = vpow2.f32 %v2699_v46  ;;  %2702 = vadd.xlane.f32.xlu0 %v2701_v39  ;;  %v4027_v39 = vld [vmem:[%s6024_s7 + $0x370] sm:$0xff] }
 0xd26   : > { %v2857_v52 = vpop.xlane.xlu1 %2856 }
 0xd27   : > { %v2861_v0 = vsub.f32 %v2850_v48, %v2857_v52 }
 0xd29   : > { %v5584_v2 = vpop.eup %4208  ;;  %v2863_v20 = vmul.f32 1.442695, %v2861_v0 }
 0xd2a   : > { %v2704_v32 = vsel %vm1066_vm1, %v5584_v2, 0.0 }
 0xd2b   : > { %4210 = vpow2.f32 %v2863_v20  ;;  %2705 = vadd.xlane.f32.xlu1 %v2704_v32 }
 0xd2e   : > { %v2860_v28 = vpop.xlane.xlu2 %2859 }
 0xd2f   : > { %v2862_v7 = vsub.f32 %v2853_v51, %v2860_v28  ;;  %v4025_v28 = vld [vmem:[%s6024_s7 + $0x360] sm:$0xff] }
 0xd31   : > { %v5589_v3 = vpop.eup %4210  ;;  %v2865_v8 = vmul.f32 1.442695, %v2862_v7 }
 0xd32   : > { %v2867_v5 = vsel %vm1062_vm15, %v5589_v3, 0.0 }
 0xd33   : > { %4212 = vpow2.f32 %v2865_v8  ;;  %2868 = vadd.xlane.f32.xlu2 %v2867_v5  ;;  %2570 = vmax.xlane.f32.xlu1 %v2569_v40  ;;  %v4024_v40 = vld [vmem:[%s6024_s7 + $0x358] sm:$0xff] }
 0xd39   : > { %v5597_v11 = vpop.eup %4212 }
 0xd3a   : > { %v2870_v60 = vsel %vm1066_vm1, %v5597_v11, 0.0 }
 0xd3b   : > { %2871 = vadd.xlane.f32.xlu0 %v2870_v60  ;;  %2573 = vmax.xlane.f32.xlu2 %v2572_v12  ;;  %v4023_v12 = vld [vmem:[%s6024_s7 + $0x350] sm:$0xff] }
 0xd96   : > { %v2703_v63 = vpop.xlane.xlu0 %2702 }
 0xd97   : > { %4214 = vrcp.f32 %v2703_v63  ;;  %v2718_v62 = vand.u32 2147483648, %v2703_v63  ;;  %v2716_v1 = vand.u32 2147483647, %v2703_v63  ;;  %vm2712_vm5 = vweird.f32 %v2703_v63 }
 0xd99   : > { %v2719_v18 = vor.u32 1.1754944e-38, %v2718_v62  ;;  %vm2717_vm10 = vcmp.eq.f32.partialorder %v2716_v1, 8.507059e+37  ;;  %v2494_v62 = vpop.f32.mrf.mxu3 }
 0xd9d   : > { %v4215_v13 = vpop.eup %4214 }
 0xd9e   : > { %v2708_v14 = vmul.f32 %v4215_v13, %v2703_v63  ;;  %v2706_v15 = vpop.xlane.xlu1 %2705  ;;  %vm2713_vm0 = vweird.f32 %v4215_v13 }
 0xd9f   : > { %4216 = vrcp.f32 %v2706_v15  ;;  %vm2714_vm9 = vmor %vm2712_vm5, %vm2713_vm0  ;;  %v2732_v43 = vand.u32 2147483648, %v2706_v15  ;;  %v2730_v21 = vand.u32 2147483647, %v2706_v15  ;;  %vm2726_vm13 = vweird.f32 %v2706_v15 }
 0xda0   : > { %v2709_v24 = vsub.f32 1.0, %v2708_v14 }
 0xda1   : > { %v2733_v41 = vor.u32 1.1754944e-38, %v2732_v43  ;;  %vm2731_vm2 = vcmp.eq.f32.partialorder %v2730_v21, 8.507059e+37 }
 0xda2   : > { %v2710_v16 = vmul.f32 %v4215_v13, %v2709_v24 }
 0xda4   : > { %v2711_v19 = vadd.f32 %v4215_v13, %v2710_v16  ;;  %v2249_v16 = vperm.slane %v5513_v54, 1  ;;  %v4018_v54 = vld [vmem:[%s6024_s7 + $0x328] sm:$0xff] }
 0xda5   : > { %v4217_v23 = vpop.eup %4216 }
 0xda6   : > { %v2715_v27 = vsel %vm2714_vm9, %v4215_v13, %v2711_v19  ;;  %v2722_v29 = vmul.f32 %v4217_v23, %v2706_v15  ;;  %v2869_v33 = vpop.xlane.xlu2 %2868  ;;  %v2571_v37 = vpop.xlane.xlu1 %2570  ;;  %vm2727_vm11 = vweird.f32 %v4217_v23  ;;  %v4022_v13 = vld [vmem:[%s6024_s7 + $0x348] sm:$0xff]  ;;  %v2495_v1 = vadd.f32 %v2494_v62, %v2249_v16 }
 0xda7   : > { %v2720_v34 = vsel %vm2717_vm10, %v2719_v18, %v2715_v27  ;;  %4218 = vrcp.f32 %v2869_v33  ;;  %v2575_v42 = vsub.f32 %v2564_v6, %v2571_v37  ;;  %vm2728_vm14 = vmor %vm2726_vm13, %vm2727_vm11  ;;  %v2884_v55 = vand.u32 2147483648, %v2869_v33  ;;  %v2497_v19 = vpop.f32.mrf.mxu3  ;;  %v4021_v18 = vld [vmem:[%s6024_s7 + $0x340] sm:$0xff]  ;;  %v4019_v27 = vld [vmem:[%s6024_s7 + $0x330] sm:$0xff] }
 0xda8   : > { %v2723_v9 = vsub.f32 1.0, %v2722_v29  ;;  %v2735_v44 = vmul.f32 %v4207_v61, %v2720_v34  ;;  %v2882_v61 = vand.u32 2147483647, %v2869_v33  ;;  %vm2878_vm4 = vweird.f32 %v2869_v33  ;;  %v4017_v29 = vld [vmem:[%s6024_s7 + $0x320] sm:$0xff]  ;;  %v4015_v37 = vld [vmem:[%s6024_s7 + $0x310] sm:$0xff]  ;;  %v4014_v34 = vld [vmem:[%s6024_s7 + $0x308] sm:$0xff] }
 0xda9   : > { %v2577_v26 = vmul.f32 1.442695, %v2575_v42 }
 0xdaa   : > { %v2724_v47 = vmul.f32 %v4217_v23, %v2723_v9  ;;  %3992 = vmatmul.msk.f32.vlgmr.msrb.gmra.mxu1 %vm1062_vm15, %v2735_v44  ;;  %vm2883_vm5 = vcmp.eq.f32.partialorder %v2882_v61, 8.507059e+37  ;;  %v4013_v9 = vld [vmem:[%s6024_s7 + $0x300] sm:$0xff] }
 0xdab   : > { %2991 = vmatpush.xpose.msrb.mxu1 %v2521_v45  ;;  %4220 = vpow2.f32 %v2577_v26 }
 0xdac   : > { %v2725_v48 = vadd.f32 %v4217_v23, %v2724_v47 }
 0xdad   : > { %v4219_v49 = vpop.eup %4218 }
 0xdae   : > { %v2874_v51 = vmul.f32 %v4219_v49, %v2869_v33  ;;  %v2872_v53 = vpop.xlane.xlu0 %2871  ;;  %v2729_v31 = vsel %vm2728_vm14, %v4217_v23, %v2725_v48  ;;  %vm2879_vm3 = vweird.f32 %v4219_v49  ;;  %v2498_v23 = vadd.f32 %v2497_v19, %v2249_v16  ;;  %v4016_v33 = vld [vmem:[%s6024_s7 + $0x318] sm:$0xff]  ;;  %v2574_v42 = vpop.xlane.xlu2 %2573 }
 0xdaf   : > { %2992 = vmatpush.xpose.msrb.mxu1 %v5531_v56  ;;  %4222 = vrcp.f32 %v2872_v53  ;;  %v2734_v38 = vsel %vm2731_vm2, %v2733_v41, %v2729_v31  ;;  %v4028_v56 = vld [vmem:[%s6024_s7 + $0x378] sm:$0xff]  ;;  %vm2880_vm0 = vmor %vm2878_vm4, %vm2879_vm3  ;;  %v2898_v5 = vand.u32 2147483648, %v2872_v53  ;;  %v2896_v60 = vand.u32 2147483647, %v2872_v53 }
 0xdb0   : > { %v2875_v57 = vsub.f32 1.0, %v2874_v51  ;;  %v2736_v58 = vmul.f32 %v5584_v2, %v2734_v38  ;;  %2952 = vmatpush.msra.mxu0 %v4028_v56  ;;  %v2885_v2 = vor.u32 1.1754944e-38, %v2884_v55  ;;  %vm2892_vm10 = vweird.f32 %v2872_v53 }
 0xdb1   : > { %v5609_v50 = vpop.eup %4220  ;;  %vm2897_vm13 = vcmp.eq.f32.partialorder %v2896_v60, 8.507059e+37  ;;  %v3979_v60 = vld [vmem:[%s6024_s7 + $0x220] sm:$0xff] }
 0xdb2   : > { %v2876_v17 = vmul.f32 %v4219_v49, %v2875_v57  ;;  %3993 = vmatmul.msk.f32.gmra.mxu1 %vm1062_vm15, %v2736_v58  ;;  %v2581_v46 = vsel %vm1062_vm15, %v5609_v50, 0.0  ;;  %2953 = vmatpush.msra.mxu0 %v4027_v39 }
 0xdb3   : > { %2582 = vadd.xlane.f32.xlu2 %v2581_v46 }
 0xdb4   : > { %v2877_v52 = vadd.f32 %v4219_v49, %v2876_v17  ;;  %2954 = vmatpush.msra.mxu0 %v4026_v4  ;;  %v2576_v17 = vsub.f32 %v5595_v10, %v2574_v42  ;;  %v3990_v10 = vld [vmem:[%s6024_s7 + $0x278] sm:$0xff] }
 0xdb5   : > { %v4223_v0 = vpop.eup %4222  ;;  %2809 = vmatpush.msrb.mxu3 %v3990_v10  ;;  %v4041_v10 = vld [vmem:[%s6024_s7 + $0x3c8] sm:$0xff] }
 0xdb6   : > { %v2881_v20 = vsel %vm2880_vm0, %v4219_v49, %v2877_v52  ;;  %v2888_v32 = vmul.f32 %v4223_v0, %v2872_v53  ;;  %vm2893_vm9 = vweird.f32 %v4223_v0  ;;  %2955 = vmatpush.msra.mxu0 %v4025_v28  ;;  %v2579_v61 = vmul.f32 1.442695, %v2576_v17  ;;  %v3985_v28 = vld [vmem:[%s6024_s7 + $0x250] sm:$0xff]  ;;  %v4044_v17 = vld [vmem:[%s6024_s7 + $0x3e0] sm:$0xff] }
 0xdb7   : > { %v2886_v6 = vsel %vm2883_vm5, %v2885_v2, %v2881_v20  ;;  %vm2894_vm11 = vmor %vm2892_vm10, %vm2893_vm9  ;;  %v3989_v20 = vld [vmem:[%s6024_s7 + $0x270] sm:$0xff] }
 0xdb8   : > { %v2901_v7 = vmul.f32 %v5589_v3, %v2886_v6  ;;  %v2889_v8 = vsub.f32 1.0, %v2888_v32  ;;  %2956 = vmatpush.msra.mxu0 %v4024_v40  ;;  %v2899_v3 = vor.u32 1.1754944e-38, %v2898_v5  ;;  %2810 = vmatpush.msrb.mxu3 %v3989_v20  ;;  %v3987_v32 = vld [vmem:[%s6024_s7 + $0x260] sm:$0xff]  ;;  %v3986_v6 = vld [vmem:[%s6024_s7 + $0x258] sm:$0xff]  ;;  %v3981_v40 = vld [vmem:[%s6024_s7 + $0x230] sm:$0xff] }
 0xdb9   : > { %v3982_v5 = vld [vmem:[%s6024_s7 + $0x238] sm:$0xff] }
 0xdba   : > { %v2890_v35 = vmul.f32 %v4223_v0, %v2889_v8  ;;  %4011 = vmatmul.msk.f32.vlgmr.msra.gmra.mxu1 %vm1062_vm15, %v2901_v7  ;;  %2957 = vmatpush.msra.mxu0 %v4023_v12  ;;  %v3984_v7 = vld [vmem:[%s6024_s7 + $0x248] sm:$0xff]  ;;  %v3983_v8 = vld [vmem:[%s6024_s7 + $0x240] sm:$0xff]  ;;  %v3978_v12 = vld [vmem:[%s6024_s7 + $0x218] sm:$0xff] }
 0xdbc   : > { %v2891_v63 = vadd.f32 %v4223_v0, %v2890_v35  ;;  %2958 = vmatpush.msra.mxu0 %v4022_v13  ;;  %v3980_v35 = vld [vmem:[%s6024_s7 + $0x228] sm:$0xff] }
 0xdbe   : > { %v2895_v14 = vsel %vm2894_vm11, %v4223_v0, %v2891_v63  ;;  %2959 = vmatpush.msra.mxu0 %v4021_v18  ;;  %v3977_v63 = vld [vmem:[%s6024_s7 + $0x210] sm:$0xff] }
 0xdbf   : > { %v2900_v15 = vsel %vm2897_vm13, %v2899_v3, %v2895_v14  ;;  %v3976_v3 = vld [vmem:[%s6024_s7 + $0x208] sm:$0xff] }
 0xdc0   : > { %v2902_v24 = vmul.f32 %v5597_v11, %v2900_v15  ;;  %v4020_v11 = vld [vmem:[%s6024_s7 + $0x338] sm:$0xff]  ;;  %v3975_v15 = vld [vmem:[%s6024_s7 + $0x200] sm:$0xff] }
 0xdc1   : > { %2960 = vmatpush.msra.mxu0 %v4020_v11 }
 0xdc2   : > { %4012 = vmatmul.msk.f32.gmra.mxu1 %vm1062_vm15, %v2902_v24 }
 0xdc3   : > { %2961 = vmatpush.msra.mxu0 %v4019_v27 }
 0xdc5   : > { %2962 = vmatpush.msra.mxu0 %v4018_v54 }
 0xdc7   : > { %2963 = vmatpush.msra.mxu0 %v4017_v29 }
 0xdc9   : > { %2964 = vmatpush.msra.mxu0 %v4016_v33 }
 0xdca   : > { %2993 = vmatmul.f32.vlgmr.msrb.gmra.mxu1 %v2495_v1 }
 0xdcb   : > { %2965 = vmatpush.msra.mxu0 %v4015_v37 }
 0xdcd   : > { %2966 = vmatpush.msra.mxu0 %v4014_v34 }
 0xdcf   : > { %2967 = vmatpush.msra.mxu0 %v4013_v9 }
 0xdd2   : > { %2996 = vmatmul.f32.gmra.mxu1 %v2498_v23 }
 0xe26   : > { %v2583_v44 = vpop.xlane.xlu2 %2582 }
 0xe27   : > { %v2763_v45 = vpop.f32.mrf.mxu1  ;;  %4224 = vrcp.f32 %v2583_v44  ;;  %v2598_v48 = vand.u32 2147483648, %v2583_v44  ;;  %v2596_v41 = vand.u32 2147483647, %v2583_v44  ;;  %vm2592_vm2 = vweird.f32 %v2583_v44 }
 0xe28   : > { %2802 = vmatmul.f32.vlgmr.msra.gmra.mxu2 %v2763_v45  ;;  %4226 = vpow2.f32 %v2579_v61 }
 0xe29   : > { %v2599_v53 = vor.u32 1.1754944e-38, %v2598_v48  ;;  %vm2597_vm4 = vcmp.eq.f32.partialorder %v2596_v41, 8.507059e+37  ;;  %v4047_v41 = vld [vmem:[%s6024_s7 + $0x3f8] sm:$0xff] }
 0xe2d   : > { %v4225_v47 = vpop.eup %4224 }
 0xe2e   : > { %v2588_v43 = vmul.f32 %v4225_v47, %v2583_v44  ;;  %vm2593_vm14 = vweird.f32 %v4225_v47  ;;  %v5672_v52 = vpop.eup %4226 }
 0xe2f   : > { %v2766_v26 = vpop.f32.mrf.mxu1  ;;  %vm2594_vm3 = vmor %vm2592_vm2, %vm2593_vm14  ;;  %v2584_v2 = vsel %vm1066_vm1, %v5672_v52, 0.0 }
 0xe30   : > { %v2589_v21 = vsub.f32 1.0, %v2588_v43  ;;  %2805 = vmatmul.f32.gmra.mxu2 %v2766_v26 }
 0xe32   : > { %v2590_v49 = vmul.f32 %v4225_v47, %v2589_v21 }
 0xe34   : > { %v2591_v51 = vadd.f32 %v4225_v47, %v2590_v49 }
 0xe36   : > { %v2595_v31 = vsel %vm2594_vm3, %v4225_v47, %v2591_v51  ;;  %v4046_v51 = vld [vmem:[%s6024_s7 + $0x3f0] sm:$0xff] }
 0xe37   : > { %v2600_v57 = vsel %vm2597_vm4, %v2599_v53, %v2595_v31  ;;  %v2929_v38 = vpop.f32.mrf.mxu1 }
 0xe38   : > { %v2615_v55 = vmul.f32 %v5609_v50, %v2600_v57  ;;  %2968 = vmatmul.f32.vlgmr.msra.gmra.mxu0 %v2929_v38  ;;  %v4045_v57 = vld [vmem:[%s6024_s7 + $0x3e8] sm:$0xff] }
 0xe3a   : > { %3973 = vmatmul.msk.f32.vlgmr.msra.gmra.mxu3 %vm1062_vm15, %v2615_v55 }
 0xe3f   : > { %v2932_v58 = vpop.f32.mrf.mxu1 }
 0xe40   : > { %2971 = vmatmul.f32.gmra.mxu0 %v2932_v58 }
 0xe47   : > { %v2994_v46 = vpop.f32.mrf.mxu1 }
 0xe48   : > { %v2995_v56 = vadd.f32 %v5573_v22, %v2994_v46  ;;  %v4043_v46 = vld [vmem:[%s6024_s7 + $0x3d8] sm:$0xff] }
 0xe4a   : > { %v3000_v39 = vsel %vm1062_vm15, %v2995_v56, -inf }
 0xe4b   : > { %3001 = vmax.xlane.f32.xlu0 %v3000_v39 }
 0xe4f   : > { %v2997_v0 = vpop.f32.mrf.mxu1 }
 0xe50   : > { %v2998_v50 = vadd.f32 %v5573_v22, %v2997_v0  ;;  %v3988_v22 = vld [vmem:[%s6024_s7 + $0x268] sm:$0xff]  ;;  %v4042_v0 = vld [vmem:[%s6024_s7 + $0x3d0] sm:$0xff] }
 0xe51   : > { %2811 = vmatpush.msrb.mxu3 %v3988_v22 }
 0xe52   : > { %v3003_v4 = vsel %vm1066_vm1, %v2998_v50, -inf }
 0xe53   : > { %2585 = vadd.xlane.f32.xlu0 %v2584_v2  ;;  %3004 = vmax.xlane.f32.xlu1 %v3003_v4 }
 0xe54   : > { %2812 = vmatpush.msrb.mxu3 %v3987_v32  ;;  %v4040_v32 = vld [vmem:[%s6024_s7 + $0x3c0] sm:$0xff] }
 0xe56   : > { %2813 = vmatpush.msrb.mxu3 %v3986_v6 }
 0xe58   : > { %2814 = vmatpush.msrb.mxu3 %v3985_v28 }
 0xe5a   : > { %2815 = vmatpush.msrb.mxu3 %v3984_v7  ;;  %v4039_v7 = vld [vmem:[%s6024_s7 + $0x3b8] sm:$0xff] }
 0xe5c   : > { %2816 = vmatpush.msrb.mxu3 %v3983_v8 }
 0xe5e   : > { %2817 = vmatpush.msrb.mxu3 %v3982_v5 }
 0xe60   : > { %2818 = vmatpush.msrb.mxu3 %v3981_v40  ;;  %v4038_v40 = vld [vmem:[%s6024_s7 + $0x3b0] sm:$0xff] }
 0xe62   : > { %2819 = vmatpush.msrb.mxu3 %v3980_v35 }
 0xe64   : > { %2820 = vmatpush.msrb.mxu3 %v3979_v60 }
 0xe66   : > { %2821 = vmatpush.msrb.mxu3 %v3978_v12  ;;  %v4037_v12 = vld [vmem:[%s6024_s7 + $0x3a8] sm:$0xff] }
 0xe68   : > { %2822 = vmatpush.msrb.mxu3 %v3977_v63 }
 0xe6a   : > { %2823 = vmatpush.msrb.mxu3 %v3976_v3  ;;  %v4036_v3 = vld [vmem:[%s6024_s7 + $0x3a0] sm:$0xff] }
 0xe6c   : > { %2824 = vmatpush.msrb.mxu3 %v3975_v15  ;;  %v4034_v15 = vld [vmem:[%s6024_s7 + $0x390] sm:$0xff] }
 0xe6e   : > { %3097 = vmatpush.msra.mxu3 %v4047_v41 }
 0xe70   : > { %3098 = vmatpush.msra.mxu3 %v4046_v51 }
 0xe72   : > { %3099 = vmatpush.msra.mxu3 %v4045_v57 }
 0xe74   : > { %3100 = vmatpush.msra.mxu3 %v4044_v17 }
 0xe76   : > { %3101 = vmatpush.msra.mxu3 %v4043_v46 }
 0xe78   : > { %3102 = vmatpush.msra.mxu3 %v4042_v0 }
 0xe7a   : > { %3103 = vmatpush.msra.mxu3 %v4041_v10 }
 0xe7c   : > { %3104 = vmatpush.msra.mxu3 %v4040_v32 }
 0xe7e   : > { %3105 = vmatpush.msra.mxu3 %v4039_v7 }
 0xe80   : > { %3106 = vmatpush.msra.mxu3 %v4038_v40 }
 0xe82   : > { %3107 = vmatpush.msra.mxu3 %v4037_v12 }
 0xe84   : > { %3108 = vmatpush.msra.mxu3 %v4036_v3 }
 0xebd   : > { %v2643_v26 = vpop.f32.mrf.mxu3 }
 0xebe   : > { %v3002_v13 = vpop.xlane.xlu0 %3001 }
 0xebf   : > { %v3006_v14 = vsub.f32 %v2995_v56, %v3002_v13  ;;  %v4035_v13 = vld [vmem:[%s6024_s7 + $0x398] sm:$0xff] }
 0xec0   : > { %3109 = vmatpush.msra.mxu3 %v4035_v13 }
 0xec1   : > { %v3008_v24 = vmul.f32 1.442695, %v3006_v14 }
 0xec2   : > { %3110 = vmatpush.msra.mxu3 %v4034_v15 }
 0xec3   : > { %4228 = vpow2.f32 %v3008_v24  ;;  %v4033_v24 = vld [vmem:[%s6024_s7 + $0x388] sm:$0xff] }
 0xec4   : > { %3111 = vmatpush.msra.mxu3 %v4033_v24 }
 0xec6   : > { %v2586_v62 = vpop.xlane.xlu0 %2585  ;;  %v3005_v16 = vpop.xlane.xlu1 %3004 }
 0xec7   : > { %4230 = vrcp.f32 %v2586_v62  ;;  %v3007_v1 = vsub.f32 %v2998_v50, %v3005_v16  ;;  %v2612_v29 = vand.u32 2147483648, %v2586_v62  ;;  %v2610_v34 = vand.u32 2147483647, %v2586_v62  ;;  %v4051_v16 = vld [vmem:[%s6028_s11 + $0x58] sm:$0xff] }
 0xec8   : > { %vm2606_vm5 = vweird.f32 %v2586_v62  ;;  %3149 = vmatpush.msra.mxu1 %v4051_v16 }
 0xec9   : > { %v4229_v19 = vpop.eup %4228  ;;  %v3010_v23 = vmul.f32 1.442695, %v3007_v1  ;;  %v2613_v44 = vor.u32 1.1754944e-38, %v2612_v29  ;;  %vm2611_vm10 = vcmp.eq.f32.partialorder %v2610_v34, 8.507059e+37  ;;  %v2803_v1 = vpop.f32.mrf.mxu2  ;;  %v5799_v34 = vld [vmem:[%s6025_s8 + $0x8] sm:$0xff] }
 0xeca   : > { %v3012_v18 = vsel %vm1062_vm15, %v4229_v19, 0.0 }
 0xecb   : > { %3013 = vadd.xlane.f32.xlu1 %v3012_v18  ;;  %4232 = vpow2.f32 %v3010_v23 }
 0xecd   : > { %v4231_v11 = vpop.eup %4230 }
 0xece   : > { %v2602_v27 = vmul.f32 %v4231_v11, %v2586_v62  ;;  %vm2607_vm0 = vweird.f32 %v4231_v11  ;;  %v4032_v62 = vld [vmem:[%s6024_s7 + $0x380] sm:$0xff] }
 0xecf   : > { %vm2608_vm9 = vmor %vm2606_vm5, %vm2607_vm0  ;;  %3112 = vmatpush.msra.mxu3 %v4032_v62 }
 0xed0   : > { %v2603_v54 = vsub.f32 1.0, %v2602_v27  ;;  %v4049_v27 = vld [vmem:[%s6028_s11 + $0x48] sm:$0xff] }
 0xed1   : > { %v5727_v33 = vpop.eup %4232 }
 0xed2   : > { %v2604_v37 = vmul.f32 %v4231_v11, %v2603_v54  ;;  %v3015_v9 = vsel %vm1066_vm1, %v5727_v33, 0.0  ;;  %v4048_v54 = vld [vmem:[%s6028_s11 + $0x40] sm:$0xff] }
 0xed3   : > { %3016 = vadd.xlane.f32.xlu2 %v3015_v9  ;;  %v2969_v9 = vpop.f32.mrf.mxu0 }
 0xed4   : > { %v2605_v42 = vadd.f32 %v4231_v11, %v2604_v37 }
 0xed6   : > { %v2609_v45 = vsel %vm2608_vm9, %v4231_v11, %v2605_v42  ;;  %v4050_v11 = vld [vmem:[%s6028_s11 + $0x50] sm:$0xff] }
 0xed7   : > { %v2614_v47 = vsel %vm2611_vm10, %v2613_v44, %v2609_v45  ;;  %3150 = vmatpush.msra.mxu1 %v4050_v11  ;;  %v3122_v44 = vperm.slane %v5799_v34, 0 }
 0xed8   : > { %v2616_v43 = vmul.f32 %v5672_v52, %v2614_v47 }
 0xed9   : > { %3151 = vmatpush.msra.mxu1 %v4049_v27 }
 0xeda   : > { %3974 = vmatmul.msk.f32.gmra.mxu3 %vm1062_vm15, %v2616_v43 }
 0xedb   : > { %3152 = vmatpush.msra.mxu1 %v4048_v54 }
 0xee2   : > { %2825 = vmatmul.f32.vlgmr.msrb.gmra.mxu3 %v2643_v26 }
 0xf3e   : > { %v3014_v21 = vpop.xlane.xlu1 %3013 }
 0xf3f   : > { %4234 = vrcp.f32 %v3014_v21  ;;  %v3029_v38 = vand.u32 2147483648, %v3014_v21  ;;  %v3027_v58 = vand.u32 2147483647, %v3014_v21  ;;  %vm3023_vm11 = vweird.f32 %v3014_v21 }
 0xf41   : > { %v3030_v56 = vor.u32 1.1754944e-38, %v3029_v38  ;;  %vm3028_vm14 = vcmp.eq.f32.partialorder %v3027_v58, 8.507059e+37 }
 0xf45   : > { %v4235_v48 = vpop.eup %4234 }
 0xf46   : > { %v3019_v49 = vmul.f32 %v4235_v48, %v3014_v21  ;;  %v3017_v53 = vpop.xlane.xlu2 %3016  ;;  %vm3024_vm1 = vweird.f32 %v4235_v48  ;;  %v2972_v21 = vpop.f32.mrf.mxu0 }
 0xf47   : > { %4236 = vrcp.f32 %v3017_v53  ;;  %vm3025_vm13 = vmor %vm3023_vm11, %vm3024_vm1  ;;  %v3043_v22 = vand.u32 2147483648, %v3017_v53  ;;  %v3041_v28 = vand.u32 2147483647, %v3017_v53  ;;  %vm3037_vm3 = vweird.f32 %v3017_v53 }
 0xf48   : > { %v3020_v31 = vsub.f32 1.0, %v3019_v49 }
 0xf49   : > { %v3044_v5 = vor.u32 1.1754944e-38, %v3043_v22  ;;  %vm3042_vm0 = vcmp.eq.f32.partialorder %v3041_v28, 8.507059e+37  ;;  %v4054_v28 = vld [vmem:[%s6029_s12 + $0x10] sm:$0xff] }
 0xf4a   : > { %v3021_v55 = vmul.f32 %v4235_v48, %v3020_v31  ;;  %3262 = vmatpush.msra.mxu2 %v4054_v28 }
 0xf4c   : > { %v3022_v61 = vadd.f32 %v4235_v48, %v3021_v55 }
 0xf4d   : > { %v4237_v39 = vpop.eup %4236 }
 0xf4e   : > { %v3026_v52 = vsel %vm3025_vm13, %v4235_v48, %v3022_v61  ;;  %v3033_v2 = vmul.f32 %v4237_v39, %v3017_v53  ;;  %vm3038_vm2 = vweird.f32 %v4237_v39  ;;  %v5813_v53 = vld [vmem:[%s6026_s9 + $0x2] sm:$0x3] }
 0xf4f   : > { %v3031_v50 = vsel %vm3028_vm14, %v3030_v56, %v3026_v52  ;;  %vm3039_vm4 = vmor %vm3037_vm3, %vm3038_vm2  ;;  %v3130_v31 = vperm.slane %v5813_v53, 0 }
 0xf50   : > { %v3046_v4 = vmul.f32 %v4229_v19, %v3031_v50  ;;  %v3034_v20 = vsub.f32 1.0, %v3033_v2  ;;  %v2806_v19 = vpop.f32.mrf.mxu2 }
 0xf52   : > { %4030 = vmatmul.msk.f32.vlgmr.msrb.gmra.mxu2 %vm1062_vm15, %v3046_v4  ;;  %v3035_v6 = vmul.f32 %v4237_v39, %v3034_v20 }
 0xf54   : > { %v3036_v8 = vadd.f32 %v4237_v39, %v3035_v6 }
 0xf56   : > { %v3040_v35 = vsel %vm3039_vm4, %v4237_v39, %v3036_v8 }
 0xf57   : > { %v3045_v60 = vsel %vm3042_vm0, %v3044_v5, %v3040_v35 }
 0xf58   : > { %v3047_v63 = vmul.f32 %v5727_v33, %v3045_v60 }
 0xf5a   : > { %4031 = vmatmul.msk.f32.gmra.mxu2 %vm1062_vm15, %v3047_v63 }
 0xf5d   : > { %v2646_v14 = vpop.f32.mrf.mxu3 }
 0xf5e   : > { %2828 = vmatmul.f32.gmra.mxu3 %v2646_v14 }
 0xf65   : > { %v2826_v29 = vpop.f32.mrf.mxu3 }
 0xf66   : > { %v2827_v37 = vadd.f32 %v2826_v29, %v2803_v1 }
 0xf68   : > { %v2975_v42 = vadd.f32 %v2969_v9, %v2827_v37 }
 0xfd5   : > { %v3074_v23 = vpop.f32.mrf.mxu2 }
 0xfd6   : > { %3113 = vmatmul.f32.vlgmr.msra.gmra.mxu3 %v3074_v23 }
 0xfdd   : > { %v3077_v18 = vpop.f32.mrf.mxu2 }
 0xfde   : > { %3116 = vmatmul.f32.gmra.mxu3 %v3077_v18 }
 0xfe1   : > { %v2829_v33 = vpop.f32.mrf.mxu3 }
 0xfe2   : > { %v2830_v26 = vadd.f32 %v2829_v33, %v2806_v19 }
 0xfe4   : > { %v2976_v48 = vadd.f32 %v2972_v21, %v2830_v26 }
0x1059   : > { %v3114_v45 = vpop.f32.mrf.mxu3 }
0x105a   : > { %v3120_v47 = vadd.f32 %v3114_v45, %v2975_v42 }
0x105c   : > { %v5802_v43 = vadd.f32 %v3122_v44, %v3120_v47 }
0x105e   : > { %4052 = vmatmul.msk.f32.vlgmr.msra.gmra.mxu1 %vm610_vm6, %v5802_v43 }
0x1061   : > { %v3117_v49 = vpop.f32.mrf.mxu3 }
0x1062   : > { %v3121_v41 = vadd.f32 %v3117_v49, %v2976_v48 }
0x1064   : > { %v5806_v51 = vadd.f32 %v3122_v44, %v3121_v41 }
0x1066   : > { %4053 = vmatmul.msk.f32.gmra.mxu1 %vm610_vm6, %v5806_v51 }
0x10db   : > { %v3154_v57 = vpop.f32.mrf.mxu1 }
0x10dc   : > { %v5816_v38 = vadd.f32 %v3154_v57, %v3130_v31 }
0x10de   : > { %v5819_v55 = vmul.f32 0.70710677, %v5816_v38 }
0x10e0   : > { %v3168_v58 = vand.u32 2147483647, %v5819_v55  ;;  %vm3164_vm2 = vcmp.ge.f32.partialorder %v5819_v55, 0.0 }
0x10e2   : > { %v3170_v17 = vmul.f32 0.3275911, %v3168_v58  ;;  %v3220_v35 = vsub.f32 0.0, %v3168_v58 }
0x10e3   : > { %v3157_v46 = vpop.f32.mrf.mxu1 }
0x10e4   : > { %v3172_v61 = vadd.f32 1.0, %v3170_v17  ;;  %v5822_v56 = vadd.f32 %v3157_v46, %v3130_v31  ;;  %v3222_v14 = vmul.f32 %v3220_v35, %v3168_v58  ;;  %v3166_v58 = vsel %vm3164_vm2, 1.0, %v4340_v25 }
0x10e6   : > { %4238 = vrcp.f32 %v3172_v61  ;;  %v5825_v39 = vmul.f32 0.70710677, %v5822_v56  ;;  %v3185_v20 = vand.u32 2147483648, %v3172_v61  ;;  %v3183_v32 = vand.u32 2147483647, %v3172_v61 }
0x10e7   : > { %vm3179_vm5 = vweird.f32 %v3172_v61  ;;  %v3224_v23 = vmul.f32 1.442695, %v3222_v14 }
0x10e8   : > { %v3169_v52 = vand.u32 2147483647, %v5825_v39  ;;  %v3186_v7 = vor.u32 1.1754944e-38, %v3185_v20  ;;  %vm3184_vm10 = vcmp.eq.f32.partialorder %v3183_v32, 8.507059e+37  ;;  %vm3165_vm3 = vcmp.ge.f32.partialorder %v5825_v39, 0.0 }
0x10e9   : > { %v3167_v20 = vsel %vm3165_vm3, 1.0, %v4340_v25  ;;  %v3161_v32 = vmul.f32 0.5, %v5822_v56 }
0x10ea   : > { %v3171_v0 = vmul.f32 0.3275911, %v3169_v52  ;;  %v3221_v54 = vsub.f32 0.0, %v3169_v52 }
0x10ec   : > { %v4239_v50 = vpop.eup %4238  ;;  %v3173_v4 = vadd.f32 1.0, %v3171_v0  ;;  %v3223_v42 = vmul.f32 %v3221_v54, %v3169_v52  ;;  %v3160_v52 = vmul.f32 0.5, %v5816_v38  ;;  %v3240_v38 = vperm.slane %v5799_v34, 1 }
0x10ed   : > { %v3175_v2 = vmul.f32 %v4239_v50, %v3172_v61  ;;  %vm3180_vm15 = vweird.f32 %v4239_v50 }
0x10ee   : > { %4240 = vrcp.f32 %v3173_v4  ;;  %vm3181_vm9 = vmor %vm3179_vm5, %vm3180_vm15  ;;  %v3199_v13 = vand.u32 2147483648, %v3173_v4  ;;  %v3197_v24 = vand.u32 2147483647, %v3173_v4  ;;  %vm3193_vm11 = vweird.f32 %v3173_v4 }
0x10ef   : > { %v3176_v10 = vsub.f32 1.0, %v3175_v2  ;;  %4242 = vpow2.f32 %v3224_v23  ;;  %v3226_v21 = vmul.f32 1.442695, %v3223_v42 }
0x10f0   : > { %v3200_v19 = vor.u32 1.1754944e-38, %v3199_v13  ;;  %vm3198_vm14 = vcmp.eq.f32.partialorder %v3197_v24, 8.507059e+37 }
0x10f1   : > { %v3177_v22 = vmul.f32 %v4239_v50, %v3176_v10  ;;  %4244 = vpow2.f32 %v3226_v21 }
0x10f3   : > { %v3178_v6 = vadd.f32 %v4239_v50, %v3177_v22 }
0x10f4   : > { %v4241_v8 = vpop.eup %4240 }
0x10f5   : > { %v3182_v5 = vsel %vm3181_vm9, %v4239_v50, %v3178_v6  ;;  %v3189_v60 = vmul.f32 %v4241_v8, %v3173_v4  ;;  %vm3194_vm1 = vweird.f32 %v4241_v8  ;;  %v4243_v48 = vpop.eup %4242 }
0x10f6   : > { %v3187_v40 = vsel %vm3184_vm10, %v3186_v7, %v3182_v5  ;;  %vm3195_vm13 = vmor %vm3193_vm11, %vm3194_vm1 }
0x10f7   : > { %v3202_v12 = vmul.f32 1.0614054, %v3187_v40  ;;  %v3190_v63 = vsub.f32 1.0, %v3189_v60  ;;  %v4245_v2 = vpop.eup %4244 }
0x10f9   : > { %v3204_v3 = vadd.f32 -1.4531521, %v3202_v12  ;;  %v3191_v15 = vmul.f32 %v4241_v8, %v3190_v63 }
0x10fb   : > { %v3206_v62 = vmul.f32 %v3204_v3, %v3187_v40  ;;  %v3192_v16 = vadd.f32 %v4241_v8, %v3191_v15  ;;  %v4059_v15 = vld [vmem:[%s6030_s13 + $0x30] sm:$0xff] }
0x10fd   : > { %v3208_v1 = vadd.f32 1.4214138, %v3206_v62  ;;  %v3196_v18 = vsel %vm3195_vm13, %v4241_v8, %v3192_v16 }
0x10fe   : > { %v3201_v27 = vsel %vm3198_vm14, %v3200_v19, %v3196_v18  ;;  %v4057_v19 = vld [vmem:[%s6030_s13 + $0x20] sm:$0xff] }
0x10ff   : > { %v3210_v11 = vmul.f32 %v3208_v1, %v3187_v40  ;;  %v3203_v29 = vmul.f32 1.0614054, %v3201_v27 }
0x1101   : > { %v3212_v33 = vadd.f32 -0.28449672, %v3210_v11  ;;  %v3205_v37 = vadd.f32 -1.4531521, %v3203_v29 }
0x1103   : > { %v3214_v9 = vmul.f32 %v3212_v33, %v3187_v40  ;;  %v3207_v44 = vmul.f32 %v3205_v37, %v3201_v27 }
0x1105   : > { %v3216_v45 = vadd.f32 0.2548296, %v3214_v9  ;;  %v3209_v47 = vadd.f32 1.4214138, %v3207_v44 }
0x1107   : > { %v3218_v26 = vmul.f32 %v3216_v45, %v3187_v40  ;;  %v3211_v49 = vmul.f32 %v3209_v47, %v3201_v27 }
0x1109   : > { %v3228_v41 = vmul.f32 %v4243_v48, %v3218_v26  ;;  %v3213_v31 = vadd.f32 -0.28449672, %v3211_v49 }
0x110b   : > { %v3230_v57 = vsub.f32 1.0, %v3228_v41  ;;  %v3215_v17 = vmul.f32 %v3213_v31, %v3201_v27 }
0x110d   : > { %v3232_v61 = vmul.f32 %v3230_v57, %v3166_v58  ;;  %v3217_v46 = vadd.f32 0.2548296, %v3215_v17  ;;  %v3324_v57 = vperm.slane %v5799_v34, 2 }
0x110f   : > { %v3234_v0 = vadd.f32 1.0, %v3232_v61  ;;  %v3219_v50 = vmul.f32 %v3217_v46, %v3201_v27  ;;  %v3327_v61 = vperm.slane %v5799_v34, 3 }
0x1111   : > { %v3236_v4 = vmul.f32 %v3234_v0, %v3160_v52  ;;  %v3229_v10 = vmul.f32 %v4245_v2, %v3219_v50 }
0x1113   : > { %4055 = vmatmul.msk.f32.vlgmr.msra.gmra.mxu2 %vm1733_vm12, %v3236_v4  ;;  %v3231_v55 = vsub.f32 1.0, %v3229_v10 }
0x1115   : > { %v3233_v22 = vmul.f32 %v3231_v55, %v3167_v20 }
0x1117   : > { %v3235_v6 = vadd.f32 1.0, %v3233_v22 }
0x1119   : > { %v3237_v28 = vmul.f32 %v3235_v6, %v3161_v32 }
0x111b   : > { %4056 = vmatmul.msk.f32.gmra.mxu2 %vm1733_vm12, %v3237_v28  ;;  %v4135_v28 = vld [vmem:[%s6027_s10 + $0x1] ss:$0 sm:$0xff] }
0x1196   : > { %v3264_v7 = vpop.f32.mrf.mxu2 }
0x1197   : > { %v3265_v8 = vadd.f32 %v3264_v7, %v3240_v38 }
0x1199   : > { %v3270_v5 = vadd.f32 %v3265_v8, %v5802_v43 }
0x119b   : > { %v3272_v39 = vadd.f32 %v3270_v5, %v5379_v36  ;;  %v4060_v36 = vld [vmem:[%s6030_s13 + $0x38] sm:$0xff] }
0x119c   : > { %3358 = vmatpush.msrb.mxu0 %v4060_v36 }
0x119d   : > { %v3274_v40 = vsel %vm610_vm6, %v3272_v39, 0.0  ;;  %v3282_v35 = vmul.f32 %v3272_v39, %v3272_v39 }
0x119e   : > { %3275 = vadd.xlane.f32.xlu0 %v3274_v40  ;;  %v3267_v60 = vpop.f32.mrf.mxu2  ;;  %3359 = vmatpush.msrb.mxu0 %v4059_v15 }
0x119f   : > { %v3284_v12 = vsel %vm610_vm6, %v3282_v35, 0.0  ;;  %v3268_v56 = vadd.f32 %v3267_v60, %v3240_v38 }
0x11a0   : > { %3285 = vadd.xlane.f32.xlu1 %v3284_v12  ;;  %v4071_v12 = vld [vmem:[%s6031_s14 + $0x78] sm:$0xff] }
0x11a1   : > { %v3271_v63 = vadd.f32 %v3268_v56, %v5806_v51  ;;  %v4058_v51 = vld [vmem:[%s6030_s13 + $0x28] sm:$0xff]  ;;  %3471 = vmatpush.msrb.mxu1 %v4071_v12 }
0x11a2   : > { %3360 = vmatpush.msrb.mxu0 %v4058_v51 }
0x11a3   : > { %v3273_v3 = vadd.f32 %v3271_v63, %v5433_v30  ;;  %v4070_v63 = vld [vmem:[%s6031_s14 + $0x70] sm:$0xff] }
0x11a4   : > { %3361 = vmatpush.msrb.mxu0 %v4057_v19  ;;  %3472 = vmatpush.msrb.mxu1 %v4070_v63 }
0x11a5   : > { %v3277_v13 = vsel %vm614_vm7, %v3273_v3, 0.0  ;;  %v3283_v14 = vmul.f32 %v3273_v3, %v3273_v3 }
0x11a6   : > { %3278 = vadd.xlane.f32.xlu2 %v3277_v13  ;;  %v4069_v13 = vld [vmem:[%s6031_s14 + $0x68] sm:$0xff] }
0x11a7   : > { %v3287_v43 = vsel %vm614_vm7, %v3283_v14, 0.0  ;;  %3473 = vmatpush.msrb.mxu1 %v4069_v13 }
0x11a8   : > { %3288 = vadd.xlane.f32.xlu0 %v3287_v43  ;;  %v4068_v43 = vld [vmem:[%s6031_s14 + $0x60] sm:$0xff] }
0x11a9   : > { %3474 = vmatpush.msrb.mxu1 %v4068_v43 }
0x1211   : > { %v3276_v24 = vpop.xlane.xlu0 %3275 }
0x1212   : > { %v3280_v30 = vmul.f32 %v3276_v24, %v4566_v59 }
0x1213   : > { %v3286_v62 = vpop.xlane.xlu1 %3285 }
0x1214   : > { %v3292_v16 = vmul.f32 %v3280_v30, %v3280_v30  ;;  %v3290_v1 = vmul.f32 %v3286_v62, %v4566_v59  ;;  %v3298_v31 = vsub.f32 %v3272_v39, %v3280_v30  ;;  %v4067_v30 = vld [vmem:[%s6031_s14 + $0x58] sm:$0xff]  ;;  %v4066_v62 = vld [vmem:[%s6031_s14 + $0x50] sm:$0xff] }
0x1215   : > { %3475 = vmatpush.msrb.mxu1 %v4067_v30 }
0x1216   : > { %v3294_v23 = vsub.f32 %v3290_v1, %v3292_v16 }
0x1217   : > { %3476 = vmatpush.msrb.mxu1 %v4066_v62 }
0x1218   : > { %v3296_v18 = vmax.f32 %v3294_v23, 0.0  ;;  %v4065_v23 = vld [vmem:[%s6031_s14 + $0x48] sm:$0xff] }
0x1219   : > { %v3279_v27 = vpop.xlane.xlu2 %3278  ;;  %3477 = vmatpush.msrb.mxu1 %v4065_v23 }
0x121a   : > { %v3300_v11 = vadd.f32 1e-12, %v3296_v18  ;;  %v3281_v54 = vmul.f32 %v3279_v27, %v4566_v59 }
0x121b   : > { %v3289_v29 = vpop.xlane.xlu0 %3288 }
0x121c   : > { %4246 = vrsqrt.f32 %v3300_v11  ;;  %v3293_v33 = vmul.f32 %v3281_v54, %v3281_v54  ;;  %v3291_v37 = vmul.f32 %v3289_v29, %v4566_v59  ;;  %vm3308_vm0 = vweird.f32 %v3300_v11 }
0x121d   : > { %v3299_v55 = vsub.f32 %v3273_v3, %v3281_v54 }
0x121e   : > { %v3295_v9 = vsub.f32 %v3291_v37, %v3293_v33 }
0x1220   : > { %v3297_v42 = vmax.f32 %v3295_v9, 0.0 }
0x1222   : > { %v4247_v44 = vpop.eup %4246  ;;  %v3301_v47 = vadd.f32 1e-12, %v3297_v42 }
0x1223   : > { %v3303_v45 = vmul.f32 %v4247_v44, %v3300_v11  ;;  %vm3309_vm4 = vweird.f32 %v4247_v44  ;;  %v4064_v11 = vld [vmem:[%s6031_s14 + $0x40] sm:$0xff] }
0x1224   : > { %4248 = vrsqrt.f32 %v3301_v47  ;;  %vm3310_vm15 = vmor %vm3308_vm0, %vm3309_vm4  ;;  %vm3318_vm9 = vweird.f32 %v3301_v47  ;;  %3478 = vmatpush.msrb.mxu1 %v4064_v11 }
0x1225   : > { %v3304_v26 = vmul.f32 %v4247_v44, %v3303_v45 }
0x1227   : > { %v3305_v21 = vmul.f32 0.5, %v3304_v26 }
0x1229   : > { %v3306_v48 = vsub.f32 1.5, %v3305_v21 }
0x122a   : > { %v4249_v49 = vpop.eup %4248 }
0x122b   : > { %v3307_v41 = vmul.f32 %v4247_v44, %v3306_v48  ;;  %v3313_v58 = vmul.f32 %v4249_v49, %v3301_v47  ;;  %vm3319_vm5 = vweird.f32 %v4249_v49 }
0x122c   : > { %vm3320_vm10 = vmor %vm3318_vm9, %vm3319_vm5 }
0x122d   : > { %v3311_v17 = vsel %vm3310_vm15, %v4247_v44, %v3307_v41  ;;  %v3314_v52 = vmul.f32 %v4249_v49, %v3313_v58 }
0x122e   : > { %v3322_v46 = vmul.f32 %v3311_v17, %v3298_v31  ;;  %v4077_v31 = vld [vmem:[%s6028_s11 + $0x78] sm:$0xff] }
0x122f   : > { %v3315_v50 = vmul.f32 0.5, %v3314_v52  ;;  %3510 = vmatpush.msrb.mxu2 %v4077_v31 }
0x1230   : > { %v3325_v0 = vmul.f32 %v3324_v57, %v3322_v46 }
0x1231   : > { %v3316_v4 = vsub.f32 1.5, %v3315_v50 }
0x1232   : > { %v5866_v2 = vadd.f32 %v3327_v61, %v3325_v0 }
0x1233   : > { %v3317_v10 = vmul.f32 %v4249_v49, %v3316_v4 }
0x1234   : > { %4062 = vmatmul.msk.f32.vlgmr.msrb.gmra.mxu0 %vm610_vm6, %v5866_v2 }
0x1235   : > { %v3321_v20 = vsel %vm3320_vm10, %v4249_v49, %v3317_v10 }
0x1236   : > { %v3323_v22 = vmul.f32 %v3321_v20, %v3299_v55 }
0x1238   : > { %v3326_v32 = vmul.f32 %v3324_v57, %v3323_v22  ;;  %v4076_v57 = vld [vmem:[%s6028_s11 + $0x70] sm:$0xff] }
0x1239   : > { %3511 = vmatpush.msrb.mxu2 %v4076_v57 }
0x123a   : > { %v5870_v6 = vadd.f32 %v3327_v61, %v3326_v32 }
0x123c   : > { %4063 = vmatmul.msk.f32.gmra.mxu0 %vm610_vm6, %v5870_v6 }
0x12b1   : > { %v3363_v38 = vpop.f32.mrf.mxu0 }
0x12b2   : > { %v5877_v7 = vadd.f32 %v4135_v28, %v3363_v38 }
0x12b4   : > { %v5880_v8 = vmul.f32 0.70710677, %v5877_v7 }
0x12b6   : > { %v3377_v5 = vand.u32 2147483647, %v5880_v8  ;;  %vm3373_vm15 = vcmp.ge.f32.partialorder %v5880_v8, 0.0 }
0x12b8   : > { %v3379_v39 = vmul.f32 0.3275911, %v3377_v5  ;;  %v3429_v37 = vsub.f32 0.0, %v3377_v5 }
0x12b9   : > { %v3366_v35 = vpop.f32.mrf.mxu0 }
0x12ba   : > { %v3381_v40 = vadd.f32 1.0, %v3379_v39  ;;  %v5883_v60 = vadd.f32 %v4135_v28, %v3366_v35  ;;  %v3431_v26 = vmul.f32 %v3429_v37, %v3377_v5  ;;  %v3491_v37 = vperm.slane %v5813_v53, 1 }
0x12bc   : > { %4250 = vrcp.f32 %v3381_v40  ;;  %v5889_v56 = vmul.f32 0.70710677, %v5883_v60  ;;  %v3394_v16 = vand.u32 2147483648, %v3381_v40  ;;  %v3392_v19 = vand.u32 2147483647, %v3381_v40 }
0x12bd   : > { %vm3388_vm11 = vweird.f32 %v3381_v40  ;;  %v3433_v61 = vmul.f32 1.442695, %v3431_v26  ;;  %v3370_v23 = vmul.f32 0.5, %v5883_v60 }
0x12be   : > { %v3378_v3 = vand.u32 2147483647, %v5889_v56  ;;  %v3395_v27 = vor.u32 1.1754944e-38, %v3394_v16  ;;  %vm3393_vm14 = vcmp.eq.f32.partialorder %v3392_v19, 8.507059e+37  ;;  %vm3374_vm5 = vcmp.ge.f32.partialorder %v5889_v56, 0.0  ;;  %v4074_v56 = vld [vmem:[%s6028_s11 + $0x60] sm:$0xff] }
0x12c0   : > { %v3380_v14 = vmul.f32 0.3275911, %v3378_v3  ;;  %v3430_v50 = vsub.f32 0.0, %v3378_v3 }
0x12c2   : > { %v4251_v36 = vpop.eup %4250  ;;  %v3382_v24 = vadd.f32 1.0, %v3380_v14  ;;  %v3432_v22 = vmul.f32 %v3430_v50, %v3378_v3  ;;  %v3375_v14 = vsel %vm3373_vm15, 1.0, %v4340_v25  ;;  %v3369_v3 = vmul.f32 0.5, %v5877_v7  ;;  %v4075_v7 = vld [vmem:[%s6028_s11 + $0x68] sm:$0xff]  ;;  %v4080_v50 = vld [vmem:[%s6029_s12 + $0x18] sm:$0xff] }
0x12c3   : > { %v3384_v15 = vmul.f32 %v4251_v36, %v3381_v40  ;;  %vm3389_vm1 = vweird.f32 %v4251_v36  ;;  %3512 = vmatpush.msrb.mxu2 %v4075_v7  ;;  %3623 = vmatpush.msrb.mxu3 %v4080_v50 }
0x12c4   : > { %4252 = vrcp.f32 %v3382_v24  ;;  %vm3390_vm13 = vmor %vm3388_vm11, %vm3389_vm1  ;;  %v3408_v47 = vand.u32 2147483648, %v3382_v24  ;;  %v3406_v48 = vand.u32 2147483647, %v3382_v24  ;;  %vm3402_vm3 = vweird.f32 %v3382_v24 }
0x12c5   : > { %v3385_v51 = vsub.f32 1.0, %v3384_v15  ;;  %4254 = vpow2.f32 %v3433_v61  ;;  %v3435_v39 = vmul.f32 1.442695, %v3432_v22  ;;  %3513 = vmatpush.msrb.mxu2 %v4074_v56 }
0x12c6   : > { %v3409_v17 = vor.u32 1.1754944e-38, %v3408_v47  ;;  %vm3407_vm0 = vcmp.eq.f32.partialorder %v3406_v48, 8.507059e+37 }
0x12c7   : > { %v3386_v1 = vmul.f32 %v4251_v36, %v3385_v51  ;;  %4256 = vpow2.f32 %v3435_v39 }
0x12c9   : > { %v3387_v18 = vadd.f32 %v4251_v36, %v3386_v1  ;;  %v3376_v1 = vsel %vm3374_vm5, 1.0, %v4340_v25 }
0x12ca   : > { %v4253_v54 = vpop.eup %4252 }
0x12cb   : > { %v3391_v29 = vsel %vm3390_vm13, %v4251_v36, %v3387_v18  ;;  %v3398_v9 = vmul.f32 %v4253_v54, %v3382_v24  ;;  %vm3403_vm2 = vweird.f32 %v4253_v54  ;;  %v4255_v40 = vpop.eup %4254 }
0x12cc   : > { %v3396_v33 = vsel %vm3393_vm14, %v3395_v27, %v3391_v29  ;;  %vm3404_vm4 = vmor %vm3402_vm3, %vm3403_vm2  ;;  %v3456_v27 = vperm.slane %v5799_v34, 4 }
0x12cd   : > { %v3411_v42 = vmul.f32 1.0614054, %v3396_v33  ;;  %v3399_v44 = vsub.f32 1.0, %v3398_v9  ;;  %v4257_v51 = vpop.eup %4256 }
0x12cf   : > { %v3413_v45 = vadd.f32 -1.4531521, %v3411_v42  ;;  %v3400_v21 = vmul.f32 %v4253_v54, %v3399_v44 }
0x12d1   : > { %v3415_v49 = vmul.f32 %v3413_v45, %v3396_v33  ;;  %v3401_v41 = vadd.f32 %v4253_v54, %v3400_v21 }
0x12d3   : > { %v3417_v58 = vadd.f32 1.4214138, %v3415_v49  ;;  %v3405_v46 = vsel %vm3404_vm4, %v4253_v54, %v3401_v41 }
0x12d4   : > { %v3410_v0 = vsel %vm3407_vm0, %v3409_v17, %v3405_v46  ;;  %vm3691_vm0 = vcmask 261121  }
0x12d5   : > { %v3419_v52 = vmul.f32 %v3417_v58, %v3396_v33  ;;  %v3412_v4 = vmul.f32 1.0614054, %v3410_v0 }
0x12d7   : > { %v3421_v10 = vadd.f32 -0.28449672, %v3419_v52  ;;  %v3414_v55 = vadd.f32 -1.4531521, %v3412_v4 }
0x12d9   : > { %v3423_v20 = vmul.f32 %v3421_v10, %v3396_v33  ;;  %v3416_v32 = vmul.f32 %v3414_v55, %v3410_v0 }
0x12db   : > { %v3425_v28 = vadd.f32 0.2548296, %v3423_v20  ;;  %v3418_v38 = vadd.f32 1.4214138, %v3416_v32 }
0x12dd   : > { %v3427_v5 = vmul.f32 %v3425_v28, %v3396_v33  ;;  %v3420_v35 = vmul.f32 %v3418_v38, %v3410_v0 }
0x12df   : > { %v3437_v12 = vmul.f32 %v4255_v40, %v3427_v5  ;;  %v3422_v63 = vadd.f32 -0.28449672, %v3420_v35 }
0x12e1   : > { %v3439_v13 = vsub.f32 1.0, %v3437_v12  ;;  %v3424_v43 = vmul.f32 %v3422_v63, %v3410_v0 }
0x12e3   : > { %v3441_v36 = vmul.f32 %v3439_v13, %v3375_v14  ;;  %v3426_v15 = vadd.f32 0.2548296, %v3424_v43 }
0x12e5   : > { %v3443_v24 = vadd.f32 1.0, %v3441_v36  ;;  %v3428_v30 = vmul.f32 %v3426_v15, %v3410_v0 }
0x12e7   : > { %v3445_v62 = vmul.f32 %v3443_v24, %v3369_v3  ;;  %v3438_v16 = vmul.f32 %v4257_v51, %v3428_v30 }
0x12e9   : > { %4072 = vmatmul.msk.f32.vlgmr.msrb.gmra.mxu1 %vm1947_vm8, %v3445_v62  ;;  %v3440_v8 = vsub.f32 1.0, %v3438_v16 }
0x12eb   : > { %v3442_v19 = vmul.f32 %v3440_v8, %v3376_v1 }
0x12ed   : > { %v3444_v18 = vadd.f32 1.0, %v3442_v19 }
0x12ef   : > { %v3446_v11 = vmul.f32 %v3444_v18, %v3370_v23 }
0x12f1   : > { %4073 = vmatmul.msk.f32.gmra.mxu1 %vm1947_vm8, %v3446_v11 }
0x1366   : > { %v3480_v54 = vpop.f32.mrf.mxu1 }
0x1367   : > { %v5934_v29 = vadd.f32 %v3480_v54, %v3456_v27 }
0x1369   : > { %4078 = vmatmul.msk.f32.vlgmr.msrb.gmra.mxu2 %vm610_vm6, %v5934_v29 }
0x136e   : > { %v3483_v60 = vpop.f32.mrf.mxu1 }
0x136f   : > { %v5938_v33 = vadd.f32 %v3483_v60, %v3456_v27 }
0x1371   : > { %4079 = vmatmul.msk.f32.gmra.mxu2 %vm610_vm6, %v5938_v33 }
0x13ec   : > { %v3515_v9 = vpop.f32.mrf.mxu2 }
0x13ed   : > { %v5943_v42 = vadd.f32 %v3515_v9, %v3491_v37 }
0x13ef   : > { %v5946_v44 = vmul.f32 0.70710677, %v5943_v42 }
0x13f1   : > { %v3529_v45 = vand.u32 2147483647, %v5946_v44  ;;  %vm3525_vm3 = vcmp.ge.f32.partialorder %v5946_v44, 0.0 }
0x13f2   : > { %v3527_v9 = vsel %vm3525_vm3, 1.0, %v4340_v25 }
0x13f3   : > { %v3531_v47 = vmul.f32 0.3275911, %v3529_v45  ;;  %v3581_v22 = vsub.f32 0.0, %v3529_v45 }
0x13f4   : > { %v3518_v21 = vpop.f32.mrf.mxu2 }
0x13f5   : > { %v3533_v26 = vadd.f32 1.0, %v3531_v47  ;;  %v5949_v48 = vadd.f32 %v3518_v21, %v3491_v37  ;;  %v3583_v40 = vmul.f32 %v3581_v22, %v3529_v45  ;;  %v3521_v21 = vmul.f32 0.5, %v5943_v42 }
0x13f6   : > { %v3601_v42 = vperm.slane %v5799_v34, 5 }
0x13f7   : > { %4258 = vrcp.f32 %v3533_v26  ;;  %v5952_v49 = vmul.f32 0.70710677, %v5949_v48  ;;  %v3546_v61 = vand.u32 2147483648, %v3533_v26  ;;  %v3544_v52 = vand.u32 2147483647, %v3533_v26 }
0x13f8   : > { %vm3540_vm9 = vweird.f32 %v3533_v26  ;;  %v3585_v36 = vmul.f32 1.442695, %v3583_v40 }
0x13f9   : > { %v3530_v41 = vand.u32 2147483647, %v5952_v49  ;;  %v3547_v4 = vor.u32 1.1754944e-38, %v3546_v61  ;;  %vm3545_vm1 = vcmp.eq.f32.partialorder %v3544_v52, 8.507059e+37  ;;  %vm3526_vm4 = vcmp.ge.f32.partialorder %v5952_v49, 0.0 }
0x13fb   : > { %v3532_v53 = vmul.f32 0.3275911, %v3530_v41  ;;  %v3582_v30 = vsub.f32 0.0, %v3530_v41 }
0x13fd   : > { %v4259_v31 = vpop.eup %4258  ;;  %v3534_v58 = vadd.f32 1.0, %v3532_v53  ;;  %v3584_v1 = vmul.f32 %v3582_v30, %v3530_v41 }
0x13fe   : > { %v3536_v57 = vmul.f32 %v4259_v31, %v3533_v26  ;;  %vm3541_vm8 = vweird.f32 %v4259_v31 }
0x13ff   : > { %4260 = vrcp.f32 %v3534_v58  ;;  %vm3542_vm10 = vmor %vm3540_vm9, %vm3541_vm8  ;;  %v3560_v39 = vand.u32 2147483648, %v3534_v58  ;;  %v3558_v12 = vand.u32 2147483647, %v3534_v58  ;;  %vm3554_vm13 = vweird.f32 %v3534_v58 }
0x1400   : > { %v3537_v17 = vsub.f32 1.0, %v3536_v57  ;;  %4262 = vpow2.f32 %v3585_v36  ;;  %v3587_v7 = vmul.f32 1.442695, %v3584_v1  ;;  %vm3693_vm9 = vcmask 253952  }
0x1401   : > { %v3561_v43 = vor.u32 1.1754944e-38, %v3560_v39  ;;  %vm3559_vm2 = vcmp.eq.f32.partialorder %v3558_v12, 8.507059e+37 }
0x1402   : > { %v3538_v46 = vmul.f32 %v4259_v31, %v3537_v17  ;;  %4264 = vpow2.f32 %v3587_v7  ;;  %v3528_v17 = vsel %vm3526_vm4, 1.0, %v4340_v25 }
0x1404   : > { %v3539_v0 = vadd.f32 %v4259_v31, %v3538_v46  ;;  %v3522_v46 = vmul.f32 0.5, %v5949_v48 }
0x1405   : > { %v4261_v10 = vpop.eup %4260 }
0x1406   : > { %v3543_v55 = vsel %vm3542_vm10, %v4259_v31, %v3539_v0  ;;  %v3550_v32 = vmul.f32 %v4261_v10, %v3534_v58  ;;  %vm3555_vm11 = vweird.f32 %v4261_v10  ;;  %v4263_v56 = vpop.eup %4262 }
0x1407   : > { %v3548_v20 = vsel %vm3545_vm1, %v3547_v4, %v3543_v55  ;;  %vm3556_vm14 = vmor %vm3554_vm13, %vm3555_vm11 }
0x1408   : > { %v3563_v28 = vmul.f32 1.0614054, %v3548_v20  ;;  %v3551_v38 = vsub.f32 1.0, %v3550_v32  ;;  %v4265_v31 = vpop.eup %4264 }
0x140a   : > { %v3565_v5 = vadd.f32 -1.4531521, %v3563_v28  ;;  %v3552_v35 = vmul.f32 %v4261_v10, %v3551_v38 }
0x140c   : > { %v3567_v63 = vmul.f32 %v3565_v5, %v3548_v20  ;;  %v3553_v13 = vadd.f32 %v4261_v10, %v3552_v35 }
0x140e   : > { %v3569_v14 = vadd.f32 1.4214138, %v3567_v63  ;;  %v3557_v15 = vsel %vm3556_vm14, %v4261_v10, %v3553_v13 }
0x140f   : > { %v3562_v24 = vsel %vm3559_vm2, %v3561_v43, %v3557_v15 }
0x1410   : > { %v3571_v3 = vmul.f32 %v3569_v14, %v3548_v20  ;;  %v3564_v51 = vmul.f32 1.0614054, %v3562_v24 }
0x1412   : > { %v3573_v62 = vadd.f32 -0.28449672, %v3571_v3  ;;  %v3566_v16 = vadd.f32 -1.4531521, %v3564_v51 }
0x1414   : > { %v3575_v8 = vmul.f32 %v3573_v62, %v3548_v20  ;;  %v3568_v19 = vmul.f32 %v3566_v16, %v3562_v24 }
0x1416   : > { %v3577_v23 = vadd.f32 0.2548296, %v3575_v8  ;;  %v3570_v18 = vadd.f32 1.4214138, %v3568_v19 }
0x1418   : > { %v3579_v11 = vmul.f32 %v3577_v23, %v3548_v20  ;;  %v3572_v27 = vmul.f32 %v3570_v18, %v3562_v24 }
0x141a   : > { %v3589_v54 = vmul.f32 %v4263_v56, %v3579_v11  ;;  %v3574_v60 = vadd.f32 -0.28449672, %v3572_v27 }
0x141c   : > { %v3591_v37 = vsub.f32 1.0, %v3589_v54  ;;  %v3576_v45 = vmul.f32 %v3574_v60, %v3562_v24  ;;  %v3688_v54 = vperm.slane %v5799_v34, 7 }
0x141e   : > { %v3593_v47 = vmul.f32 %v3591_v37, %v3527_v9  ;;  %v3578_v26 = vadd.f32 0.2548296, %v3576_v45 }
0x1420   : > { %v3595_v41 = vadd.f32 1.0, %v3593_v47  ;;  %v3580_v53 = vmul.f32 %v3578_v26, %v3562_v24 }
0x1422   : > { %v3597_v57 = vmul.f32 %v3595_v41, %v3521_v21  ;;  %v3590_v58 = vmul.f32 %v4265_v31, %v3580_v53 }
0x1424   : > { %4081 = vmatmul.msk.f32.vlgmr.msrb.gmra.mxu3 %vm1733_vm12, %v3597_v57  ;;  %v3592_v44 = vsub.f32 1.0, %v3590_v58 }
0x1426   : > { %v3594_v61 = vmul.f32 %v3592_v44, %v3528_v17 }
0x1428   : > { %v3596_v52 = vadd.f32 1.0, %v3594_v61 }
0x142a   : > { %v3598_v0 = vmul.f32 %v3596_v52, %v3522_v46 }
0x142c   : > { %4082 = vmatmul.msk.f32.gmra.mxu3 %vm1733_vm12, %v3598_v0 }
0x14a7   : > { %v3625_v50 = vpop.f32.mrf.mxu3 }
0x14a8   : > { %v3626_v4 = vadd.f32 %v3625_v50, %v3601_v42 }
0x14aa   : > { %v3631_v10 = vadd.f32 %v3626_v4, %v5934_v29 }
0x14ac   : > { %v3633_v49 = vadd.f32 %v3631_v10, %v5866_v2 }
0x14ae   : > { %v3635_v55 = vsel %vm610_vm6, %v3633_v49, 0.0  ;;  %v3643_v20 = vmul.f32 %v3633_v49, %v3633_v49 }
0x14af   : > { %3636 = vadd.xlane.f32.xlu1 %v3635_v55  ;;  %v3628_v25 = vpop.f32.mrf.mxu3 }
0x14b0   : > { %v3645_v22 = vsel %vm610_vm6, %v3643_v20, 0.0  ;;  %v3629_v48 = vadd.f32 %v3628_v25, %v3601_v42 }
0x14b1   : > { %3646 = vadd.xlane.f32.xlu0 %v3645_v22 }
0x14b2   : > { %v3632_v32 = vadd.f32 %v3629_v48, %v5938_v33 }
0x14b4   : > { %v3634_v28 = vadd.f32 %v3632_v32, %v5870_v6 }
0x14b6   : > { %v3638_v38 = vsel %vm614_vm7, %v3634_v28, 0.0  ;;  %v3644_v5 = vmul.f32 %v3634_v28, %v3634_v28 }
0x14b7   : > { %3639 = vadd.xlane.f32.xlu2 %v3638_v38 }
0x14b8   : > { %v3648_v29 = vsel %vm614_vm7, %v3644_v5, 0.0 }
0x14b9   : > { %3649 = vadd.xlane.f32.xlu1 %v3648_v29 }
0x1522   : > { %v3637_v2 = vpop.xlane.xlu1 %3636 }
0x1523   : > { %v3641_v39 = vmul.f32 %v3637_v2, %v4566_v59 }
0x1524   : > { %v3647_v40 = vpop.xlane.xlu0 %3646 }
0x1525   : > { %v3653_v35 = vmul.f32 %v3641_v39, %v3641_v39  ;;  %v3651_v12 = vmul.f32 %v3647_v40, %v4566_v59  ;;  %v3659_v18 = vsub.f32 %v3633_v49, %v3641_v39 }
0x1527   : > { %v3655_v63 = vsub.f32 %v3651_v12, %v3653_v35 }
0x1529   : > { %v3657_v13 = vmax.f32 %v3655_v63, 0.0 }
0x152a   : > { %v3640_v33 = vpop.xlane.xlu2 %3639 }
0x152b   : > { %v3661_v14 = vadd.f32 1e-12, %v3657_v13  ;;  %v3642_v6 = vmul.f32 %v3640_v33, %v4566_v59 }
0x152c   : > { %v3650_v43 = vpop.xlane.xlu1 %3649 }
0x152d   : > { %4266 = vrsqrt.f32 %v3661_v14  ;;  %v3654_v36 = vmul.f32 %v3642_v6, %v3642_v6  ;;  %v3652_v15 = vmul.f32 %v3650_v43, %v4566_v59  ;;  %vm3669_vm7 = vweird.f32 %v3661_v14 }
0x152e   : > { %v3685_v59 = vperm.slane %v5799_v34, 6  ;;  %v3660_v26 = vsub.f32 %v3634_v28, %v3642_v6 }
0x152f   : > { %v3656_v3 = vsub.f32 %v3652_v15, %v3654_v36 }
0x1531   : > { %v3658_v24 = vmax.f32 %v3656_v3, 0.0 }
0x1533   : > { %v4267_v30 = vpop.eup %4266  ;;  %v3662_v62 = vadd.f32 1e-12, %v3658_v24 }
0x1534   : > { %v3664_v51 = vmul.f32 %v4267_v30, %v3661_v14  ;;  %vm3670_vm6 = vweird.f32 %v4267_v30 }
0x1535   : > { %4268 = vrsqrt.f32 %v3662_v62  ;;  %vm3671_vm12 = vmor %vm3669_vm7, %vm3670_vm6  ;;  %vm3679_vm5 = vweird.f32 %v3662_v62 }
0x1536   : > { %v3665_v16 = vmul.f32 %v4267_v30, %v3664_v51 }
0x1538   : > { %v3666_v8 = vmul.f32 0.5, %v3665_v16 }
0x153a   : > { %v3667_v1 = vsub.f32 1.5, %v3666_v8 }
0x153b   : > { %v4269_v19 = vpop.eup %4268 }
0x153c   : > { %v3668_v23 = vmul.f32 %v4267_v30, %v3667_v1  ;;  %v3674_v11 = vmul.f32 %v4269_v19, %v3662_v62  ;;  %vm3680_vm15 = vweird.f32 %v4269_v19 }
0x153d   : > { %vm3681_vm8 = vmor %vm3679_vm5, %vm3680_vm15 }
0x153e   : > { %v3672_v7 = vsel %vm3671_vm12, %v4267_v30, %v3668_v23  ;;  %v3675_v27 = vmul.f32 %v4269_v19, %v3674_v11 }
0x153f   : > { %v3683_v56 = vmul.f32 %v3672_v7, %v3659_v18 }
0x1540   : > { %v3676_v60 = vmul.f32 0.5, %v3675_v27 }
0x1541   : > { %v3686_v37 = vmul.f32 %v3685_v59, %v3683_v56 }
0x1542   : > { %v3677_v9 = vsub.f32 1.5, %v3676_v60 }
0x1543   : > { %v3689_v45 = vadd.f32 %v3688_v54, %v3686_v37 }
0x1544   : > { %v3678_v47 = vmul.f32 %v4269_v19, %v3677_v9 }
0x1545   : > { %3692 = vst.msk [vmem:[%s498_s25 - $0x1] sm:$0xfe] %vm3691_vm0, %v3689_v45 }
0x1546   : > { %v3682_v34 = vsel %vm3681_vm8, %v4269_v19, %v3678_v47 }
0x1547   : > { %v3684_v21 = vmul.f32 %v3682_v34, %v3660_v26 }
0x1549   : > { %v3687_v41 = vmul.f32 %v3685_v59, %v3684_v21 }
0x154b   : > { %v3690_v53 = vadd.f32 %v3688_v54, %v3687_v41 }
0x154d   : > { %3694 = vst.msk [vmem:[%s498_s25 + $0x7] sm:$0x1] %vm3693_vm9, %v3690_v53 }
0x154e   : > { %4299 = shalt.err (!%p4296_p3)
}
0x154f   : > { %4088 = dma.vmem_to_hbm [thread:$0]  (%p4459_p5), %s3709_s17, 128, %s3711_s23, %s3696_s22  }
0x1550 PF: > { %s6053_s21 = sld [smem:[#allocation7_spill]] }
0x1551   : > { %s6054_s25 = sld [smem:[#allocation5_spill]] }
0x1556   : > { %p4094_p4 = scmp.ge.s32.totalorder %s6053_s21, 2 }
0x1557   : > { %s3722_s0 = sand.u32 1, %s6054_s25  }
0x1558   : > { %p4091_p7 = pnand %p4094_p4, %p4463_p6  ;;  %s3723_s26 = scalar_lea.sflag [#allocation3], %s3722_s0 }
0x155a   : > { %p4092_p8 = pneg %p4091_p7 }
0x155c   : > { %4317 = dma.done.wait (%p4092_p8), %s3723_s26, 128  }
0x155d   : > { %4319 = vsyncadd (%p4092_p8), %s3723_s26, 4294967168  ;;  %s6056_s21 = sld [smem:[#allocation8_spill]]  ;;  %s6059_s18 = smov %s4326_s19 }
0x155e   : > { %s6057_s27 = sld [smem:[#allocation6_spill]] }
0x155f   : > { %s6058_s20 = sld [smem:[#allocation9_spill]] }
0x1563   : > { %p25_p9 = scmp.ge.s32.totalorder %s6056_s21, 4  }
0x1564   : > { %s6060_s19 = smov %s6057_s27 }
0x1565   :  { %27 = sbr.rel (!%p25_p9) target bundleno = 5 (0x5), region = 138 }
0x156a   :  { %3729 = vsyncpa [#allocation3], 1 }
0x156b   :  { %3731 = vsyncpa [#allocation3 + $0x1], 1 }

</bundles_post_ra>
